<compile_context>
chip_gen: v7x
topology: tpu7x:2x2x1
jax: 0.10.0
libtpu: 0.0.40
codegen_flags: <defaults>
</compile_context>

<pallas_src>
import functools
import numpy as np
import jax
import jax.numpy as jnp
from jax.experimental import pallas as pl
from jax.experimental.pallas import tpu as pltpu

LN_EPS = 1e-5          # torch nn.LayerNorm default eps
REVIN_EPS = 1e-5


# ---------------------------------------------------------------------------
# Fused encoder + head Pallas kernel
# ---------------------------------------------------------------------------
def _encoder_head_kernel(n_layers, TB, C, P,
                         x_ref, wp_ref, wpb_ref, ap_ref, ac_ref,
                         gp_ref, bp_ref, w1p_ref, b1p_ref, w2p_ref, b2p_ref,
                         gt_ref, bt_ref, lt1_ref, bt1_ref, lt2_ref, bt2_ref,
                         gv_ref, bv_ref, lv1_ref, bv1_ref, lv2_ref, bv2_ref,
                         hw_ref, hb_ref, o_ref):
    f32 = jnp.float32
    dot = lambda a, b: jnp.dot(a, b, preferred_element_type=f32)

    # W_P: (R, patch_len) @ (patch_len, D).  Rows are (b, c, p); lanes = d_model.
    h = dot(x_ref[...], wp_ref[...]) + wpb_ref[...]
    a_p = ap_ref[...]          # group-average over patch_num (R, R)
    a_c = ac_ref[...]          # group-average over c_in      (R, R)

    for l in range(n_layers):
        src = h

        # ---- patch mixer: LayerNorm(d_model) -> D->2D -> GELU -> 2D->D ------
        mu = jnp.mean(h, axis=-1, keepdims=True)
        cen = h - mu
        var = jnp.mean(cen * cen, axis=-1, keepdims=True)
        xn = cen * jax.lax.rsqrt(var + LN_EPS) * gp_ref[l] + bp_ref[l]
        # TODO(synk): torch nn.GELU() is exact erf-GELU; tanh approximation used
        #             (erf lowering availability in Mosaic is not guaranteed).
        hh = jax.nn.gelu(dot(xn, w1p_ref[l]) + b1p_ref[l], approximate=True)
        u = dot(hh, w2p_ref[l]) + b2p_ref[l] + src

        # ---- time mixer (mix over patch_num) via block-diag left matmuls ----
        mu = dot(a_p, u)
        cen = u - mu
        var = dot(a_p, cen * cen)
        xn = cen * jax.lax.rsqrt(var + LN_EPS) * gt_ref[l] + bt_ref[l]
        hh = jax.nn.gelu(dot(lt1_ref[l], xn) + bt1_ref[l], approximate=True)
        v = dot(lt2_ref[l], hh) + bt2_ref[l] + src

        # ---- variable mixer (mix over c_in) via block-diag left matmuls -----
        mu = dot(a_c, v)
        cen = v - mu
        var = dot(a_c, cen * cen)
        xn = cen * jax.lax.rsqrt(var + LN_EPS) * gv_ref[l] + bv_ref[l]
        hh = jax.nn.gelu(dot(lv1_ref[l], xn) + bv1_ref[l], approximate=True)
        h = dot(lv2_ref[l], hh) + bv2_ref[l] + src

    # ---- FlattenHead (individual=True): per-channel weights, D kept on lanes
    for bb in range(TB):
        rows = []
        for c in range(C):
            acc = hb_ref[c:c + 1, :]                               # (1, T)
            for p in range(P):
                r = (bb * C + c) * P + p
                acc = acc + jax.lax.dot_general(
                    h[r:r + 1, :], hw_ref[c * P + p],
                    (((1,), (1,)), ((), ())), preferred_element_type=f32)
            rows.append(acc)
        o_ref[bb, :, :] = jnp.concatenate(rows, axis=0).astype(o_ref.dtype)


def _pick_tb(B, C, P, max_rows=128):
    """Batch-tile so that rows/step <= max_rows, is 8-aligned and (when
    possible) there are >= 2 parallel grid steps (v7x has 2 TensorCores)."""
    group = C * P
    cand = [tb for tb in range(1, B + 1)
            if B % tb == 0 and ((tb * group) % 8 == 0 or tb == B)
            and tb * group <= max_rows]
    if not cand:
        return 1 if (group % 8 == 0 or B == 1) else B
    multi = [tb for tb in cand if B // tb >= 2]
    return max(multi) if multi else max(cand)


def fused_encoder_head(x_lep, params, *, B, C, P, D, T, patch_len):
    """x_lep: (B, C, patch_len, P) -> (B, C, T).  One pallas_call."""
    n_layers = len(params["layers"])
    f32 = jnp.float32
    TB = _pick_tb(B, C, P)
    R = TB * C * P
    nsteps = B // TB

    eye_bc = jnp.eye(TB * C, dtype=f32)
    eye_b = jnp.eye(TB, dtype=f32)
    eye_p = jnp.eye(P, dtype=f32)
    # group-average matrices for the "LayerNorm over a sublane group" steps
    a_p = jnp.kron(eye_bc, jnp.ones((P, P), f32) / P)                     # (R,R)
    a_c = jnp.kron(eye_b, jnp.kron(jnp.ones((C, C), f32) / C, eye_p))     # (R,R)

    gp, bp, w1p, b1p, w2p, b2p = [], [], [], [], [], []
    gt, bt, lt1, bt1, lt2, bt2 = [], [], [], [], [], []
    gv, bv, lv1, bv1, lv2, bv2 = [], [], [], [], [], []
    for lp in params["layers"]:
        g, b, w1, b1, w2, b2 = lp["patch"]
        gp.append(g.reshape(1, D)); bp.append(b.reshape(1, D))
        w1p.append(w1); b1p.append(b1.reshape(1, 2 * D))
        w2p.append(w2); b2p.append(b2.reshape(1, D))

        g, b, w1, b1, w2, b2 = lp["time"]          # mix over patch_num
        gt.append(jnp.tile(g, TB * C).reshape(R, 1))
        bt.append(jnp.tile(b, TB * C).reshape(R, 1))
        lt1.append(jnp.kron(eye_bc, w1.T))                          # (2R, R)
        bt1.append(jnp.tile(b1, TB * C).reshape(2 * R, 1))
        lt2.append(jnp.kron(eye_bc, w2.T))                          # (R, 2R)
        bt2.append(jnp.tile(b2, TB * C).reshape(R, 1))

        g, b, w1, b1, w2, b2 = lp["var"]           # mix over c_in
        gv.append(jnp.tile(jnp.repeat(g, P), TB).reshape(R, 1))
        bv.append(jnp.tile(jnp.repeat(b, P), TB).reshape(R, 1))
        lv1.append(jnp.kron(eye_b, jnp.kron(w1.T, eye_p)))          # (2R, R)
        bv1.append(jnp.tile(jnp.repeat(b1, P), TB).reshape(2 * R, 1))
        lv2.append(jnp.kron(eye_b, jnp.kron(w2.T, eye_p)))          # (R, 2R)
        bv2.append(jnp.tile(jnp.repeat(b2, P), TB).reshape(R, 1))

    stack = lambda xs: jnp.stack(xs, axis=0)

    # head weights: (C, P*D, T) -> (C*P, T, D) so the contraction stays lane-dense
    hw = jnp.stack(params["head_w"], axis=0).reshape(C, P, D, T)
    hw_td = jnp.transpose(hw, (0, 1, 3, 2)).reshape(C * P, T, D)
    hb = jnp.stack(params["head_b"], axis=0)                               # (C, T)

    # encoder input: (B, C, patch_len, P) -> rows (b, c, p), lanes patch_len
    x2d = jnp.transpose(x_lep, (0, 1, 3, 2)).reshape(B * C * P, patch_len)

    operands = [
        x2d, params["wp_w"], params["wp_b"].reshape(1, D), a_p, a_c,
        stack(gp), stack(bp), stack(w1p), stack(b1p), stack(w2p), stack(b2p),
        stack(gt), stack(bt), stack(lt1), stack(bt1), stack(lt2), stack(bt2),
        stack(gv), stack(bv), stack(lv1), stack(bv1), stack(lv2), stack(bv2),
        hw_td, hb,
    ]

    def _const_spec(a):
        nd = a.ndim
        return pl.BlockSpec(a.shape, lambda i: (0,) * nd)

    in_specs = ([pl.BlockSpec((R, patch_len), lambda i: (i, 0))]
                + [_const_spec(a) for a in operands[1:]])

    kernel = functools.partial(_encoder_head_kernel, n_layers, TB, C, P)

    # NOTE: total weight footprint is well under 1 MiB, so default
    # double-buffering of the constant-index inputs is fine even on v7x.
    return pl.pallas_call(
        kernel,
        out_shape=jax.ShapeDtypeStruct((B, C, T), f32),
        grid=(nsteps,),
        in_specs=in_specs,
        out_specs=pl.BlockSpec((TB, C, T), lambda i: (i, 0, 0)),
        compiler_params=pltpu.CompilerParams(dimension_semantics=("parallel",)),
    )(*operands)


# ---------------------------------------------------------------------------
# Parameter init (deterministic, torch-like uniform)
# ---------------------------------------------------------------------------
def _linear_init(key, fan_in, fan_out):
    k1, k2 = jax.random.split(key)
    bound = 1.0 / np.sqrt(fan_in)
    w = jax.random.uniform(k1, (fan_in, fan_out), jnp.float32, -bound, bound)
    b = jax.random.uniform(k2, (fan_out,), jnp.float32, -bound, bound)
    return w, b


def _mixer_init(key, n):
    k1, k2 = jax.random.split(key)
    gamma = jnp.ones((n,), jnp.float32)
    beta = jnp.zeros((n,), jnp.float32)
    w1, b1 = _linear_init(k1, n, 2 * n)
    w2, b2 = _linear_init(k2, 2 * n, n)
    return (gamma, beta, w1, b1, w2, b2)


def init_params(key, *, c_in, context_window, patch_len, patch_num,
                d_model, target_window, n_layers):
    ks = iter(jax.random.split(key, 4 + 3 * n_layers + c_in))
    params = {
        "revin_w": jnp.ones((c_in,), jnp.float32),
        "revin_b": jnp.zeros((c_in,), jnp.float32),
    }
    params["shift_w"], params["shift_b"] = _linear_init(next(ks), context_window, patch_num * 3)
    params["wp_w"], params["wp_b"] = _linear_init(next(ks), patch_len, d_model)
    params["layers"] = [
        {
            "patch": _mixer_init(next(ks), d_model),
            "time": _mixer_init(next(ks), patch_num),
            "var": _mixer_init(next(ks), c_in),
        }
        for _ in range(n_layers)
    ]
    nf = d_model * patch_num
    hw, hb = [], []
    for _ in range(c_in):
        w, b = _linear_init(next(ks), nf, target_window)
        hw.append(w)
        hb.append(b)
    params["head_w"], params["head_b"] = hw, hb
    return params


# ---------------------------------------------------------------------------
# PaEN loss (plain JAX / XLA: gather + pairwise max, tiny)
# ---------------------------------------------------------------------------
def cal_psi(x, r):
    # x: (B, C, patch_len, patch_num)
    B, C, PL, P = x.shape
    xx = jnp.transpose(x, (0, 1, 3, 2)).reshape(B * C, P, PL)
    d = jnp.max(jnp.abs(xx[:, :, None, :] - xx[:, None, :, :]), axis=-1)   # (BC,P,P)
    ind = (d < r).astype(jnp.float32)
    mean_offdiag = (jnp.sum(ind, axis=-1) - 1.0) / (P - 1)   # diagonal dist 0 < r
    c = jnp.log(1.0 + mean_offdiag)
    return jnp.mean(c, axis=-1)                              # (BC,)


def cal_paen(lfp, lep, r, lambda_):
    psi_diff = cal_psi(lfp, r) - cal_psi(lep, r)
    B, C, PL, P = lep.shape
    lep2 = jnp.transpose(lep, (0, 1, 3, 2)).reshape(B * C, P, PL)
    sum_x = jnp.sum(lep2, axis=(-2, -1))
    return jnp.mean(sum_x * psi_diff) * lambda_


# ---------------------------------------------------------------------------
# Full model forward
# ---------------------------------------------------------------------------
def model_forward(params, x, *, patch_len, stride, patch_num, d_model,
                  target_window, lambda_, r):
    B, C, L = x.shape

    # ---- RevIN 'norm' (stats over time) ----
    zt = jnp.transpose(x, (0, 2, 1))                            # (B, L, C)
    mean = jnp.mean(zt, axis=1, keepdims=True)
    var = jnp.mean((zt - mean) ** 2, axis=1, keepdims=True)
    stdev = jnp.sqrt(var + REVIN_EPS)
    zt_n = (zt - mean) / stdev * params["revin_w"] + params["revin_b"]
    z = jnp.transpose(zt_n, (0, 2, 1))                          # (B, C, L)

    # ---- x_lfp: unfold(size=patch_len, step=stride), then permute ----
    idx = jnp.arange(patch_num)[:, None] * stride + jnp.arange(patch_len)[None, :]
    x_lfp = jnp.transpose(z[:, :, idx], (0, 1, 3, 2))           # (B, C, pl, P)

    # ---- patch_shift_linear (tiny: left to XLA per perf review) ----
    anchor_shift = z.reshape(B * C, L) @ params["shift_w"] + params["shift_b"]
    rel = anchor_shift.reshape(B * C, patch_num, 3)

    # ---- PointWhCoder ----
    wh_bias = float(np.log(np.sqrt(5.0 / 3.0)))
    rel = rel.at[:, :, 1:].add(wh_bias)
    pixel_x = 2.0 / patch_num
    anchor = -1.0 + (0.5 + jnp.arange(patch_num, dtype=jnp.float32)) * pixel_x
    dx = jnp.tanh(rel[:, :, 0]) * pixel_x / 4.0
    dw1 = jax.nn.relu(jnp.tanh(rel[:, :, 1])) * pixel_x * 0.25 + pixel_x
    dw2 = jax.nn.relu(jnp.tanh(rel[:, :, 2])) * pixel_x * 0.25 + pixel_x
    left = jnp.clip(dx + anchor[None, :] - dw1, -1.0, 1.0)
    right = jnp.clip(dx + anchor[None, :] + dw2, -1.0, 1.0)
    # F.interpolate(..., mode='linear', align_corners=True) between endpoints
    t = jnp.arange(patch_len, dtype=jnp.float32) / max(patch_len - 1, 1)
    gx = left[:, :, None] * (1.0 - t) + right[:, :, None] * t   # (BC, P, pl)

    # ---- grid_sample (bilinear, border, align_corners=False); y-coord=1 -> weight 1
    z1d = z.reshape(B * C, L)
    ix = jnp.clip(((gx + 1.0) * L - 1.0) / 2.0, 0.0, L - 1.0)
    x0 = jnp.floor(ix)
    frac = ix - x0
    i0 = x0.astype(jnp.int32)
    i1 = jnp.minimum(i0 + 1, L - 1)
    g0 = jnp.take_along_axis(z1d, i0.reshape(B * C, -1), axis=1).reshape(ix.shape)
    g1 = jnp.take_along_axis(z1d, i1.reshape(B * C, -1), axis=1).reshape(ix.shape)
    patch = g0 * (1.0 - frac) + g1 * frac                       # (BC, P, pl)
    x_lep = jnp.transpose(patch.reshape(B, C, patch_num, patch_len), (0, 1, 3, 2))

    # ---- PaEN loss ----
    paen = cal_paen(x_lfp, x_lep, r, lambda_)

    # ---- Encoder (W_P + HDMixer layers) + FlattenHead: one fused Pallas call
    out = fused_encoder_head(x_lep, params, B=B, C=C, P=patch_num, D=d_model,
                             T=target_window, patch_len=patch_len)   # (B, C, T)

    # ---- RevIN 'denorm' ----
    ot = jnp.transpose(out, (0, 2, 1))                          # (B, T, C)
    ot = (ot - params["revin_b"]) / (params["revin_w"] + REVIN_EPS * REVIN_EPS)
    ot = ot * stdev + mean
    out = jnp.transpose(ot, (0, 2, 1))
    return out, paen


# ---------------------------------------------------------------------------
if __name__ == "__main__":
    B, C, L = 2, 4, 16                 # batch, c_in (= enc_in), context_window
    patch_len, stride = 4, 4           # stride fixed to 4 by Model
    patch_num = L // stride
    d_model, n_layers = 128, 2         # fixed by Model
    target_window = 8

    key = jax.random.PRNGKey(0)
    kx, kp = jax.random.split(key)
    x = jax.random.normal(kx, (B, C, L), jnp.float32)
    params = init_params(kp, c_in=C, context_window=L, patch_len=patch_len,
                         patch_num=patch_num, d_model=d_model,
                         target_window=target_window, n_layers=n_layers)

    fwd = jax.jit(functools.partial(
        model_forward, patch_len=patch_len, stride=stride, patch_num=patch_num,
        d_model=d_model, target_window=target_window, lambda_=0.1, r=0.01))

    out, paen_loss = fwd(params, x)
    jax.block_until_ready((out, paen_loss))
    assert out.shape == (B, C, target_window)
    assert paen_loss.shape == ()
    print("KERNEL_OK")
</pallas_src>

<mosaic_0001>
module attributes {stable_mosaic.version = 11 : i64} {
  func.func @_encoder_head_kernel(%arg0: i32, %arg1: memref<16x4xf32, #tpu.memory_space<vmem>>, %arg2: memref<4x128xf32, #tpu.memory_space<vmem>>, %arg3: memref<1x128xf32, #tpu.memory_space<vmem>>, %arg4: memref<16x16xf32, #tpu.memory_space<vmem>>, %arg5: memref<16x16xf32, #tpu.memory_space<vmem>>, %arg6: memref<2x1x128xf32, #tpu.memory_space<vmem>>, %arg7: memref<2x1x128xf32, #tpu.memory_space<vmem>>, %arg8: memref<2x128x256xf32, #tpu.memory_space<vmem>>, %arg9: memref<2x1x256xf32, #tpu.memory_space<vmem>>, %arg10: memref<2x256x128xf32, #tpu.memory_space<vmem>>, %arg11: memref<2x1x128xf32, #tpu.memory_space<vmem>>, %arg12: memref<2x16x1xf32, #tpu.memory_space<vmem>>, %arg13: memref<2x16x1xf32, #tpu.memory_space<vmem>>, %arg14: memref<2x32x16xf32, #tpu.memory_space<vmem>>, %arg15: memref<2x32x1xf32, #tpu.memory_space<vmem>>, %arg16: memref<2x16x32xf32, #tpu.memory_space<vmem>>, %arg17: memref<2x16x1xf32, #tpu.memory_space<vmem>>, %arg18: memref<2x16x1xf32, #tpu.memory_space<vmem>>, %arg19: memref<2x16x1xf32, #tpu.memory_space<vmem>>, %arg20: memref<2x32x16xf32, #tpu.memory_space<vmem>>, %arg21: memref<2x32x1xf32, #tpu.memory_space<vmem>>, %arg22: memref<2x16x32xf32, #tpu.memory_space<vmem>>, %arg23: memref<2x16x1xf32, #tpu.memory_space<vmem>>, %arg24: memref<16x8x128xf32, #tpu.memory_space<vmem>>, %arg25: memref<4x8xf32, #tpu.memory_space<vmem>>, %arg26: memref<1x4x8xf32, #tpu.memory_space<vmem>>) attributes {dimension_semantics = [#tpu.dimension_semantics<parallel>], iteration_bounds = array<i64: 2>, scalar_prefetch = 0 : i64, scratch_operands = 0 : i64, tpu.core_type = #tpu.core_type<tc>, window_params = [{transform_indices = @transform_0, window_bounds = array<i64: 16, 4>}, {pipeline_mode = #tpu.pipeline_mode<synchronous>, transform_indices = @transform_1, window_bounds = array<i64: 4, 128>}, {pipeline_mode = #tpu.pipeline_mode<synchronous>, transform_indices = @transform_2, window_bounds = array<i64: 1, 128>}, {pipeline_mode = #tpu.pipeline_mode<synchronous>, transform_indices = @transform_3, window_bounds = array<i64: 16, 16>}, {pipeline_mode = #tpu.pipeline_mode<synchronous>, transform_indices = @transform_4, window_bounds = array<i64: 16, 16>}, {pipeline_mode = #tpu.pipeline_mode<synchronous>, transform_indices = @transform_5, window_bounds = array<i64: 2, 1, 128>}, {pipeline_mode = #tpu.pipeline_mode<synchronous>, transform_indices = @transform_6, window_bounds = array<i64: 2, 1, 128>}, {pipeline_mode = #tpu.pipeline_mode<synchronous>, transform_indices = @transform_7, window_bounds = array<i64: 2, 128, 256>}, {pipeline_mode = #tpu.pipeline_mode<synchronous>, transform_indices = @transform_8, window_bounds = array<i64: 2, 1, 256>}, {pipeline_mode = #tpu.pipeline_mode<synchronous>, transform_indices = @transform_9, window_bounds = array<i64: 2, 256, 128>}, {pipeline_mode = #tpu.pipeline_mode<synchronous>, transform_indices = @transform_10, window_bounds = array<i64: 2, 1, 128>}, {pipeline_mode = #tpu.pipeline_mode<synchronous>, transform_indices = @transform_11, window_bounds = array<i64: 2, 16, 1>}, {pipeline_mode = #tpu.pipeline_mode<synchronous>, transform_indices = @transform_12, window_bounds = array<i64: 2, 16, 1>}, {pipeline_mode = #tpu.pipeline_mode<synchronous>, transform_indices = @transform_13, window_bounds = array<i64: 2, 32, 16>}, {pipeline_mode = #tpu.pipeline_mode<synchronous>, transform_indices = @transform_14, window_bounds = array<i64: 2, 32, 1>}, {pipeline_mode = #tpu.pipeline_mode<synchronous>, transform_indices = @transform_15, window_bounds = array<i64: 2, 16, 32>}, {pipeline_mode = #tpu.pipeline_mode<synchronous>, transform_indices = @transform_16, window_bounds = array<i64: 2, 16, 1>}, {pipeline_mode = #tpu.pipeline_mode<synchronous>, transform_indices = @transform_17, window_bounds = array<i64: 2, 16, 1>}, {pipeline_mode = #tpu.pipeline_mode<synchronous>, transform_indices = @transform_18, window_bounds = array<i64: 2, 16, 1>}, {pipeline_mode = #tpu.pipeline_mode<synchronous>, transform_indices = @transform_19, window_bounds = array<i64: 2, 32, 16>}, {pipeline_mode = #tpu.pipeline_mode<synchronous>, transform_indices = @transform_20, window_bounds = array<i64: 2, 32, 1>}, {pipeline_mode = #tpu.pipeline_mode<synchronous>, transform_indices = @transform_21, window_bounds = array<i64: 2, 16, 32>}, {pipeline_mode = #tpu.pipeline_mode<synchronous>, transform_indices = @transform_22, window_bounds = array<i64: 2, 16, 1>}, {pipeline_mode = #tpu.pipeline_mode<synchronous>, transform_indices = @transform_23, window_bounds = array<i64: 16, 8, 128>}, {pipeline_mode = #tpu.pipeline_mode<synchronous>, transform_indices = @transform_24, window_bounds = array<i64: 4, 8>}, {transform_indices = @transform_25, window_bounds = array<i64: 1, 4, 8>}]} {
    %c0 = arith.constant 0 : index
    %c0_0 = arith.constant 0 : index
    %0 = vector.load %arg1[%c0, %c0_0] : memref<16x4xf32, #tpu.memory_space<vmem>>, vector<16x4xf32>
    %c0_1 = arith.constant 0 : index
    %c0_2 = arith.constant 0 : index
    %1 = vector.load %arg2[%c0_1, %c0_2] : memref<4x128xf32, #tpu.memory_space<vmem>>, vector<4x128xf32>
    %cst = arith.constant dense<0.000000e+00> : vector<16x128xf32>
    %2 = tpu.matmul %0, %1, %cst {dimension_numbers = #tpu.dot_dimension_numbers<[1], [0], [0], [1], [0, 0, 1, 1], [], []>} : vector<16x4xf32>, vector<4x128xf32>, vector<16x128xf32> -> vector<16x128xf32>
    %c0_3 = arith.constant 0 : index
    %c0_4 = arith.constant 0 : index
    %3 = vector.load %arg3[%c0_3, %c0_4] : memref<1x128xf32, #tpu.memory_space<vmem>>, vector<1x128xf32>
    %4 = vector.broadcast %3 : vector<1x128xf32> to vector<16x128xf32>
    %5 = arith.addf %2, %4 : vector<16x128xf32>
    %c0_5 = arith.constant 0 : index
    %c0_6 = arith.constant 0 : index
    %6 = vector.load %arg4[%c0_5, %c0_6] : memref<16x16xf32, #tpu.memory_space<vmem>>, vector<16x16xf32>
    %c0_7 = arith.constant 0 : index
    %c0_8 = arith.constant 0 : index
    %7 = vector.load %arg5[%c0_7, %c0_8] : memref<16x16xf32, #tpu.memory_space<vmem>>, vector<16x16xf32>
    %cst_9 = arith.constant dense<0.000000e+00> : vector<16xf32>
    %8 = vector.multi_reduction <add>, %5, %cst_9 [1] : vector<16x128xf32> to vector<16xf32>
    %9 = vector.shape_cast %8 : vector<16xf32> to vector<16x1xf32>
    %cst_10 = arith.constant 1.280000e+02 : f32
    %10 = vector.broadcast %cst_10 : f32 to vector<16x1xf32>
    %11 = arith.divf %9, %10 : vector<16x1xf32>
    %12 = vector.broadcast %11 : vector<16x1xf32> to vector<16x128xf32>
    %13 = arith.subf %5, %12 : vector<16x128xf32>
    %14 = arith.mulf %13, %13 : vector<16x128xf32>
    %cst_11 = arith.constant dense<0.000000e+00> : vector<16xf32>
    %15 = vector.multi_reduction <add>, %14, %cst_11 [1] : vector<16x128xf32> to vector<16xf32>
    %16 = vector.shape_cast %15 : vector<16xf32> to vector<16x1xf32>
    %cst_12 = arith.constant 1.280000e+02 : f32
    %17 = vector.broadcast %cst_12 : f32 to vector<16x1xf32>
    %18 = arith.divf %16, %17 : vector<16x1xf32>
    %cst_13 = arith.constant 9.99999974E-6 : f32
    %19 = vector.broadcast %cst_13 : f32 to vector<16x1xf32>
    %20 = arith.addf %18, %19 : vector<16x1xf32>
    %21 = math.rsqrt %20 : vector<16x1xf32>
    %22 = vector.broadcast %21 : vector<16x1xf32> to vector<16x128xf32>
    %23 = arith.mulf %13, %22 : vector<16x128xf32>
    %c0_14 = arith.constant 0 : index
    %c0_15 = arith.constant 0 : index
    %c0_16 = arith.constant 0 : index
    %24 = vector.load %arg6[%c0_14, %c0_15, %c0_16] : memref<2x1x128xf32, #tpu.memory_space<vmem>>, vector<1x1x128xf32>
    %25 = vector.shape_cast %24 : vector<1x1x128xf32> to vector<1x128xf32>
    %26 = vector.broadcast %25 : vector<1x128xf32> to vector<16x128xf32>
    %27 = arith.mulf %23, %26 : vector<16x128xf32>
    %c0_17 = arith.constant 0 : index
    %c0_18 = arith.constant 0 : index
    %c0_19 = arith.constant 0 : index
    %28 = vector.load %arg7[%c0_17, %c0_18, %c0_19] : memref<2x1x128xf32, #tpu.memory_space<vmem>>, vector<1x1x128xf32>
    %29 = vector.shape_cast %28 : vector<1x1x128xf32> to vector<1x128xf32>
    %30 = vector.broadcast %29 : vector<1x128xf32> to vector<16x128xf32>
    %31 = arith.addf %27, %30 : vector<16x128xf32>
    %c0_20 = arith.constant 0 : index
    %c0_21 = arith.constant 0 : index
    %c0_22 = arith.constant 0 : index
    %32 = vector.load %arg8[%c0_20, %c0_21, %c0_22] : memref<2x128x256xf32, #tpu.memory_space<vmem>>, vector<1x128x256xf32>
    %33 = vector.shape_cast %32 : vector<1x128x256xf32> to vector<128x256xf32>
    %cst_23 = arith.constant dense<0.000000e+00> : vector<16x256xf32>
    %34 = tpu.matmul %31, %33, %cst_23 {dimension_numbers = #tpu.dot_dimension_numbers<[1], [0], [0], [1], [0, 0, 1, 1], [], []>} : vector<16x128xf32>, vector<128x256xf32>, vector<16x256xf32> -> vector<16x256xf32>
    %c0_24 = arith.constant 0 : index
    %c0_25 = arith.constant 0 : index
    %c0_26 = arith.constant 0 : index
    %35 = vector.load %arg9[%c0_24, %c0_25, %c0_26] : memref<2x1x256xf32, #tpu.memory_space<vmem>>, vector<1x1x256xf32>
    %36 = vector.shape_cast %35 : vector<1x1x256xf32> to vector<1x256xf32>
    %37 = vector.broadcast %36 : vector<1x256xf32> to vector<16x256xf32>
    %38 = arith.addf %34, %37 : vector<16x256xf32>
    %39 = arith.mulf %38, %38 : vector<16x256xf32>
    %40 = arith.mulf %38, %39 : vector<16x256xf32>
    %cst_27 = arith.constant 4.471500e-02 : f32
    %41 = vector.broadcast %cst_27 : f32 to vector<16x256xf32>
    %42 = arith.mulf %41, %40 : vector<16x256xf32>
    %43 = arith.addf %38, %42 : vector<16x256xf32>
    %cst_28 = arith.constant 0.797884583 : f32
    %44 = vector.broadcast %cst_28 : f32 to vector<16x256xf32>
    %45 = arith.mulf %44, %43 : vector<16x256xf32>
    %46 = math.tanh %45 : vector<16x256xf32>
    %cst_29 = arith.constant 1.000000e+00 : f32
    %47 = vector.broadcast %cst_29 : f32 to vector<16x256xf32>
    %48 = arith.addf %47, %46 : vector<16x256xf32>
    %cst_30 = arith.constant 5.000000e-01 : f32
    %49 = vector.broadcast %cst_30 : f32 to vector<16x256xf32>
    %50 = arith.mulf %49, %48 : vector<16x256xf32>
    %51 = arith.mulf %38, %50 : vector<16x256xf32>
    %c0_31 = arith.constant 0 : index
    %c0_32 = arith.constant 0 : index
    %c0_33 = arith.constant 0 : index
    %52 = vector.load %arg10[%c0_31, %c0_32, %c0_33] : memref<2x256x128xf32, #tpu.memory_space<vmem>>, vector<1x256x128xf32>
    %53 = vector.shape_cast %52 : vector<1x256x128xf32> to vector<256x128xf32>
    %cst_34 = arith.constant dense<0.000000e+00> : vector<16x128xf32>
    %54 = tpu.matmul %51, %53, %cst_34 {dimension_numbers = #tpu.dot_dimension_numbers<[1], [0], [0], [1], [0, 0, 1, 1], [], []>} : vector<16x256xf32>, vector<256x128xf32>, vector<16x128xf32> -> vector<16x128xf32>
    %c0_35 = arith.constant 0 : index
    %c0_36 = arith.constant 0 : index
    %c0_37 = arith.constant 0 : index
    %55 = vector.load %arg11[%c0_35, %c0_36, %c0_37] : memref<2x1x128xf32, #tpu.memory_space<vmem>>, vector<1x1x128xf32>
    %56 = vector.shape_cast %55 : vector<1x1x128xf32> to vector<1x128xf32>
    %57 = vector.broadcast %56 : vector<1x128xf32> to vector<16x128xf32>
    %58 = arith.addf %54, %57 : vector<16x128xf32>
    %59 = arith.addf %58, %5 : vector<16x128xf32>
    %cst_38 = arith.constant dense<0.000000e+00> : vector<16x128xf32>
    %60 = tpu.matmul %6, %59, %cst_38 {dimension_numbers = #tpu.dot_dimension_numbers<[1], [0], [0], [1], [0, 0, 1, 1], [], []>} : vector<16x16xf32>, vector<16x128xf32>, vector<16x128xf32> -> vector<16x128xf32>
    %61 = arith.subf %59, %60 : vector<16x128xf32>
    %62 = arith.mulf %61, %61 : vector<16x128xf32>
    %cst_39 = arith.constant dense<0.000000e+00> : vector<16x128xf32>
    %63 = tpu.matmul %6, %62, %cst_39 {dimension_numbers = #tpu.dot_dimension_numbers<[1], [0], [0], [1], [0, 0, 1, 1], [], []>} : vector<16x16xf32>, vector<16x128xf32>, vector<16x128xf32> -> vector<16x128xf32>
    %cst_40 = arith.constant 9.99999974E-6 : f32
    %64 = vector.broadcast %cst_40 : f32 to vector<16x128xf32>
    %65 = arith.addf %63, %64 : vector<16x128xf32>
    %66 = math.rsqrt %65 : vector<16x128xf32>
    %67 = arith.mulf %61, %66 : vector<16x128xf32>
    %c0_41 = arith.constant 0 : index
    %c0_42 = arith.constant 0 : index
    %c0_43 = arith.constant 0 : index
    %68 = vector.load %arg12[%c0_41, %c0_42, %c0_43] : memref<2x16x1xf32, #tpu.memory_space<vmem>>, vector<1x16x1xf32>
    %69 = vector.shape_cast %68 : vector<1x16x1xf32> to vector<16x1xf32>
    %70 = vector.broadcast %69 : vector<16x1xf32> to vector<16x128xf32>
    %71 = arith.mulf %67, %70 : vector<16x128xf32>
    %c0_44 = arith.constant 0 : index
    %c0_45 = arith.constant 0 : index
    %c0_46 = arith.constant 0 : index
    %72 = vector.load %arg13[%c0_44, %c0_45, %c0_46] : memref<2x16x1xf32, #tpu.memory_space<vmem>>, vector<1x16x1xf32>
    %73 = vector.shape_cast %72 : vector<1x16x1xf32> to vector<16x1xf32>
    %74 = vector.broadcast %73 : vector<16x1xf32> to vector<16x128xf32>
    %75 = arith.addf %71, %74 : vector<16x128xf32>
    %c0_47 = arith.constant 0 : index
    %c0_48 = arith.constant 0 : index
    %c0_49 = arith.constant 0 : index
    %76 = vector.load %arg14[%c0_47, %c0_48, %c0_49] : memref<2x32x16xf32, #tpu.memory_space<vmem>>, vector<1x32x16xf32>
    %77 = vector.shape_cast %76 : vector<1x32x16xf32> to vector<32x16xf32>
    %cst_50 = arith.constant dense<0.000000e+00> : vector<32x128xf32>
    %78 = tpu.matmul %77, %75, %cst_50 {dimension_numbers = #tpu.dot_dimension_numbers<[1], [0], [0], [1], [0, 0, 1, 1], [], []>} : vector<32x16xf32>, vector<16x128xf32>, vector<32x128xf32> -> vector<32x128xf32>
    %c0_51 = arith.constant 0 : index
    %c0_52 = arith.constant 0 : index
    %c0_53 = arith.constant 0 : index
    %79 = vector.load %arg15[%c0_51, %c0_52, %c0_53] : memref<2x32x1xf32, #tpu.memory_space<vmem>>, vector<1x32x1xf32>
    %80 = vector.shape_cast %79 : vector<1x32x1xf32> to vector<32x1xf32>
    %81 = vector.broadcast %80 : vector<32x1xf32> to vector<32x128xf32>
    %82 = arith.addf %78, %81 : vector<32x128xf32>
    %83 = arith.mulf %82, %82 : vector<32x128xf32>
    %84 = arith.mulf %82, %83 : vector<32x128xf32>
    %cst_54 = arith.constant 4.471500e-02 : f32
    %85 = vector.broadcast %cst_54 : f32 to vector<32x128xf32>
    %86 = arith.mulf %85, %84 : vector<32x128xf32>
    %87 = arith.addf %82, %86 : vector<32x128xf32>
    %cst_55 = arith.constant 0.797884583 : f32
    %88 = vector.broadcast %cst_55 : f32 to vector<32x128xf32>
    %89 = arith.mulf %88, %87 : vector<32x128xf32>
    %90 = math.tanh %89 : vector<32x128xf32>
    %cst_56 = arith.constant 1.000000e+00 : f32
    %91 = vector.broadcast %cst_56 : f32 to vector<32x128xf32>
    %92 = arith.addf %91, %90 : vector<32x128xf32>
    %cst_57 = arith.constant 5.000000e-01 : f32
    %93 = vector.broadcast %cst_57 : f32 to vector<32x128xf32>
    %94 = arith.mulf %93, %92 : vector<32x128xf32>
    %95 = arith.mulf %82, %94 : vector<32x128xf32>
    %c0_58 = arith.constant 0 : index
    %c0_59 = arith.constant 0 : index
    %c0_60 = arith.constant 0 : index
    %96 = vector.load %arg16[%c0_58, %c0_59, %c0_60] : memref<2x16x32xf32, #tpu.memory_space<vmem>>, vector<1x16x32xf32>
    %97 = vector.shape_cast %96 : vector<1x16x32xf32> to vector<16x32xf32>
    %cst_61 = arith.constant dense<0.000000e+00> : vector<16x128xf32>
    %98 = tpu.matmul %97, %95, %cst_61 {dimension_numbers = #tpu.dot_dimension_numbers<[1], [0], [0], [1], [0, 0, 1, 1], [], []>} : vector<16x32xf32>, vector<32x128xf32>, vector<16x128xf32> -> vector<16x128xf32>
    %c0_62 = arith.constant 0 : index
    %c0_63 = arith.constant 0 : index
    %c0_64 = arith.constant 0 : index
    %99 = vector.load %arg17[%c0_62, %c0_63, %c0_64] : memref<2x16x1xf32, #tpu.memory_space<vmem>>, vector<1x16x1xf32>
    %100 = vector.shape_cast %99 : vector<1x16x1xf32> to vector<16x1xf32>
    %101 = vector.broadcast %100 : vector<16x1xf32> to vector<16x128xf32>
    %102 = arith.addf %98, %101 : vector<16x128xf32>
    %103 = arith.addf %102, %5 : vector<16x128xf32>
    %cst_65 = arith.constant dense<0.000000e+00> : vector<16x128xf32>
    %104 = tpu.matmul %7, %103, %cst_65 {dimension_numbers = #tpu.dot_dimension_numbers<[1], [0], [0], [1], [0, 0, 1, 1], [], []>} : vector<16x16xf32>, vector<16x128xf32>, vector<16x128xf32> -> vector<16x128xf32>
    %105 = arith.subf %103, %104 : vector<16x128xf32>
    %106 = arith.mulf %105, %105 : vector<16x128xf32>
    %cst_66 = arith.constant dense<0.000000e+00> : vector<16x128xf32>
    %107 = tpu.matmul %7, %106, %cst_66 {dimension_numbers = #tpu.dot_dimension_numbers<[1], [0], [0], [1], [0, 0, 1, 1], [], []>} : vector<16x16xf32>, vector<16x128xf32>, vector<16x128xf32> -> vector<16x128xf32>
    %cst_67 = arith.constant 9.99999974E-6 : f32
    %108 = vector.broadcast %cst_67 : f32 to vector<16x128xf32>
    %109 = arith.addf %107, %108 : vector<16x128xf32>
    %110 = math.rsqrt %109 : vector<16x128xf32>
    %111 = arith.mulf %105, %110 : vector<16x128xf32>
    %c0_68 = arith.constant 0 : index
    %c0_69 = arith.constant 0 : index
    %c0_70 = arith.constant 0 : index
    %112 = vector.load %arg18[%c0_68, %c0_69, %c0_70] : memref<2x16x1xf32, #tpu.memory_space<vmem>>, vector<1x16x1xf32>
    %113 = vector.shape_cast %112 : vector<1x16x1xf32> to vector<16x1xf32>
    %114 = vector.broadcast %113 : vector<16x1xf32> to vector<16x128xf32>
    %115 = arith.mulf %111, %114 : vector<16x128xf32>
    %c0_71 = arith.constant 0 : index
    %c0_72 = arith.constant 0 : index
    %c0_73 = arith.constant 0 : index
    %116 = vector.load %arg19[%c0_71, %c0_72, %c0_73] : memref<2x16x1xf32, #tpu.memory_space<vmem>>, vector<1x16x1xf32>
    %117 = vector.shape_cast %116 : vector<1x16x1xf32> to vector<16x1xf32>
    %118 = vector.broadcast %117 : vector<16x1xf32> to vector<16x128xf32>
    %119 = arith.addf %115, %118 : vector<16x128xf32>
    %c0_74 = arith.constant 0 : index
    %c0_75 = arith.constant 0 : index
    %c0_76 = arith.constant 0 : index
    %120 = vector.load %arg20[%c0_74, %c0_75, %c0_76] : memref<2x32x16xf32, #tpu.memory_space<vmem>>, vector<1x32x16xf32>
    %121 = vector.shape_cast %120 : vector<1x32x16xf32> to vector<32x16xf32>
    %cst_77 = arith.constant dense<0.000000e+00> : vector<32x128xf32>
    %122 = tpu.matmul %121, %119, %cst_77 {dimension_numbers = #tpu.dot_dimension_numbers<[1], [0], [0], [1], [0, 0, 1, 1], [], []>} : vector<32x16xf32>, vector<16x128xf32>, vector<32x128xf32> -> vector<32x128xf32>
    %c0_78 = arith.constant 0 : index
    %c0_79 = arith.constant 0 : index
    %c0_80 = arith.constant 0 : index
    %123 = vector.load %arg21[%c0_78, %c0_79, %c0_80] : memref<2x32x1xf32, #tpu.memory_space<vmem>>, vector<1x32x1xf32>
    %124 = vector.shape_cast %123 : vector<1x32x1xf32> to vector<32x1xf32>
    %125 = vector.broadcast %124 : vector<32x1xf32> to vector<32x128xf32>
    %126 = arith.addf %122, %125 : vector<32x128xf32>
    %127 = arith.mulf %126, %126 : vector<32x128xf32>
    %128 = arith.mulf %126, %127 : vector<32x128xf32>
    %cst_81 = arith.constant 4.471500e-02 : f32
    %129 = vector.broadcast %cst_81 : f32 to vector<32x128xf32>
    %130 = arith.mulf %129, %128 : vector<32x128xf32>
    %131 = arith.addf %126, %130 : vector<32x128xf32>
    %cst_82 = arith.constant 0.797884583 : f32
    %132 = vector.broadcast %cst_82 : f32 to vector<32x128xf32>
    %133 = arith.mulf %132, %131 : vector<32x128xf32>
    %134 = math.tanh %133 : vector<32x128xf32>
    %cst_83 = arith.constant 1.000000e+00 : f32
    %135 = vector.broadcast %cst_83 : f32 to vector<32x128xf32>
    %136 = arith.addf %135, %134 : vector<32x128xf32>
    %cst_84 = arith.constant 5.000000e-01 : f32
    %137 = vector.broadcast %cst_84 : f32 to vector<32x128xf32>
    %138 = arith.mulf %137, %136 : vector<32x128xf32>
    %139 = arith.mulf %126, %138 : vector<32x128xf32>
    %c0_85 = arith.constant 0 : index
    %c0_86 = arith.constant 0 : index
    %c0_87 = arith.constant 0 : index
    %140 = vector.load %arg22[%c0_85, %c0_86, %c0_87] : memref<2x16x32xf32, #tpu.memory_space<vmem>>, vector<1x16x32xf32>
    %141 = vector.shape_cast %140 : vector<1x16x32xf32> to vector<16x32xf32>
    %cst_88 = arith.constant dense<0.000000e+00> : vector<16x128xf32>
    %142 = tpu.matmul %141, %139, %cst_88 {dimension_numbers = #tpu.dot_dimension_numbers<[1], [0], [0], [1], [0, 0, 1, 1], [], []>} : vector<16x32xf32>, vector<32x128xf32>, vector<16x128xf32> -> vector<16x128xf32>
    %c0_89 = arith.constant 0 : index
    %c0_90 = arith.constant 0 : index
    %c0_91 = arith.constant 0 : index
    %143 = vector.load %arg23[%c0_89, %c0_90, %c0_91] : memref<2x16x1xf32, #tpu.memory_space<vmem>>, vector<1x16x1xf32>
    %144 = vector.shape_cast %143 : vector<1x16x1xf32> to vector<16x1xf32>
    %145 = vector.broadcast %144 : vector<16x1xf32> to vector<16x128xf32>
    %146 = arith.addf %142, %145 : vector<16x128xf32>
    %147 = arith.addf %146, %5 : vector<16x128xf32>
    %cst_92 = arith.constant dense<0.000000e+00> : vector<16xf32>
    %148 = vector.multi_reduction <add>, %147, %cst_92 [1] : vector<16x128xf32> to vector<16xf32>
    %149 = vector.shape_cast %148 : vector<16xf32> to vector<16x1xf32>
    %cst_93 = arith.constant 1.280000e+02 : f32
    %150 = vector.broadcast %cst_93 : f32 to vector<16x1xf32>
    %151 = arith.divf %149, %150 : vector<16x1xf32>
    %152 = vector.broadcast %151 : vector<16x1xf32> to vector<16x128xf32>
    %153 = arith.subf %147, %152 : vector<16x128xf32>
    %154 = arith.mulf %153, %153 : vector<16x128xf32>
    %cst_94 = arith.constant dense<0.000000e+00> : vector<16xf32>
    %155 = vector.multi_reduction <add>, %154, %cst_94 [1] : vector<16x128xf32> to vector<16xf32>
    %156 = vector.shape_cast %155 : vector<16xf32> to vector<16x1xf32>
    %cst_95 = arith.constant 1.280000e+02 : f32
    %157 = vector.broadcast %cst_95 : f32 to vector<16x1xf32>
    %158 = arith.divf %156, %157 : vector<16x1xf32>
    %cst_96 = arith.constant 9.99999974E-6 : f32
    %159 = vector.broadcast %cst_96 : f32 to vector<16x1xf32>
    %160 = arith.addf %158, %159 : vector<16x1xf32>
    %161 = math.rsqrt %160 : vector<16x1xf32>
    %162 = vector.broadcast %161 : vector<16x1xf32> to vector<16x128xf32>
    %163 = arith.mulf %153, %162 : vector<16x128xf32>
    %c1 = arith.constant 1 : index
    %c0_97 = arith.constant 0 : index
    %c0_98 = arith.constant 0 : index
    %164 = vector.load %arg6[%c1, %c0_97, %c0_98] : memref<2x1x128xf32, #tpu.memory_space<vmem>>, vector<1x1x128xf32>
    %165 = vector.shape_cast %164 : vector<1x1x128xf32> to vector<1x128xf32>
    %166 = vector.broadcast %165 : vector<1x128xf32> to vector<16x128xf32>
    %167 = arith.mulf %163, %166 : vector<16x128xf32>
    %c1_99 = arith.constant 1 : index
    %c0_100 = arith.constant 0 : index
    %c0_101 = arith.constant 0 : index
    %168 = vector.load %arg7[%c1_99, %c0_100, %c0_101] : memref<2x1x128xf32, #tpu.memory_space<vmem>>, vector<1x1x128xf32>
    %169 = vector.shape_cast %168 : vector<1x1x128xf32> to vector<1x128xf32>
    %170 = vector.broadcast %169 : vector<1x128xf32> to vector<16x128xf32>
    %171 = arith.addf %167, %170 : vector<16x128xf32>
    %c1_102 = arith.constant 1 : index
    %c0_103 = arith.constant 0 : index
    %c0_104 = arith.constant 0 : index
    %172 = vector.load %arg8[%c1_102, %c0_103, %c0_104] : memref<2x128x256xf32, #tpu.memory_space<vmem>>, vector<1x128x256xf32>
    %173 = vector.shape_cast %172 : vector<1x128x256xf32> to vector<128x256xf32>
    %cst_105 = arith.constant dense<0.000000e+00> : vector<16x256xf32>
    %174 = tpu.matmul %171, %173, %cst_105 {dimension_numbers = #tpu.dot_dimension_numbers<[1], [0], [0], [1], [0, 0, 1, 1], [], []>} : vector<16x128xf32>, vector<128x256xf32>, vector<16x256xf32> -> vector<16x256xf32>
    %c1_106 = arith.constant 1 : index
    %c0_107 = arith.constant 0 : index
    %c0_108 = arith.constant 0 : index
    %175 = vector.load %arg9[%c1_106, %c0_107, %c0_108] : memref<2x1x256xf32, #tpu.memory_space<vmem>>, vector<1x1x256xf32>
    %176 = vector.shape_cast %175 : vector<1x1x256xf32> to vector<1x256xf32>
    %177 = vector.broadcast %176 : vector<1x256xf32> to vector<16x256xf32>
    %178 = arith.addf %174, %177 : vector<16x256xf32>
    %179 = arith.mulf %178, %178 : vector<16x256xf32>
    %180 = arith.mulf %178, %179 : vector<16x256xf32>
    %cst_109 = arith.constant 4.471500e-02 : f32
    %181 = vector.broadcast %cst_109 : f32 to vector<16x256xf32>
    %182 = arith.mulf %181, %180 : vector<16x256xf32>
    %183 = arith.addf %178, %182 : vector<16x256xf32>
    %cst_110 = arith.constant 0.797884583 : f32
    %184 = vector.broadcast %cst_110 : f32 to vector<16x256xf32>
    %185 = arith.mulf %184, %183 : vector<16x256xf32>
    %186 = math.tanh %185 : vector<16x256xf32>
    %cst_111 = arith.constant 1.000000e+00 : f32
    %187 = vector.broadcast %cst_111 : f32 to vector<16x256xf32>
    %188 = arith.addf %187, %186 : vector<16x256xf32>
    %cst_112 = arith.constant 5.000000e-01 : f32
    %189 = vector.broadcast %cst_112 : f32 to vector<16x256xf32>
    %190 = arith.mulf %189, %188 : vector<16x256xf32>
    %191 = arith.mulf %178, %190 : vector<16x256xf32>
    %c1_113 = arith.constant 1 : index
    %c0_114 = arith.constant 0 : index
    %c0_115 = arith.constant 0 : index
    %192 = vector.load %arg10[%c1_113, %c0_114, %c0_115] : memref<2x256x128xf32, #tpu.memory_space<vmem>>, vector<1x256x128xf32>
    %193 = vector.shape_cast %192 : vector<1x256x128xf32> to vector<256x128xf32>
    %cst_116 = arith.constant dense<0.000000e+00> : vector<16x128xf32>
    %194 = tpu.matmul %191, %193, %cst_116 {dimension_numbers = #tpu.dot_dimension_numbers<[1], [0], [0], [1], [0, 0, 1, 1], [], []>} : vector<16x256xf32>, vector<256x128xf32>, vector<16x128xf32> -> vector<16x128xf32>
    %c1_117 = arith.constant 1 : index
    %c0_118 = arith.constant 0 : index
    %c0_119 = arith.constant 0 : index
    %195 = vector.load %arg11[%c1_117, %c0_118, %c0_119] : memref<2x1x128xf32, #tpu.memory_space<vmem>>, vector<1x1x128xf32>
    %196 = vector.shape_cast %195 : vector<1x1x128xf32> to vector<1x128xf32>
    %197 = vector.broadcast %196 : vector<1x128xf32> to vector<16x128xf32>
    %198 = arith.addf %194, %197 : vector<16x128xf32>
    %199 = arith.addf %198, %147 : vector<16x128xf32>
    %cst_120 = arith.constant dense<0.000000e+00> : vector<16x128xf32>
    %200 = tpu.matmul %6, %199, %cst_120 {dimension_numbers = #tpu.dot_dimension_numbers<[1], [0], [0], [1], [0, 0, 1, 1], [], []>} : vector<16x16xf32>, vector<16x128xf32>, vector<16x128xf32> -> vector<16x128xf32>
    %201 = arith.subf %199, %200 : vector<16x128xf32>
    %202 = arith.mulf %201, %201 : vector<16x128xf32>
    %cst_121 = arith.constant dense<0.000000e+00> : vector<16x128xf32>
    %203 = tpu.matmul %6, %202, %cst_121 {dimension_numbers = #tpu.dot_dimension_numbers<[1], [0], [0], [1], [0, 0, 1, 1], [], []>} : vector<16x16xf32>, vector<16x128xf32>, vector<16x128xf32> -> vector<16x128xf32>
    %cst_122 = arith.constant 9.99999974E-6 : f32
    %204 = vector.broadcast %cst_122 : f32 to vector<16x128xf32>
    %205 = arith.addf %203, %204 : vector<16x128xf32>
    %206 = math.rsqrt %205 : vector<16x128xf32>
    %207 = arith.mulf %201, %206 : vector<16x128xf32>
    %c1_123 = arith.constant 1 : index
    %c0_124 = arith.constant 0 : index
    %c0_125 = arith.constant 0 : index
    %208 = vector.load %arg12[%c1_123, %c0_124, %c0_125] : memref<2x16x1xf32, #tpu.memory_space<vmem>>, vector<1x16x1xf32>
    %209 = vector.shape_cast %208 : vector<1x16x1xf32> to vector<16x1xf32>
    %210 = vector.broadcast %209 : vector<16x1xf32> to vector<16x128xf32>
    %211 = arith.mulf %207, %210 : vector<16x128xf32>
    %c1_126 = arith.constant 1 : index
    %c0_127 = arith.constant 0 : index
    %c0_128 = arith.constant 0 : index
    %212 = vector.load %arg13[%c1_126, %c0_127, %c0_128] : memref<2x16x1xf32, #tpu.memory_space<vmem>>, vector<1x16x1xf32>
    %213 = vector.shape_cast %212 : vector<1x16x1xf32> to vector<16x1xf32>
    %214 = vector.broadcast %213 : vector<16x1xf32> to vector<16x128xf32>
    %215 = arith.addf %211, %214 : vector<16x128xf32>
    %c1_129 = arith.constant 1 : index
    %c0_130 = arith.constant 0 : index
    %c0_131 = arith.constant 0 : index
    %216 = vector.load %arg14[%c1_129, %c0_130, %c0_131] : memref<2x32x16xf32, #tpu.memory_space<vmem>>, vector<1x32x16xf32>
    %217 = vector.shape_cast %216 : vector<1x32x16xf32> to vector<32x16xf32>
    %cst_132 = arith.constant dense<0.000000e+00> : vector<32x128xf32>
    %218 = tpu.matmul %217, %215, %cst_132 {dimension_numbers = #tpu.dot_dimension_numbers<[1], [0], [0], [1], [0, 0, 1, 1], [], []>} : vector<32x16xf32>, vector<16x128xf32>, vector<32x128xf32> -> vector<32x128xf32>
    %c1_133 = arith.constant 1 : index
    %c0_134 = arith.constant 0 : index
    %c0_135 = arith.constant 0 : index
    %219 = vector.load %arg15[%c1_133, %c0_134, %c0_135] : memref<2x32x1xf32, #tpu.memory_space<vmem>>, vector<1x32x1xf32>
    %220 = vector.shape_cast %219 : vector<1x32x1xf32> to vector<32x1xf32>
    %221 = vector.broadcast %220 : vector<32x1xf32> to vector<32x128xf32>
    %222 = arith.addf %218, %221 : vector<32x128xf32>
    %223 = arith.mulf %222, %222 : vector<32x128xf32>
    %224 = arith.mulf %222, %223 : vector<32x128xf32>
    %cst_136 = arith.constant 4.471500e-02 : f32
    %225 = vector.broadcast %cst_136 : f32 to vector<32x128xf32>
    %226 = arith.mulf %225, %224 : vector<32x128xf32>
    %227 = arith.addf %222, %226 : vector<32x128xf32>
    %cst_137 = arith.constant 0.797884583 : f32
    %228 = vector.broadcast %cst_137 : f32 to vector<32x128xf32>
    %229 = arith.mulf %228, %227 : vector<32x128xf32>
    %230 = math.tanh %229 : vector<32x128xf32>
    %cst_138 = arith.constant 1.000000e+00 : f32
    %231 = vector.broadcast %cst_138 : f32 to vector<32x128xf32>
    %232 = arith.addf %231, %230 : vector<32x128xf32>
    %cst_139 = arith.constant 5.000000e-01 : f32
    %233 = vector.broadcast %cst_139 : f32 to vector<32x128xf32>
    %234 = arith.mulf %233, %232 : vector<32x128xf32>
    %235 = arith.mulf %222, %234 : vector<32x128xf32>
    %c1_140 = arith.constant 1 : index
    %c0_141 = arith.constant 0 : index
    %c0_142 = arith.constant 0 : index
    %236 = vector.load %arg16[%c1_140, %c0_141, %c0_142] : memref<2x16x32xf32, #tpu.memory_space<vmem>>, vector<1x16x32xf32>
    %237 = vector.shape_cast %236 : vector<1x16x32xf32> to vector<16x32xf32>
    %cst_143 = arith.constant dense<0.000000e+00> : vector<16x128xf32>
    %238 = tpu.matmul %237, %235, %cst_143 {dimension_numbers = #tpu.dot_dimension_numbers<[1], [0], [0], [1], [0, 0, 1, 1], [], []>} : vector<16x32xf32>, vector<32x128xf32>, vector<16x128xf32> -> vector<16x128xf32>
    %c1_144 = arith.constant 1 : index
    %c0_145 = arith.constant 0 : index
    %c0_146 = arith.constant 0 : index
    %239 = vector.load %arg17[%c1_144, %c0_145, %c0_146] : memref<2x16x1xf32, #tpu.memory_space<vmem>>, vector<1x16x1xf32>
    %240 = vector.shape_cast %239 : vector<1x16x1xf32> to vector<16x1xf32>
    %241 = vector.broadcast %240 : vector<16x1xf32> to vector<16x128xf32>
    %242 = arith.addf %238, %241 : vector<16x128xf32>
    %243 = arith.addf %242, %147 : vector<16x128xf32>
    %cst_147 = arith.constant dense<0.000000e+00> : vector<16x128xf32>
    %244 = tpu.matmul %7, %243, %cst_147 {dimension_numbers = #tpu.dot_dimension_numbers<[1], [0], [0], [1], [0, 0, 1, 1], [], []>} : vector<16x16xf32>, vector<16x128xf32>, vector<16x128xf32> -> vector<16x128xf32>
    %245 = arith.subf %243, %244 : vector<16x128xf32>
    %246 = arith.mulf %245, %245 : vector<16x128xf32>
    %cst_148 = arith.constant dense<0.000000e+00> : vector<16x128xf32>
    %247 = tpu.matmul %7, %246, %cst_148 {dimension_numbers = #tpu.dot_dimension_numbers<[1], [0], [0], [1], [0, 0, 1, 1], [], []>} : vector<16x16xf32>, vector<16x128xf32>, vector<16x128xf32> -> vector<16x128xf32>
    %cst_149 = arith.constant 9.99999974E-6 : f32
    %248 = vector.broadcast %cst_149 : f32 to vector<16x128xf32>
    %249 = arith.addf %247, %248 : vector<16x128xf32>
    %250 = math.rsqrt %249 : vector<16x128xf32>
    %251 = arith.mulf %245, %250 : vector<16x128xf32>
    %c1_150 = arith.constant 1 : index
    %c0_151 = arith.constant 0 : index
    %c0_152 = arith.constant 0 : index
    %252 = vector.load %arg18[%c1_150, %c0_151, %c0_152] : memref<2x16x1xf32, #tpu.memory_space<vmem>>, vector<1x16x1xf32>
    %253 = vector.shape_cast %252 : vector<1x16x1xf32> to vector<16x1xf32>
    %254 = vector.broadcast %253 : vector<16x1xf32> to vector<16x128xf32>
    %255 = arith.mulf %251, %254 : vector<16x128xf32>
    %c1_153 = arith.constant 1 : index
    %c0_154 = arith.constant 0 : index
    %c0_155 = arith.constant 0 : index
    %256 = vector.load %arg19[%c1_153, %c0_154, %c0_155] : memref<2x16x1xf32, #tpu.memory_space<vmem>>, vector<1x16x1xf32>
    %257 = vector.shape_cast %256 : vector<1x16x1xf32> to vector<16x1xf32>
    %258 = vector.broadcast %257 : vector<16x1xf32> to vector<16x128xf32>
    %259 = arith.addf %255, %258 : vector<16x128xf32>
    %c1_156 = arith.constant 1 : index
    %c0_157 = arith.constant 0 : index
    %c0_158 = arith.constant 0 : index
    %260 = vector.load %arg20[%c1_156, %c0_157, %c0_158] : memref<2x32x16xf32, #tpu.memory_space<vmem>>, vector<1x32x16xf32>
    %261 = vector.shape_cast %260 : vector<1x32x16xf32> to vector<32x16xf32>
    %cst_159 = arith.constant dense<0.000000e+00> : vector<32x128xf32>
    %262 = tpu.matmul %261, %259, %cst_159 {dimension_numbers = #tpu.dot_dimension_numbers<[1], [0], [0], [1], [0, 0, 1, 1], [], []>} : vector<32x16xf32>, vector<16x128xf32>, vector<32x128xf32> -> vector<32x128xf32>
    %c1_160 = arith.constant 1 : index
    %c0_161 = arith.constant 0 : index
    %c0_162 = arith.constant 0 : index
    %263 = vector.load %arg21[%c1_160, %c0_161, %c0_162] : memref<2x32x1xf32, #tpu.memory_space<vmem>>, vector<1x32x1xf32>
    %264 = vector.shape_cast %263 : vector<1x32x1xf32> to vector<32x1xf32>
    %265 = vector.broadcast %264 : vector<32x1xf32> to vector<32x128xf32>
    %266 = arith.addf %262, %265 : vector<32x128xf32>
    %267 = arith.mulf %266, %266 : vector<32x128xf32>
    %268 = arith.mulf %266, %267 : vector<32x128xf32>
    %cst_163 = arith.constant 4.471500e-02 : f32
    %269 = vector.broadcast %cst_163 : f32 to vector<32x128xf32>
    %270 = arith.mulf %269, %268 : vector<32x128xf32>
    %271 = arith.addf %266, %270 : vector<32x128xf32>
    %cst_164 = arith.constant 0.797884583 : f32
    %272 = vector.broadcast %cst_164 : f32 to vector<32x128xf32>
    %273 = arith.mulf %272, %271 : vector<32x128xf32>
    %274 = math.tanh %273 : vector<32x128xf32>
    %cst_165 = arith.constant 1.000000e+00 : f32
    %275 = vector.broadcast %cst_165 : f32 to vector<32x128xf32>
    %276 = arith.addf %275, %274 : vector<32x128xf32>
    %cst_166 = arith.constant 5.000000e-01 : f32
    %277 = vector.broadcast %cst_166 : f32 to vector<32x128xf32>
    %278 = arith.mulf %277, %276 : vector<32x128xf32>
    %279 = arith.mulf %266, %278 : vector<32x128xf32>
    %c1_167 = arith.constant 1 : index
    %c0_168 = arith.constant 0 : index
    %c0_169 = arith.constant 0 : index
    %280 = vector.load %arg22[%c1_167, %c0_168, %c0_169] : memref<2x16x32xf32, #tpu.memory_space<vmem>>, vector<1x16x32xf32>
    %281 = vector.shape_cast %280 : vector<1x16x32xf32> to vector<16x32xf32>
    %cst_170 = arith.constant dense<0.000000e+00> : vector<16x128xf32>
    %282 = tpu.matmul %281, %279, %cst_170 {dimension_numbers = #tpu.dot_dimension_numbers<[1], [0], [0], [1], [0, 0, 1, 1], [], []>} : vector<16x32xf32>, vector<32x128xf32>, vector<16x128xf32> -> vector<16x128xf32>
    %c1_171 = arith.constant 1 : index
    %c0_172 = arith.constant 0 : index
    %c0_173 = arith.constant 0 : index
    %283 = vector.load %arg23[%c1_171, %c0_172, %c0_173] : memref<2x16x1xf32, #tpu.memory_space<vmem>>, vector<1x16x1xf32>
    %284 = vector.shape_cast %283 : vector<1x16x1xf32> to vector<16x1xf32>
    %285 = vector.broadcast %284 : vector<16x1xf32> to vector<16x128xf32>
    %286 = arith.addf %282, %285 : vector<16x128xf32>
    %287 = arith.addf %286, %147 : vector<16x128xf32>
    %c0_174 = arith.constant 0 : index
    %c0_175 = arith.constant 0 : index
    %288 = vector.load %arg25[%c0_174, %c0_175] : memref<4x8xf32, #tpu.memory_space<vmem>>, vector<1x8xf32>
    %289 = vector.extract_strided_slice %287 {offsets = [0, 0], sizes = [1, 128], strides = [1, 1]} : vector<16x128xf32> to vector<1x128xf32>
    %c0_176 = arith.constant 0 : index
    %c0_177 = arith.constant 0 : index
    %c0_178 = arith.constant 0 : index
    %290 = vector.load %arg24[%c0_176, %c0_177, %c0_178] : memref<16x8x128xf32, #tpu.memory_space<vmem>>, vector<1x8x128xf32>
    %291 = vector.shape_cast %290 : vector<1x8x128xf32> to vector<8x128xf32>
    %cst_179 = arith.constant dense<0.000000e+00> : vector<1x8xf32>
    %292 = tpu.matmul %289, %291, %cst_179 {dimension_numbers = #tpu.dot_dimension_numbers<[1], [1], [0], [0], [0, 0, 1, 0], [], []>} : vector<1x128xf32>, vector<8x128xf32>, vector<1x8xf32> -> vector<1x8xf32>
    %293 = arith.addf %288, %292 : vector<1x8xf32>
    %294 = vector.extract_strided_slice %287 {offsets = [1, 0], sizes = [1, 128], strides = [1, 1]} : vector<16x128xf32> to vector<1x128xf32>
    %c1_180 = arith.constant 1 : index
    %c0_181 = arith.constant 0 : index
    %c0_182 = arith.constant 0 : index
    %295 = vector.load %arg24[%c1_180, %c0_181, %c0_182] : memref<16x8x128xf32, #tpu.memory_space<vmem>>, vector<1x8x128xf32>
    %296 = vector.shape_cast %295 : vector<1x8x128xf32> to vector<8x128xf32>
    %cst_183 = arith.constant dense<0.000000e+00> : vector<1x8xf32>
    %297 = tpu.matmul %294, %296, %cst_183 {dimension_numbers = #tpu.dot_dimension_numbers<[1], [1], [0], [0], [0, 0, 1, 0], [], []>} : vector<1x128xf32>, vector<8x128xf32>, vector<1x8xf32> -> vector<1x8xf32>
    %298 = arith.addf %293, %297 : vector<1x8xf32>
    %299 = vector.extract_strided_slice %287 {offsets = [2, 0], sizes = [1, 128], strides = [1, 1]} : vector<16x128xf32> to vector<1x128xf32>
    %c2 = arith.constant 2 : index
    %c0_184 = arith.constant 0 : index
    %c0_185 = arith.constant 0 : index
    %300 = vector.load %arg24[%c2, %c0_184, %c0_185] : memref<16x8x128xf32, #tpu.memory_space<vmem>>, vector<1x8x128xf32>
    %301 = vector.shape_cast %300 : vector<1x8x128xf32> to vector<8x128xf32>
    %cst_186 = arith.constant dense<0.000000e+00> : vector<1x8xf32>
    %302 = tpu.matmul %299, %301, %cst_186 {dimension_numbers = #tpu.dot_dimension_numbers<[1], [1], [0], [0], [0, 0, 1, 0], [], []>} : vector<1x128xf32>, vector<8x128xf32>, vector<1x8xf32> -> vector<1x8xf32>
    %303 = arith.addf %298, %302 : vector<1x8xf32>
    %304 = vector.extract_strided_slice %287 {offsets = [3, 0], sizes = [1, 128], strides = [1, 1]} : vector<16x128xf32> to vector<1x128xf32>
    %c3 = arith.constant 3 : index
    %c0_187 = arith.constant 0 : index
    %c0_188 = arith.constant 0 : index
    %305 = vector.load %arg24[%c3, %c0_187, %c0_188] : memref<16x8x128xf32, #tpu.memory_space<vmem>>, vector<1x8x128xf32>
    %306 = vector.shape_cast %305 : vector<1x8x128xf32> to vector<8x128xf32>
    %cst_189 = arith.constant dense<0.000000e+00> : vector<1x8xf32>
    %307 = tpu.matmul %304, %306, %cst_189 {dimension_numbers = #tpu.dot_dimension_numbers<[1], [1], [0], [0], [0, 0, 1, 0], [], []>} : vector<1x128xf32>, vector<8x128xf32>, vector<1x8xf32> -> vector<1x8xf32>
    %308 = arith.addf %303, %307 : vector<1x8xf32>
    %c1_190 = arith.constant 1 : index
    %c0_191 = arith.constant 0 : index
    %309 = vector.load %arg25[%c1_190, %c0_191] : memref<4x8xf32, #tpu.memory_space<vmem>>, vector<1x8xf32>
    %310 = vector.extract_strided_slice %287 {offsets = [4, 0], sizes = [1, 128], strides = [1, 1]} : vector<16x128xf32> to vector<1x128xf32>
    %c4 = arith.constant 4 : index
    %c0_192 = arith.constant 0 : index
    %c0_193 = arith.constant 0 : index
    %311 = vector.load %arg24[%c4, %c0_192, %c0_193] : memref<16x8x128xf32, #tpu.memory_space<vmem>>, vector<1x8x128xf32>
    %312 = vector.shape_cast %311 : vector<1x8x128xf32> to vector<8x128xf32>
    %cst_194 = arith.constant dense<0.000000e+00> : vector<1x8xf32>
    %313 = tpu.matmul %310, %312, %cst_194 {dimension_numbers = #tpu.dot_dimension_numbers<[1], [1], [0], [0], [0, 0, 1, 0], [], []>} : vector<1x128xf32>, vector<8x128xf32>, vector<1x8xf32> -> vector<1x8xf32>
    %314 = arith.addf %309, %313 : vector<1x8xf32>
    %315 = vector.extract_strided_slice %287 {offsets = [5, 0], sizes = [1, 128], strides = [1, 1]} : vector<16x128xf32> to vector<1x128xf32>
    %c5 = arith.constant 5 : index
    %c0_195 = arith.constant 0 : index
    %c0_196 = arith.constant 0 : index
    %316 = vector.load %arg24[%c5, %c0_195, %c0_196] : memref<16x8x128xf32, #tpu.memory_space<vmem>>, vector<1x8x128xf32>
    %317 = vector.shape_cast %316 : vector<1x8x128xf32> to vector<8x128xf32>
    %cst_197 = arith.constant dense<0.000000e+00> : vector<1x8xf32>
    %318 = tpu.matmul %315, %317, %cst_197 {dimension_numbers = #tpu.dot_dimension_numbers<[1], [1], [0], [0], [0, 0, 1, 0], [], []>} : vector<1x128xf32>, vector<8x128xf32>, vector<1x8xf32> -> vector<1x8xf32>
    %319 = arith.addf %314, %318 : vector<1x8xf32>
    %320 = vector.extract_strided_slice %287 {offsets = [6, 0], sizes = [1, 128], strides = [1, 1]} : vector<16x128xf32> to vector<1x128xf32>
    %c6 = arith.constant 6 : index
    %c0_198 = arith.constant 0 : index
    %c0_199 = arith.constant 0 : index
    %321 = vector.load %arg24[%c6, %c0_198, %c0_199] : memref<16x8x128xf32, #tpu.memory_space<vmem>>, vector<1x8x128xf32>
    %322 = vector.shape_cast %321 : vector<1x8x128xf32> to vector<8x128xf32>
    %cst_200 = arith.constant dense<0.000000e+00> : vector<1x8xf32>
    %323 = tpu.matmul %320, %322, %cst_200 {dimension_numbers = #tpu.dot_dimension_numbers<[1], [1], [0], [0], [0, 0, 1, 0], [], []>} : vector<1x128xf32>, vector<8x128xf32>, vector<1x8xf32> -> vector<1x8xf32>
    %324 = arith.addf %319, %323 : vector<1x8xf32>
    %325 = vector.extract_strided_slice %287 {offsets = [7, 0], sizes = [1, 128], strides = [1, 1]} : vector<16x128xf32> to vector<1x128xf32>
    %c7 = arith.constant 7 : index
    %c0_201 = arith.constant 0 : index
    %c0_202 = arith.constant 0 : index
    %326 = vector.load %arg24[%c7, %c0_201, %c0_202] : memref<16x8x128xf32, #tpu.memory_space<vmem>>, vector<1x8x128xf32>
    %327 = vector.shape_cast %326 : vector<1x8x128xf32> to vector<8x128xf32>
    %cst_203 = arith.constant dense<0.000000e+00> : vector<1x8xf32>
    %328 = tpu.matmul %325, %327, %cst_203 {dimension_numbers = #tpu.dot_dimension_numbers<[1], [1], [0], [0], [0, 0, 1, 0], [], []>} : vector<1x128xf32>, vector<8x128xf32>, vector<1x8xf32> -> vector<1x8xf32>
    %329 = arith.addf %324, %328 : vector<1x8xf32>
    %c2_204 = arith.constant 2 : index
    %c0_205 = arith.constant 0 : index
    %330 = vector.load %arg25[%c2_204, %c0_205] : memref<4x8xf32, #tpu.memory_space<vmem>>, vector<1x8xf32>
    %331 = vector.extract_strided_slice %287 {offsets = [8, 0], sizes = [1, 128], strides = [1, 1]} : vector<16x128xf32> to vector<1x128xf32>
    %c8 = arith.constant 8 : index
    %c0_206 = arith.constant 0 : index
    %c0_207 = arith.constant 0 : index
    %332 = vector.load %arg24[%c8, %c0_206, %c0_207] : memref<16x8x128xf32, #tpu.memory_space<vmem>>, vector<1x8x128xf32>
    %333 = vector.shape_cast %332 : vector<1x8x128xf32> to vector<8x128xf32>
    %cst_208 = arith.constant dense<0.000000e+00> : vector<1x8xf32>
    %334 = tpu.matmul %331, %333, %cst_208 {dimension_numbers = #tpu.dot_dimension_numbers<[1], [1], [0], [0], [0, 0, 1, 0], [], []>} : vector<1x128xf32>, vector<8x128xf32>, vector<1x8xf32> -> vector<1x8xf32>
    %335 = arith.addf %330, %334 : vector<1x8xf32>
    %336 = vector.extract_strided_slice %287 {offsets = [9, 0], sizes = [1, 128], strides = [1, 1]} : vector<16x128xf32> to vector<1x128xf32>
    %c9 = arith.constant 9 : index
    %c0_209 = arith.constant 0 : index
    %c0_210 = arith.constant 0 : index
    %337 = vector.load %arg24[%c9, %c0_209, %c0_210] : memref<16x8x128xf32, #tpu.memory_space<vmem>>, vector<1x8x128xf32>
    %338 = vector.shape_cast %337 : vector<1x8x128xf32> to vector<8x128xf32>
    %cst_211 = arith.constant dense<0.000000e+00> : vector<1x8xf32>
    %339 = tpu.matmul %336, %338, %cst_211 {dimension_numbers = #tpu.dot_dimension_numbers<[1], [1], [0], [0], [0, 0, 1, 0], [], []>} : vector<1x128xf32>, vector<8x128xf32>, vector<1x8xf32> -> vector<1x8xf32>
    %340 = arith.addf %335, %339 : vector<1x8xf32>
    %341 = vector.extract_strided_slice %287 {offsets = [10, 0], sizes = [1, 128], strides = [1, 1]} : vector<16x128xf32> to vector<1x128xf32>
    %c10 = arith.constant 10 : index
    %c0_212 = arith.constant 0 : index
    %c0_213 = arith.constant 0 : index
    %342 = vector.load %arg24[%c10, %c0_212, %c0_213] : memref<16x8x128xf32, #tpu.memory_space<vmem>>, vector<1x8x128xf32>
    %343 = vector.shape_cast %342 : vector<1x8x128xf32> to vector<8x128xf32>
    %cst_214 = arith.constant dense<0.000000e+00> : vector<1x8xf32>
    %344 = tpu.matmul %341, %343, %cst_214 {dimension_numbers = #tpu.dot_dimension_numbers<[1], [1], [0], [0], [0, 0, 1, 0], [], []>} : vector<1x128xf32>, vector<8x128xf32>, vector<1x8xf32> -> vector<1x8xf32>
    %345 = arith.addf %340, %344 : vector<1x8xf32>
    %346 = vector.extract_strided_slice %287 {offsets = [11, 0], sizes = [1, 128], strides = [1, 1]} : vector<16x128xf32> to vector<1x128xf32>
    %c11 = arith.constant 11 : index
    %c0_215 = arith.constant 0 : index
    %c0_216 = arith.constant 0 : index
    %347 = vector.load %arg24[%c11, %c0_215, %c0_216] : memref<16x8x128xf32, #tpu.memory_space<vmem>>, vector<1x8x128xf32>
    %348 = vector.shape_cast %347 : vector<1x8x128xf32> to vector<8x128xf32>
    %cst_217 = arith.constant dense<0.000000e+00> : vector<1x8xf32>
    %349 = tpu.matmul %346, %348, %cst_217 {dimension_numbers = #tpu.dot_dimension_numbers<[1], [1], [0], [0], [0, 0, 1, 0], [], []>} : vector<1x128xf32>, vector<8x128xf32>, vector<1x8xf32> -> vector<1x8xf32>
    %350 = arith.addf %345, %349 : vector<1x8xf32>
    %c3_218 = arith.constant 3 : index
    %c0_219 = arith.constant 0 : index
    %351 = vector.load %arg25[%c3_218, %c0_219] : memref<4x8xf32, #tpu.memory_space<vmem>>, vector<1x8xf32>
    %352 = vector.extract_strided_slice %287 {offsets = [12, 0], sizes = [1, 128], strides = [1, 1]} : vector<16x128xf32> to vector<1x128xf32>
    %c12 = arith.constant 12 : index
    %c0_220 = arith.constant 0 : index
    %c0_221 = arith.constant 0 : index
    %353 = vector.load %arg24[%c12, %c0_220, %c0_221] : memref<16x8x128xf32, #tpu.memory_space<vmem>>, vector<1x8x128xf32>
    %354 = vector.shape_cast %353 : vector<1x8x128xf32> to vector<8x128xf32>
    %cst_222 = arith.constant dense<0.000000e+00> : vector<1x8xf32>
    %355 = tpu.matmul %352, %354, %cst_222 {dimension_numbers = #tpu.dot_dimension_numbers<[1], [1], [0], [0], [0, 0, 1, 0], [], []>} : vector<1x128xf32>, vector<8x128xf32>, vector<1x8xf32> -> vector<1x8xf32>
    %356 = arith.addf %351, %355 : vector<1x8xf32>
    %357 = vector.extract_strided_slice %287 {offsets = [13, 0], sizes = [1, 128], strides = [1, 1]} : vector<16x128xf32> to vector<1x128xf32>
    %c13 = arith.constant 13 : index
    %c0_223 = arith.constant 0 : index
    %c0_224 = arith.constant 0 : index
    %358 = vector.load %arg24[%c13, %c0_223, %c0_224] : memref<16x8x128xf32, #tpu.memory_space<vmem>>, vector<1x8x128xf32>
    %359 = vector.shape_cast %358 : vector<1x8x128xf32> to vector<8x128xf32>
    %cst_225 = arith.constant dense<0.000000e+00> : vector<1x8xf32>
    %360 = tpu.matmul %357, %359, %cst_225 {dimension_numbers = #tpu.dot_dimension_numbers<[1], [1], [0], [0], [0, 0, 1, 0], [], []>} : vector<1x128xf32>, vector<8x128xf32>, vector<1x8xf32> -> vector<1x8xf32>
    %361 = arith.addf %356, %360 : vector<1x8xf32>
    %362 = vector.extract_strided_slice %287 {offsets = [14, 0], sizes = [1, 128], strides = [1, 1]} : vector<16x128xf32> to vector<1x128xf32>
    %c14 = arith.constant 14 : index
    %c0_226 = arith.constant 0 : index
    %c0_227 = arith.constant 0 : index
    %363 = vector.load %arg24[%c14, %c0_226, %c0_227] : memref<16x8x128xf32, #tpu.memory_space<vmem>>, vector<1x8x128xf32>
    %364 = vector.shape_cast %363 : vector<1x8x128xf32> to vector<8x128xf32>
    %cst_228 = arith.constant dense<0.000000e+00> : vector<1x8xf32>
    %365 = tpu.matmul %362, %364, %cst_228 {dimension_numbers = #tpu.dot_dimension_numbers<[1], [1], [0], [0], [0, 0, 1, 0], [], []>} : vector<1x128xf32>, vector<8x128xf32>, vector<1x8xf32> -> vector<1x8xf32>
    %366 = arith.addf %361, %365 : vector<1x8xf32>
    %367 = vector.extract_strided_slice %287 {offsets = [15, 0], sizes = [1, 128], strides = [1, 1]} : vector<16x128xf32> to vector<1x128xf32>
    %c15 = arith.constant 15 : index
    %c0_229 = arith.constant 0 : index
    %c0_230 = arith.constant 0 : index
    %368 = vector.load %arg24[%c15, %c0_229, %c0_230] : memref<16x8x128xf32, #tpu.memory_space<vmem>>, vector<1x8x128xf32>
    %369 = vector.shape_cast %368 : vector<1x8x128xf32> to vector<8x128xf32>
    %cst_231 = arith.constant dense<0.000000e+00> : vector<1x8xf32>
    %370 = tpu.matmul %367, %369, %cst_231 {dimension_numbers = #tpu.dot_dimension_numbers<[1], [1], [0], [0], [0, 0, 1, 0], [], []>} : vector<1x128xf32>, vector<8x128xf32>, vector<1x8xf32> -> vector<1x8xf32>
    %371 = arith.addf %366, %370 : vector<1x8xf32>
    %372 = tpu.concatenate %308, %329, %350, %371 in 0 : vector<1x8xf32>, vector<1x8xf32>, vector<1x8xf32>, vector<1x8xf32> -> vector<4x8xf32>
    %c0_232 = arith.constant 0 : index
    %c0_233 = arith.constant 0 : index
    %c0_234 = arith.constant 0 : index
    %373 = vector.load %arg26[%c0_232, %c0_233, %c0_234] : memref<1x4x8xf32, #tpu.memory_space<vmem>>, vector<1x4x8xf32>
    %374 = vector.shape_cast %373 : vector<1x4x8xf32> to vector<4x8xf32>
    %375 = vector.shape_cast %372 : vector<4x8xf32> to vector<1x4x8xf32>
    tpu.vector_store %arg26[%c0_232, %c0_233, %c0_234], %375 {strides = array<i32>} : memref<1x4x8xf32, #tpu.memory_space<vmem>>, vector<1x4x8xf32>,
    return
  }
  func.func @transform_0(%arg0: i32) -> (i32, i32) {
    %c0_i32 = arith.constant 0 : i32
    %c0_i32_0 = arith.constant 0 : i32
    return %arg0, %c0_i32 : i32, i32
  }
  func.func @transform_1(%arg0: i32) -> (i32, i32) {
    %c0_i32 = arith.constant 0 : i32
    %c0_i32_0 = arith.constant 0 : i32
    %c0_i32_1 = arith.constant 0 : i32
    return %c0_i32, %c0_i32_0 : i32, i32
  }
  func.func @transform_2(%arg0: i32) -> (i32, i32) {
    %c0_i32 = arith.constant 0 : i32
    %c0_i32_0 = arith.constant 0 : i32
    %c0_i32_1 = arith.constant 0 : i32
    return %c0_i32, %c0_i32_0 : i32, i32
  }
  func.func @transform_3(%arg0: i32) -> (i32, i32) {
    %c0_i32 = arith.constant 0 : i32
    %c0_i32_0 = arith.constant 0 : i32
    %c0_i32_1 = arith.constant 0 : i32
    return %c0_i32, %c0_i32_0 : i32, i32
  }
  func.func @transform_4(%arg0: i32) -> (i32, i32) {
    %c0_i32 = arith.constant 0 : i32
    %c0_i32_0 = arith.constant 0 : i32
    %c0_i32_1 = arith.constant 0 : i32
    return %c0_i32, %c0_i32_0 : i32, i32
  }
  func.func @transform_5(%arg0: i32) -> (i32, i32, i32) {
    %c0_i32 = arith.constant 0 : i32
    %c0_i32_0 = arith.constant 0 : i32
    %c0_i32_1 = arith.constant 0 : i32
    %c0_i32_2 = arith.constant 0 : i32
    return %c0_i32, %c0_i32_0, %c0_i32_1 : i32, i32, i32
  }
  func.func @transform_6(%arg0: i32) -> (i32, i32, i32) {
    %c0_i32 = arith.constant 0 : i32
    %c0_i32_0 = arith.constant 0 : i32
    %c0_i32_1 = arith.constant 0 : i32
    %c0_i32_2 = arith.constant 0 : i32
    return %c0_i32, %c0_i32_0, %c0_i32_1 : i32, i32, i32
  }
  func.func @transform_7(%arg0: i32) -> (i32, i32, i32) {
    %c0_i32 = arith.constant 0 : i32
    %c0_i32_0 = arith.constant 0 : i32
    %c0_i32_1 = arith.constant 0 : i32
    %c0_i32_2 = arith.constant 0 : i32
    return %c0_i32, %c0_i32_0, %c0_i32_1 : i32, i32, i32
  }
  func.func @transform_8(%arg0: i32) -> (i32, i32, i32) {
    %c0_i32 = arith.constant 0 : i32
    %c0_i32_0 = arith.constant 0 : i32
    %c0_i32_1 = arith.constant 0 : i32
    %c0_i32_2 = arith.constant 0 : i32
    return %c0_i32, %c0_i32_0, %c0_i32_1 : i32, i32, i32
  }
  func.func @transform_9(%arg0: i32) -> (i32, i32, i32) {
    %c0_i32 = arith.constant 0 : i32
    %c0_i32_0 = arith.constant 0 : i32
    %c0_i32_1 = arith.constant 0 : i32
    %c0_i32_2 = arith.constant 0 : i32
    return %c0_i32, %c0_i32_0, %c0_i32_1 : i32, i32, i32
  }
  func.func @transform_10(%arg0: i32) -> (i32, i32, i32) {
    %c0_i32 = arith.constant 0 : i32
    %c0_i32_0 = arith.constant 0 : i32
    %c0_i32_1 = arith.constant 0 : i32
    %c0_i32_2 = arith.constant 0 : i32
    return %c0_i32, %c0_i32_0, %c0_i32_1 : i32, i32, i32
  }
  func.func @transform_11(%arg0: i32) -> (i32, i32, i32) {
    %c0_i32 = arith.constant 0 : i32
    %c0_i32_0 = arith.constant 0 : i32
    %c0_i32_1 = arith.constant 0 : i32
    %c0_i32_2 = arith.constant 0 : i32
    return %c0_i32, %c0_i32_0, %c0_i32_1 : i32, i32, i32
  }
  func.func @transform_12(%arg0: i32) -> (i32, i32, i32) {
    %c0_i32 = arith.constant 0 : i32
    %c0_i32_0 = arith.constant 0 : i32
    %c0_i32_1 = arith.constant 0 : i32
    %c0_i32_2 = arith.constant 0 : i32
    return %c0_i32, %c0_i32_0, %c0_i32_1 : i32, i32, i32
  }
  func.func @transform_13(%arg0: i32) -> (i32, i32, i32) {
    %c0_i32 = arith.constant 0 : i32
    %c0_i32_0 = arith.constant 0 : i32
    %c0_i32_1 = arith.constant 0 : i32
    %c0_i32_2 = arith.constant 0 : i32
    return %c0_i32, %c0_i32_0, %c0_i32_1 : i32, i32, i32
  }
  func.func @transform_14(%arg0: i32) -> (i32, i32, i32) {
    %c0_i32 = arith.constant 0 : i32
    %c0_i32_0 = arith.constant 0 : i32
    %c0_i32_1 = arith.constant 0 : i32
    %c0_i32_2 = arith.constant 0 : i32
    return %c0_i32, %c0_i32_0, %c0_i32_1 : i32, i32, i32
  }
  func.func @transform_15(%arg0: i32) -> (i32, i32, i32) {
    %c0_i32 = arith.constant 0 : i32
    %c0_i32_0 = arith.constant 0 : i32
    %c0_i32_1 = arith.constant 0 : i32
    %c0_i32_2 = arith.constant 0 : i32
    return %c0_i32, %c0_i32_0, %c0_i32_1 : i32, i32, i32
  }
  func.func @transform_16(%arg0: i32) -> (i32, i32, i32) {
    %c0_i32 = arith.constant 0 : i32
    %c0_i32_0 = arith.constant 0 : i32
    %c0_i32_1 = arith.constant 0 : i32
    %c0_i32_2 = arith.constant 0 : i32
    return %c0_i32, %c0_i32_0, %c0_i32_1 : i32, i32, i32
  }
  func.func @transform_17(%arg0: i32) -> (i32, i32, i32) {
    %c0_i32 = arith.constant 0 : i32
    %c0_i32_0 = arith.constant 0 : i32
    %c0_i32_1 = arith.constant 0 : i32
    %c0_i32_2 = arith.constant 0 : i32
    return %c0_i32, %c0_i32_0, %c0_i32_1 : i32, i32, i32
  }
  func.func @transform_18(%arg0: i32) -> (i32, i32, i32) {
    %c0_i32 = arith.constant 0 : i32
    %c0_i32_0 = arith.constant 0 : i32
    %c0_i32_1 = arith.constant 0 : i32
    %c0_i32_2 = arith.constant 0 : i32
    return %c0_i32, %c0_i32_0, %c0_i32_1 : i32, i32, i32
  }
  func.func @transform_19(%arg0: i32) -> (i32, i32, i32) {
    %c0_i32 = arith.constant 0 : i32
    %c0_i32_0 = arith.constant 0 : i32
    %c0_i32_1 = arith.constant 0 : i32
    %c0_i32_2 = arith.constant 0 : i32
    return %c0_i32, %c0_i32_0, %c0_i32_1 : i32, i32, i32
  }
  func.func @transform_20(%arg0: i32) -> (i32, i32, i32) {
    %c0_i32 = arith.constant 0 : i32
    %c0_i32_0 = arith.constant 0 : i32
    %c0_i32_1 = arith.constant 0 : i32
    %c0_i32_2 = arith.constant 0 : i32
    return %c0_i32, %c0_i32_0, %c0_i32_1 : i32, i32, i32
  }
  func.func @transform_21(%arg0: i32) -> (i32, i32, i32) {
    %c0_i32 = arith.constant 0 : i32
    %c0_i32_0 = arith.constant 0 : i32
    %c0_i32_1 = arith.constant 0 : i32
    %c0_i32_2 = arith.constant 0 : i32
    return %c0_i32, %c0_i32_0, %c0_i32_1 : i32, i32, i32
  }
  func.func @transform_22(%arg0: i32) -> (i32, i32, i32) {
    %c0_i32 = arith.constant 0 : i32
    %c0_i32_0 = arith.constant 0 : i32
    %c0_i32_1 = arith.constant 0 : i32
    %c0_i32_2 = arith.constant 0 : i32
    return %c0_i32, %c0_i32_0, %c0_i32_1 : i32, i32, i32
  }
  func.func @transform_23(%arg0: i32) -> (i32, i32, i32) {
    %c0_i32 = arith.constant 0 : i32
    %c0_i32_0 = arith.constant 0 : i32
    %c0_i32_1 = arith.constant 0 : i32
    %c0_i32_2 = arith.constant 0 : i32
    return %c0_i32, %c0_i32_0, %c0_i32_1 : i32, i32, i32
  }
  func.func @transform_24(%arg0: i32) -> (i32, i32) {
    %c0_i32 = arith.constant 0 : i32
    %c0_i32_0 = arith.constant 0 : i32
    %c0_i32_1 = arith.constant 0 : i32
    return %c0_i32, %c0_i32_0 : i32, i32
  }
  func.func @transform_25(%arg0: i32) -> (i32, i32, i32) {
    %c0_i32 = arith.constant 0 : i32
    %c0_i32_0 = arith.constant 0 : i32
    %c0_i32_1 = arith.constant 0 : i32
    return %arg0, %c0_i32, %c0_i32_0 : i32, i32, i32
  }
}

</mosaic_0001>

<bundles_post_ra>
// kernel: tile.51
= control target key start
LH: loop header
LB: loop body
LE: loop exit
PB: predicated region body
PF: predicated region fallthrough
CT: control target
= control target key end

     0   :  { %s22_s0 = inlined_call_operand.vmem [shape: f32[8], index: 0, kind: input, shape index: {}]   ;;  %s23_s1 = inlined_call_operand.vmem [shape: f32[4,8], index: 1, kind: output, shape index: {}]  }
   0x1   :  { %v4_v0 = vld [vmem:[%s22_s0] ss:$0 sm:$0xff] }
   0x2   :  { %5 = vst [vmem:[%s23_s1] sm:$0xf] %v4_v0 }

// kernel: tile.5
= control target key start
LH: loop header
LB: loop body
LE: loop exit
PB: predicated region body
PF: predicated region fallthrough
CT: control target
= control target key end

     0   :  { %s66_s8 = smov 125   ;;  %vm7_vm0 = vcmask 7168   ;;  %s67_s11 = smov 126   ;;  %s117_s0 = inlined_call_operand.vmem [shape: f32[4,8], index: 0, kind: input, shape index: {}]   ;;  %s118_s1 = inlined_call_operand.vmem [shape: f32[1,32,1], index: 1, kind: output, shape index: {}]  }
   0x1   :  { %v4_v0 = vld [vmem:[%s117_s0] sm:$0xf]  ;;  %s65_s0 = smov 127   ;;  %s68_s12 = smov 124  }
   0x2   :  { %5 = vst [vmem:[#allocation0] sm:$0xf] %v4_v0  ;;  %s69_s13 = smov 123   ;;  %s70_s14 = smov 122  }
   0x3   :  { %s71_s15 = smov 121  }
   0x9   :  { %v9_v1 = vld [vmem:[#allocation0] sm:$0xf]  }
   0xa   :  { %v21_v2 = vld [vmem:[#allocation0] sm:$0xf]   ;;  %10 = vrot.lane.b32.xlu0 %v9_v1, %s65_s0 }
   0xb   :  { %22 = vrot.lane.b32.xlu1 %v21_v2, %s66_s8  ;;  %v15_v3 = vld [vmem:[#allocation0] sm:$0xf]  }
   0xc   :  { %v27_v4 = vld [vmem:[#allocation0] sm:$0xf]  }
   0xd   :  { %v6_v5 = vld [vmem:[#allocation0] sm:$0xf]  }
   0xe   :  { %8 = vst.msk [vmem:[%s118_s1] ss:$8 sm:$0xf] %vm7_vm0, %v6_v5   ;;  %16 = vrot.lane.b32.xlu0 %v15_v3, %s67_s11  ;;  %v33_v6 = vld [vmem:[#allocation0] sm:$0xf]  }
   0xf   :  { %28 = vrot.lane.b32.xlu1 %v27_v4, %s68_s12  ;;  %v39_v7 = vld [vmem:[#allocation0] sm:$0xf]  }
  0x10   :  { %v45_v8 = vld [vmem:[#allocation0] sm:$0xf]  }
  0x12   :  { %34 = vrot.lane.b32.xlu0 %v33_v6, %s69_s13 }
  0x13   :  { %40 = vrot.lane.b32.xlu1 %v39_v7, %s70_s14 }
  0x16   :  { %46 = vrot.lane.b32.xlu0 %v45_v8, %s71_s15 }
  0x7c   :  { %v11_v9 = vpop.permute.xlu0 %10  }
  0x7d   :  { %v23_v10 = vpop.permute.xlu1 %22   ;;  %51 = vst.msk [vmem:[%s118_s1 + $0x1] ss:$8 sm:$0xf] %vm7_vm0, %v11_v9  }
  0x7e   :  { %53 = vst.msk [vmem:[%s118_s1 + $0x3] ss:$8 sm:$0xf] %vm7_vm0, %v23_v10  }
  0x80   :  { %v17_v11 = vpop.permute.xlu0 %16  }
  0x81   :  { %v29_v12 = vpop.permute.xlu1 %28   ;;  %52 = vst.msk [vmem:[%s118_s1 + $0x2] ss:$8 sm:$0xf] %vm7_vm0, %v17_v11  }
  0x82   :  { %54 = vst.msk [vmem:[%s118_s1 + $0x4] ss:$8 sm:$0xf] %vm7_vm0, %v29_v12  }
  0x84   :  { %v35_v13 = vpop.permute.xlu0 %34  }
  0x85   :  { %v41_v14 = vpop.permute.xlu1 %40   ;;  %55 = vst.msk [vmem:[%s118_s1 + $0x5] ss:$8 sm:$0xf] %vm7_vm0, %v35_v13  }
  0x86   :  { %56 = vst.msk [vmem:[%s118_s1 + $0x6] ss:$8 sm:$0xf] %vm7_vm0, %v41_v14  }
  0x88   :  { %v47_v15 = vpop.permute.xlu0 %46  }
  0x89   :  { %57 = vst.msk [vmem:[%s118_s1 + $0x7] ss:$8 sm:$0xf] %vm7_vm0, %v47_v15  }

// kernel: model_forward.1
= control target key start
LH: loop header
LB: loop body
LE: loop exit
PB: predicated region body
PF: predicated region fallthrough
CT: control target
= control target key end

     0   :  { %s5626_s29 = smov 0   ;;  %s6491_s0 = inlined_call_operand.vmem [shape: f32[32,4], index: 0, kind: input, shape index: {}]   ;;  %s6492_s1 = inlined_call_operand.vmem [shape: f32[4,128], index: 1, kind: input, shape index: {}]   ;;  %s6493_s2 = inlined_call_operand.vmem [shape: f32[1,128], index: 2, kind: input, shape index: {}]   ;;  %s6494_s3 = inlined_call_operand.vmem [shape: f32[16,16], index: 3, kind: input, shape index: {}]   ;;  %s6495_s4 = inlined_call_operand.vmem [shape: f32[16,16], index: 4, kind: input, shape index: {}]   ;;  %s6496_s5 = inlined_call_operand.vmem [shape: f32[2,1,128], index: 5, kind: input, shape index: {}]   ;;  %s6497_s6 = inlined_call_operand.vmem [shape: f32[2,1,128], index: 6, kind: input, shape index: {}]   ;;  %s6498_s7 = inlined_call_operand.vmem [shape: f32[2,128,256], index: 7, kind: input, shape index: {}]   ;;  %s6499_s8 = inlined_call_operand.vmem [shape: f32[2,1,256], index: 8, kind: input, shape index: {}]   ;;  %s6500_s9 = inlined_call_operand.vmem [shape: f32[2,256,128], index: 9, kind: input, shape index: {}]   ;;  %s6501_s10 = inlined_call_operand.vmem [shape: f32[2,1,128], index: 10, kind: input, shape index: {}]   ;;  %s6502_s11 = inlined_call_operand.vmem [shape: f32[2,16,1], index: 11, kind: input, shape index: {}]   ;;  %s6503_s12 = inlined_call_operand.vmem [shape: f32[2,16,1], index: 12, kind: input, shape index: {}]   ;;  %s6504_s13 = inlined_call_operand.vmem [shape: f32[2,32,16], index: 13, kind: input, shape index: {}]   ;;  %s6505_s14 = inlined_call_operand.vmem [shape: f32[2,32,1], index: 14, kind: input, shape index: {}]   ;;  %s6506_s15 = inlined_call_operand.vmem [shape: f32[2,16,32], index: 15, kind: input, shape index: {}]   ;;  %s6507_s16 = inlined_call_operand.vmem [shape: f32[2,16,1], index: 16, kind: input, shape index: {}]   ;;  %s6508_s17 = inlined_call_operand.vmem [shape: f32[2,16,1], index: 17, kind: input, shape index: {}]   ;;  %s6509_s18 = inlined_call_operand.vmem [shape: f32[2,16,1], index: 18, kind: input, shape index: {}]   ;;  %s6510_s19 = inlined_call_operand.vmem [shape: f32[2,32,16], index: 19, kind: input, shape index: {}]   ;;  %s6511_s20 = inlined_call_operand.vmem [shape: f32[2,32,1], index: 20, kind: input, shape index: {}]   ;;  %s6512_s21 = inlined_call_operand.vmem [shape: f32[2,16,32], index: 21, kind: input, shape index: {}]   ;;  %s6513_s22 = inlined_call_operand.vmem [shape: f32[2,16,1], index: 22, kind: input, shape index: {}]   ;;  %s6514_s23 = inlined_call_operand.vmem [shape: f32[16,8,128], index: 23, kind: input, shape index: {}]   ;;  %s6515_s24 = inlined_call_operand.vmem [shape: f32[4,8], index: 24, kind: input, shape index: {}]   ;;  %s6516_s25 = inlined_call_operand.vmem [shape: f32[2,4,8], index: 25, kind: output, shape index: {}]  }
   0x1   :  { %6529 = sst [smem:[#allocation4_spill]] %s6491_s0 }
   0x2   :  { %6530 = sst [smem:[#allocation5_spill]] %s6492_s1 }
   0x3   :  { %6531 = sst [smem:[#allocation6_spill]] %s6493_s2 }
   0x4   :  { %6532 = sst [smem:[#allocation7_spill]] %s6494_s3 }
   0x5   :  { %6533 = sst [smem:[#allocation8_spill]] %s6495_s4 }
   0x6   :  { %6534 = sst [smem:[#allocation9_spill]] %s6496_s5 }
   0x7   :  { %6535 = sst [smem:[#allocation10_spill]] %s6497_s6 }
   0x8   :  { %6536 = sst [smem:[#allocation11_spill]] %s6498_s7 }
   0x9   :  { %6537 = sst [smem:[#allocation12_spill]] %s6499_s8 }
   0xa   :  { %6538 = sst [smem:[#allocation13_spill]] %s6500_s9 }
   0xb   :  { %6539 = sst [smem:[#allocation14_spill]] %s6515_s24 }
   0xc   :  { %6540 = sst [smem:[#allocation15_spill]] %s6516_s25 }
   0xd LB: > { %6541 = sst [smem:[#allocation2_spill]] %s5491_s29  ;;  %s5632_s2 = sadd.s32 4294967295, %s5491_s29   ;;  %s5491_s29 = sphi %s5626_s29, %s35_s29  }
   0xe   : > { %6542 = sst [smem:[#allocation3_spill]] %s5632_s2  ;;  %p4575_p0 = scmp.ge.s32.totalorder %s5491_s29, 1 }
   0xf   : > { %p688_p1 = scmp.lt.s32.totalorder %s5491_s29, 3 }
  0x11   : > { %p689_p2 = pnand %p4575_p0, %p688_p1 }
  0x12   : > { %s6543_s7 = sld [smem:[#allocation5_spill]] (!%p689_p2)  ;;  %vm782_vm0 = vcmask (!%p689_p2), 1043456   ;;  %s4576_s3 = sshll.u32 (!%p689_p2), %s5632_s2, 1  ;;  %vm775_vm1 = vcmask (!%p689_p2), 31744   ;;  %v5493_v59 = vmov (!%p689_p2), 0.0   ;;  %vm1179_vm2 = vcmask (!%p689_p2), 130048  }
  0x13   : > { %692 = sbr.rel (%p689_p2) target bundleno = 5816 (0x16b8), region = 120  ;;  %p756_p3 = scmp.lt.s32.totalorder (!%p689_p2), %s4576_s3, 3  ;;  %1014 = vmatprep.mubr.f32.mxu1 (!%p689_p2), %v5493_v59  ;;  %vm1547_vm3 = vcmask (!%p689_p2), 261120   ;;  %vm5495_vm4 = vmmov (!%p689_p2), 0   ;;  %vm4510_vm5 = vcmask (!%p689_p2), 1040384   ;;  %vm4512_vm6 = vcmask (!%p689_p2), 1041408  }
  0x14   : > { %s6544_s27 = sld [smem:[#allocation4_spill]] (!%p689_p2)  ;;  %s6545_s5 = sld [smem:[#allocation6_spill]] (!%p689_p2)  ;;  %vm4514_vm7 = vcmask (!%p689_p2), 1042432   ;;  %vm4516_vm8 = vcmask (!%p689_p2), 60416  }
  0x15   : > { %s6546_s30 = sld [smem:[#allocation11_spill]] (!%p689_p2)  ;;  %s6547_s8 = sld [smem:[#allocation9_spill]] (!%p689_p2) }
  0x16   : > { %s6548_s28 = sld [smem:[#allocation10_spill]] (!%p689_p2)  ;;  %s6549_s0 = sld [smem:[#allocation13_spill]] (!%p689_p2) }
  0x17   : > { %s6550_s1 = sld [smem:[#allocation12_spill]] (!%p689_p2)  ;;  %s6552_s9 = sld [smem:[#allocation8_spill]] (!%p689_p2) }
  0x18   : > { %v767_v0 = vld [vmem:[%s6543_s7] sm:$0xf] (!%p689_p2)  ;;  %s6553_s6 = sld [smem:[#allocation3_spill]] (!%p689_p2)  ;;  %s6555_s2 = sld [smem:[#allocation15_spill]] (!%p689_p2) }
  0x19   : > { %4937 = vmatprep.subr.msk.mxu0 (!%p689_p2), %vm782_vm0, %v767_v0 }
  0x1a   : > { %4938 = vmatpush3.msk.msra.mxu0 %vm782_vm0, %v767_v0  ;;  %s6558_s3 = smov (!%p756_p3, %s4576_s3), 3  ;;  %v4579_v3 = vld [vmem:[%s6545_s5] ss:$0 sm:$0xff] }
  0x1b   : > { %s4577_s26 = sshll.u32 %s6558_s3, 3  ;;  %v907_v8 = vld [vmem:[%s6546_s30 + $0x8] sm:$0xff]  ;;  %v909_v9 = vld [vmem:[%s6546_s30 + $0x18] sm:$0xff]  ;;  %v906_v10 = vld [vmem:[%s6546_s30] sm:$0xff]  ;;  %s6554_s3 = sld [smem:[#allocation14_spill]] }
  0x1c   : > { %s759_s4 = scalar_lea.vmem %s6544_s27, %s4577_s26  ;;  %v5162_v11 = vpack.c.bf16 %v909_v9, %v907_v8  ;;  %v908_v12 = vld [vmem:[%s6546_s30 + $0x10] sm:$0xff]  ;;  %v911_v13 = vld [vmem:[%s6546_s30 + $0x28] sm:$0xff]  ;;  %v913_v14 = vld [vmem:[%s6546_s30 + $0x38] sm:$0xff] }
  0x1d   : > { %v765_v1 = vld [vmem:[%s759_s4] sm:$0xff]  ;;  %v766_v2 = vld [vmem:[%s759_s4 + $0x8] sm:$0xff]  ;;  %v5164_v15 = vpack.c.bf16 %v908_v12, %v906_v10  ;;  %v5166_v16 = vpack.c.bf16 %v913_v14, %v911_v13  ;;  %v912_v18 = vld [vmem:[%s6546_s30 + $0x30] sm:$0xff]  ;;  %s6551_s4 = sld [smem:[#allocation7_spill]] }
  0x1e   : > { %4939 = vmatprep.mubr.msk.f32.mxu0 %vm775_vm1, %v765_v1  ;;  %v910_v17 = vld [vmem:[%s6546_s30 + $0x20] sm:$0xff]  ;;  %v915_v19 = vld [vmem:[%s6546_s30 + $0x48] sm:$0xff]  ;;  %5163 = vmatprep.subr.bf16.mxu1 %v5162_v11  ;;  %v917_v20 = vld [vmem:[%s6546_s30 + $0x58] sm:$0xff]  ;;  %p761_p4 = scmp.lt.s32.totalorder %s6553_s6, 1 }
  0x1f   : > { %4940 = vmatmul.mubr.msk.f32.vlgmr.msra.gmra.mrb[0].mxu0 %vm775_vm1, %v766_v2  ;;  %5165 = vmatpush1.bf16.msra.mxu1 %v5164_v15  ;;  %v5168_v21 = vpack.c.bf16 %v912_v18, %v910_v17  ;;  %v5170_v22 = vpack.c.bf16 %v917_v20, %v915_v19  ;;  %v914_v23 = vld [vmem:[%s6546_s30 + $0x40] sm:$0xff]  ;;  %v916_v24 = vld [vmem:[%s6546_s30 + $0x50] sm:$0xff]  ;;  %v919_v34 = vld [vmem:[%s6546_s30 + $0x68] sm:$0xff] }
  0x20   : > { %5167 = vmatprep.subr.bf16.mxu1 %v5166_v16  ;;  %v5172_v25 = vpack.c.bf16 %v916_v24, %v914_v23  ;;  %v921_v35 = vld [vmem:[%s6546_s30 + $0x78] sm:$0xff]  ;;  %v918_v37 = vld [vmem:[%s6546_s30 + $0x60] sm:$0xff]  ;;  %v920_v38 = vld [vmem:[%s6546_s30 + $0x70] sm:$0xff]  ;;  %s6560_s6 = smov (!%p761_p4, %s6553_s6), 1 }
  0x21   : > { %v5174_v36 = vpack.c.bf16 %v921_v35, %v919_v34  ;;  %v5176_v39 = vpack.c.bf16 %v920_v38, %v918_v37  ;;  %v923_v40 = vld [vmem:[%s6546_s30 + $0x88] sm:$0xff]  ;;  %v925_v41 = vld [vmem:[%s6546_s30 + $0x98] sm:$0xff]  ;;  %v922_v43 = vld [vmem:[%s6546_s30 + $0x80] sm:$0xff]  ;;  %s4578_s5 = sshll.u32 %s6560_s6, 2 }
  0x22   : > { %v5178_v42 = vpack.c.bf16 %v925_v41, %v923_v40  ;;  %v924_v44 = vld [vmem:[%s6546_s30 + $0x90] sm:$0xff]  ;;  %v927_v46 = vld [vmem:[%s6546_s30 + $0xa8] sm:$0xff]  ;;  %v929_v47 = vld [vmem:[%s6546_s30 + $0xb8] sm:$0xff]  ;;  %s764_s26 = scalar_lea.vmem %s6555_s2, %s4578_s5 }
  0x23   : > { %5169 = vmatpush1.bf16.msra.mxu1 %v5168_v21  ;;  %v5180_v45 = vpack.c.bf16 %v924_v44, %v922_v43  ;;  %v5182_v48 = vpack.c.bf16 %v929_v47, %v927_v46  ;;  %v926_v49 = vld [vmem:[%s6546_s30 + $0xa0] sm:$0xff]  ;;  %v928_v50 = vld [vmem:[%s6546_s30 + $0xb0] sm:$0xff]  ;;  %v931_v52 = vld [vmem:[%s6546_s30 + $0xc8] sm:$0xff] }
  0x24   : > { %5171 = vmatprep.subr.bf16.mxu1 %v5170_v22  ;;  %v5184_v51 = vpack.c.bf16 %v928_v50, %v926_v49  ;;  %v933_v53 = vld [vmem:[%s6546_s30 + $0xd8] sm:$0xff]  ;;  %v930_v54 = vld [vmem:[%s6546_s30 + $0xc0] sm:$0xff]  ;;  %v932_v56 = vld [vmem:[%s6546_s30 + $0xd0] sm:$0xff] }
  0x25   : > { %v5186_v55 = vpack.c.bf16 %v933_v53, %v931_v52  ;;  %v935_v57 = vld [vmem:[%s6546_s30 + $0xe8] sm:$0xff]  ;;  %v937_v58 = vld [vmem:[%s6546_s30 + $0xf8] sm:$0xff]  ;;  %v5188_v60 = vpack.c.bf16 %v932_v56, %v930_v54  ;;  %v934_v62 = vld [vmem:[%s6546_s30 + $0xe0] sm:$0xff] }
  0x26   : > { %v5190_v61 = vpack.c.bf16 %v937_v58, %v935_v57  ;;  %v936_v63 = vld [vmem:[%s6546_s30 + $0xf0] sm:$0xff]  ;;  %v4583_v10 = vld [vmem:[%s6547_s8] ss:$0 sm:$0xff]  ;;  %v1080_v20 = vld [vmem:[%s6549_s0 + $0x88] sm:$0xff] }
  0x27   : > { %5173 = vmatpush1.bf16.msra.mxu1 %v5172_v25  ;;  %v5192_v0 = vpack.c.bf16 %v936_v63, %v934_v62  ;;  %v4584_v12 = vld [vmem:[%s6548_s28] ss:$0 sm:$0xff]  ;;  %v1064_v23 = vld [vmem:[%s6549_s0 + $0x8] sm:$0xff]  ;;  %v1081_v25 = vld [vmem:[%s6549_s0 + $0x90] sm:$0xff] }
  0x28   : > { %5175 = vmatprep.subr.bf16.mxu1 %v5174_v36  ;;  %v1079_v19 = vld [vmem:[%s6549_s0 + $0x80] sm:$0xff]  ;;  %v1068_v35 = vld [vmem:[%s6549_s0 + $0x28] sm:$0xff]  ;;  %v1085_v37 = vld [vmem:[%s6549_s0 + $0xb0] sm:$0xff] }
  0x29   : > { %v5194_v21 = vpack.c.bf16 %v1080_v20, %v1079_v19  ;;  %v1063_v22 = vld [vmem:[%s6549_s0] sm:$0xff]  ;;  %v1086_v38 = vld [vmem:[%s6549_s0 + $0xb8] sm:$0xff]  ;;  %v1069_v40 = vld [vmem:[%s6549_s0 + $0x30] sm:$0xff] }
  0x2a   : > { %v5196_v24 = vpack.c.bf16 %v1064_v23, %v1063_v22  ;;  %v1067_v34 = vld [vmem:[%s6549_s0 + $0x20] sm:$0xff]  ;;  %v1070_v41 = vld [vmem:[%s6549_s0 + $0x38] sm:$0xff]  ;;  %v1088_v44 = vld [vmem:[%s6549_s0 + $0xc8] sm:$0xff] }
  0x2b   : > { %5177 = vmatpush1.bf16.msra.mxu1 %v5176_v39  ;;  %5195 = vmatprep.subr.bf16.mxu0 %v5194_v21  ;;  %v5204_v36 = vpack.c.bf16 %v1068_v35, %v1067_v34  ;;  %v5206_v39 = vpack.c.bf16 %v1086_v38, %v1085_v37  ;;  %v1087_v43 = vld [vmem:[%s6549_s0 + $0xc0] sm:$0xff]  ;;  %v1072_v47 = vld [vmem:[%s6549_s0 + $0x48] sm:$0xff]  ;;  %v1089_v49 = vld [vmem:[%s6549_s0 + $0xd0] sm:$0xff] }
  0x2c   : > { %5179 = vmatprep.subr.bf16.mxu1 %v5178_v42  ;;  %5197 = vmatpush3.bf16.msra.mxu0 %v5196_v24  ;;  %v5208_v42 = vpack.c.bf16 %v1070_v41, %v1069_v40  ;;  %v1071_v46 = vld [vmem:[%s6549_s0 + $0x40] sm:$0xff]  ;;  %v1090_v50 = vld [vmem:[%s6549_s0 + $0xd8] sm:$0xff] }
  0x2d   : > { %v5214_v52 = vpack.c.bf16 %v1090_v50, %v1089_v49  ;;  %v1074_v53 = vld [vmem:[%s6549_s0 + $0x58] sm:$0xff]  ;;  %v1091_v54 = vld [vmem:[%s6549_s0 + $0xe0] sm:$0xff] }
  0x2e   : > { %v1075_v58 = vld [vmem:[%s6549_s0 + $0x60] sm:$0xff]  ;;  %v1094_v62 = vld [vmem:[%s6549_s0 + $0xf8] sm:$0xff] }
  0x2f   : > { %5181 = vmatpush1.bf16.msra.mxu1 %v5180_v45  ;;  %v5210_v45 = vpack.c.bf16 %v1088_v44, %v1087_v43 }
  0x30   : > { %5183 = vmatprep.subr.bf16.mxu1 %v5182_v48  ;;  %v5212_v48 = vpack.c.bf16 %v1072_v47, %v1071_v46 }
  0x33   : > { %5185 = vmatpush1.bf16.msra.mxu1 %v5184_v51  ;;  %v1073_v51 = vld [vmem:[%s6549_s0 + $0x50] sm:$0xff] }
  0x34   : > { %5187 = vmatprep.subr.bf16.mxu1 %v5186_v55  ;;  %v1092_v55 = vld [vmem:[%s6549_s0 + $0xe8] sm:$0xff]  ;;  %v5216_v56 = vpack.c.bf16 %v1074_v53, %v1073_v51 }
  0x35   : > { %v5218_v57 = vpack.c.bf16 %v1092_v55, %v1091_v54 }
  0x37   : > { %5189 = vmatpush1.bf16.msra.mxu1 %v5188_v60  ;;  %v1076_v60 = vld [vmem:[%s6549_s0 + $0x68] sm:$0xff] }
  0x38   : > { %5191 = vmatprep.subr.bf16.mxu1 %v5190_v61  ;;  %v1093_v61 = vld [vmem:[%s6549_s0 + $0xf0] sm:$0xff]  ;;  %v5220_v63 = vpack.c.bf16 %v1076_v60, %v1075_v58 }
  0x3b   : > { %5193 = vmatpush1.bf16.msra.mxu1 %v5192_v0  ;;  %v5222_v0 = vpack.c.bf16 %v1094_v62, %v1093_v61  ;;  %v4585_v62 = vld [vmem:[%s6501_s10] ss:$0 sm:$0xff] }
  0xf2   : > { %v4941_v4 = vpop.f32.mrb[0].mxu0 }
  0xf3   : > { %v852_v5 = vpop.f32.mrb[1].mxu0  ;;  %v5649_v7 = vadd.f32 %v4941_v4, %v4579_v3 }
  0xf4   : > { %v5646_v6 = vadd.f32 %v4579_v3, %v852_v5 }
  0xf6   : > { %865 = vadd.xlane.f32.xlu0 %v5646_v6 }
  0xfa   : > { %867 = vadd.xlane.f32.xlu0 %v5649_v7 }
 0x183   : > { %v866_v26 = vpop.xlane.xlu0 %865 }
 0x184   : > { %v870_v27 = vmul.f32 0.0078125, %v866_v26  ;;  %v1082_v26 = vld [vmem:[%s6549_s0 + $0x98] sm:$0xff] }
 0x186   : > { %v872_v28 = vsub.f32 %v5646_v6, %v870_v27  ;;  %v5198_v27 = vpack.c.bf16 %v1082_v26, %v1081_v25 }
 0x187   : > { %v868_v29 = vpop.xlane.xlu0 %867 }
 0x188   : > { %v871_v30 = vmul.f32 0.0078125, %v868_v29  ;;  %v874_v31 = vmul.f32 %v872_v28, %v872_v28  ;;  %v1066_v29 = vld [vmem:[%s6549_s0 + $0x18] sm:$0xff]  ;;  %5199 = vmatprep.subr.bf16.mxu0 %v5198_v27 }
 0x18a   : > { %v873_v32 = vsub.f32 %v5649_v7, %v871_v30  ;;  %876 = vadd.xlane.f32.xlu1 %v874_v31  ;;  %v1083_v31 = vld [vmem:[%s6549_s0 + $0xa0] sm:$0xff] }
 0x18c   : > { %v875_v33 = vmul.f32 %v873_v32, %v873_v32 }
 0x18e   : > { %878 = vadd.xlane.f32.xlu1 %v875_v33 }
 0x217   : > { %v877_v1 = vpop.xlane.xlu1 %876 }
 0x218   : > { %v880_v2 = vmul.f32 0.0078125, %v877_v1  ;;  %v1077_v1 = vld [vmem:[%s6549_s0 + $0x70] sm:$0xff] }
 0x21a   : > { %v882_v3 = vadd.f32 1e-05, %v880_v2  ;;  %v1078_v2 = vld [vmem:[%s6549_s0 + $0x78] sm:$0xff] }
 0x21b   : > { %v879_v4 = vpop.xlane.xlu1 %878 }
 0x21c   : > { %5411 = vrsqrt.f32 %v882_v3  ;;  %v881_v5 = vmul.f32 0.0078125, %v879_v4  ;;  %v5224_v3 = vpack.c.bf16 %v1078_v2, %v1077_v1  ;;  %v940_v4 = vlaneseq }
 0x21e   : > { %v883_v8 = vadd.f32 1e-05, %v881_v5  ;;  %v5854_v5 = vshrl.u32 %v940_v4, 7 }
 0x220   : > { %5413 = vrsqrt.f32 %v883_v8  ;;  %v942_v8 = vsub.s32 0, %v5854_v5 }
 0x226   : > { %v5412_v9 = vpop.eup %5411 }
 0x227   : > { %v886_v11 = vmul.f32 %v5412_v9, %v872_v28  ;;  %v1065_v28 = vld [vmem:[%s6549_s0 + $0x10] sm:$0xff]  ;;  %v938_v9 = vld [vmem:[%s6550_s1] sm:$0x3] }
 0x228   : > { %v5200_v30 = vpack.c.bf16 %v1066_v29, %v1065_v28 }
 0x229   : > { %v895_v13 = vmul.f32 %v4583_v10, %v886_v11  ;;  %v943_v11 = vrot.slane %v938_v9, %v942_v8 }
 0x22a   : > { %v5414_v14 = vpop.eup %5413  ;;  %5201 = vmatpush3.bf16.msra.mxu0 %v5200_v30 }
 0x22b   : > { %v904_v15 = vadd.f32 %v4584_v12, %v895_v13  ;;  %v887_v16 = vmul.f32 %v5414_v14, %v873_v32  ;;  %v1084_v32 = vld [vmem:[%s6549_s0 + $0xa8] sm:$0xff] }
 0x22c   : > { %v5202_v33 = vpack.c.bf16 %v1084_v32, %v1083_v31 }
 0x22d   : > { %1015 = vmatmul.mubr.f32.vlgmr.msra.gmra.mrb[0].mxu1 %v904_v15  ;;  %v896_v17 = vmul.f32 %v4583_v10, %v887_v16  ;;  %v946_v10 = vsub.s32 1, %v5854_v5 }
 0x22e   : > { %1020 = vmatprep.mubr.f32.mxu1 %v5493_v59  ;;  %5203 = vmatprep.subr.bf16.mxu0 %v5202_v33 }
 0x22f   : > { %v905_v18 = vadd.f32 %v4584_v12, %v896_v17  ;;  %5205 = vmatpush3.bf16.msra.mxu0 %v5204_v36  ;;  %v947_v12 = vrot.slane %v938_v9, %v946_v10 }
 0x230   : > { %5207 = vmatprep.subr.bf16.mxu0 %v5206_v39 }
 0x231   : > { %1021 = vmatmul.mubr.f32.gmra.mrb[2].mxu1 %v905_v18 }
 0x233   : > { %5209 = vmatpush3.bf16.msra.mxu0 %v5208_v42 }
 0x234   : > { %5211 = vmatprep.subr.bf16.mxu0 %v5210_v45 }
 0x237   : > { %5213 = vmatpush3.bf16.msra.mxu0 %v5212_v48 }
 0x238   : > { %5215 = vmatprep.subr.bf16.mxu0 %v5214_v52 }
 0x23b   : > { %5217 = vmatpush3.bf16.msra.mxu0 %v5216_v56 }
 0x23c   : > { %5219 = vmatprep.subr.bf16.mxu0 %v5218_v57  ;;  %v5868_v57 = vld [vmem:[%s6551_s4] sm:$0xff] }
 0x23d   : > { %4946 = vmatprep.mubr.msk.f32.mxu1 %vm1179_vm2, %v5868_v57 }
 0x23f   : > { %5221 = vmatpush3.bf16.msra.mxu0 %v5220_v63 }
 0x240   : > { %5223 = vmatprep.subr.bf16.mxu0 %v5222_v0 }
 0x243   : > { %5225 = vmatpush3.bf16.msra.mxu0 %v5224_v3 }
 0x300   : > { %v1016_v13 = vpop.f32.mrb[0].mxu1 }
 0x301   : > { %v1017_v14 = vadd.f32 %v1016_v13, %v943_v11  ;;  %v1018_v15 = vpop.f32.mrb[1].mxu1  ;;  %v1345_v13 = vld [vmem:[%s6502_s11 + $0x8] sm:$0xff] }
 0x302   : > { %v1019_v16 = vadd.f32 %v1018_v15, %v947_v12  ;;  %v1344_v15 = vld [vmem:[%s6502_s11] sm:$0xff] }
 0x303   : > { %v1027_v17 = vmul.f32 %v1017_v14, %v1017_v14 }
 0x304   : > { %v1028_v18 = vmul.f32 %v1019_v16, %v1019_v16  ;;  %v1022_v19 = vpop.f32.mrb[2].mxu1 }
 0x305   : > { %v1031_v20 = vmul.f32 %v1027_v17, %v1017_v14  ;;  %v1023_v21 = vadd.f32 %v1022_v19, %v943_v11  ;;  %v1024_v22 = vpop.f32.mrb[3].mxu1  ;;  %v1536_v17 = vld [vmem:[%s6507_s16 + $0x8] sm:$0xff] }
 0x306   : > { %v1032_v23 = vmul.f32 %v1028_v18, %v1019_v16  ;;  %v1025_v24 = vadd.f32 %v1024_v22, %v947_v12  ;;  %v862_v12 = vld [vmem:[%s6551_s4 + $0x8] sm:$0xff] }
 0x307   : > { %v1035_v25 = vmul.f32 0.044715, %v1031_v20  ;;  %v1029_v26 = vmul.f32 %v1023_v21, %v1023_v21  ;;  %v1359_v18 = vld [vmem:[%s6503_s12 + $0x8] sm:$0xff]  ;;  %v1376_v20 = vld [vmem:[%s6505_s14] sm:$0xff] }
 0x308   : > { %v1036_v27 = vmul.f32 0.044715, %v1032_v23  ;;  %v1030_v28 = vmul.f32 %v1025_v24, %v1025_v24  ;;  %v1796_v19 = vld [vmem:[%s6508_s17 + $0x8] sm:$0xff] }
 0x309   : > { %v1039_v29 = vadd.f32 %v1035_v25, %v1017_v14  ;;  %v1033_v30 = vmul.f32 %v1029_v26, %v1023_v21  ;;  %v1377_v22 = vld [vmem:[%s6505_s14 + $0x8] sm:$0xff]  ;;  %v1830_v25 = vld [vmem:[%s6511_s20 + $0x18] sm:$0xff] }
 0x30a   : > { %v1040_v31 = vadd.f32 %v1036_v27, %v1019_v16  ;;  %v1034_v32 = vmul.f32 %v1030_v28, %v1025_v24  ;;  %v1828_v23 = vld [vmem:[%s6511_s20 + $0x8] sm:$0xff]  ;;  %v1379_v26 = vld [vmem:[%s6505_s14 + $0x18] sm:$0xff]  ;;  %v1535_v28 = vld [vmem:[%s6507_s16] sm:$0xff] }
 0x30b   : > { %v1043_v33 = vmul.f32 0.7978846, %v1039_v29  ;;  %v1037_v34 = vmul.f32 0.044715, %v1033_v30  ;;  %v1987_v27 = vld [vmem:[%s6513_s22 + $0x8] sm:$0xff]  ;;  %v1795_v29 = vld [vmem:[%s6508_s17] sm:$0xff] }
 0x30c   : > { %v1044_v35 = vmul.f32 0.7978846, %v1040_v31  ;;  %v1038_v36 = vmul.f32 0.044715, %v1034_v32  ;;  %v1809_v30 = vld [vmem:[%s6509_s18] sm:$0xff]  ;;  %v1829_v32 = vld [vmem:[%s6511_s20 + $0x10] sm:$0xff] }
 0x30d   : > { %5415 = vtanh.f32 %v1043_v33  ;;  %v1041_v37 = vadd.f32 %v1037_v34, %v1023_v21  ;;  %v1827_v31 = vld [vmem:[%s6511_s20] sm:$0xff] }
 0x30e   : > { %v1042_v38 = vadd.f32 %v1038_v36, %v1025_v24  ;;  %5417 = vtanh.f32 %v1044_v35  ;;  %v1986_v33 = vld [vmem:[%s6513_s22] sm:$0xff] }
 0x30f   : > { %v1045_v39 = vmul.f32 0.7978846, %v1041_v37 }
 0x310   : > { %v1046_v40 = vmul.f32 0.7978846, %v1042_v38 }
 0x311   : > { %5419 = vtanh.f32 %v1045_v39 }
 0x312   : > { %5421 = vtanh.f32 %v1046_v40 }
 0x317   : > { %v5416_v41 = vpop.eup %5415 }
 0x318   : > { %v5418_v42 = vpop.eup %5417  ;;  %v1051_v43 = vadd.f32 1.0, %v5416_v41  ;;  %v1372_v41 = vld [vmem:[%s6504_s13] sm:$0xff] }
 0x319   : > { %v1052_v44 = vadd.f32 1.0, %v5418_v42 }
 0x31a   : > { %v1055_v45 = vmul.f32 0.5, %v1051_v43 }
 0x31b   : > { %v5420_v46 = vpop.eup %5419  ;;  %v1056_v47 = vmul.f32 0.5, %v1052_v44 }
 0x31c   : > { %v5422_v48 = vpop.eup %5421  ;;  %v1053_v49 = vadd.f32 1.0, %v5420_v46  ;;  %v1059_v52 = vmul.f32 %v1055_v45, %v1017_v14  ;;  %v5494_v14 = vmov 0  }
 0x31d   : > { %v1060_v50 = vmul.f32 %v1056_v47, %v1019_v16  ;;  %v1054_v51 = vadd.f32 1.0, %v5422_v48  ;;  %5410 = vset.pattern.permute.xlu1 %v5494_v14  ;;  %5409 = vset.pattern.permute.xlu0 %v5494_v14  ;;  %v1358_v16 = vld [vmem:[%s6503_s12] sm:$0xff] }
 0x31e   : > { %v1057_v53 = vmul.f32 0.5, %v1053_v49  ;;  %1353 = vperm.xlu1 %5410, %v1345_v13   ;;  %1348 = vperm.xlu0 %5409, %v1344_v15  }
 0x31f   : > { %1166 = vmatprep.mubr.f32.mxu0 %v1060_v50  ;;  %v1058_v54 = vmul.f32 0.5, %v1054_v51 }
 0x320   : > { %1167 = vmatmul.mubr.f32.vlgmr.msra.gmra.mrb[2].mxu0 %v1059_v52  ;;  %v1061_v56 = vmul.f32 %v1057_v53, %v1023_v21  ;;  %v1810_v21 = vld [vmem:[%s6509_s18 + $0x8] sm:$0xff] }
 0x321   : > { %v1062_v55 = vmul.f32 %v1058_v54, %v1025_v24  ;;  %v1378_v24 = vld [vmem:[%s6505_s14 + $0x10] sm:$0xff] }
 0x322   : > { %1362 = vperm.xlu1 %5410, %v1358_v16   ;;  %1544 = vperm.xlu0 %5409, %v1536_v17  }
 0x323   : > { %1171 = vmatprep.mubr.f32.mxu0 %v1062_v55 }
 0x324   : > { %1172 = vmatmul.mubr.f32.gmra.mrb[4].mxu0 %v1061_v56 }
 0x325   : > { %4953 = vmatprep.mubr.msk.f32.mxu0 %vm1179_vm2, %v5868_v57 }
 0x326   : > { %1367 = vperm.xlu1 %5410, %v1359_v18   ;;  %1804 = vperm.xlu0 %5409, %v1796_v19  }
 0x32a   : > { %1382 = vperm.xlu1 %5410, %v1376_v20   ;;  %1818 = vperm.xlu0 %5409, %v1810_v21  }
 0x32e   : > { %1387 = vperm.xlu1 %5410, %v1377_v22   ;;  %1838 = vperm.xlu0 %5409, %v1828_v23  }
 0x332   : > { %1392 = vperm.xlu1 %5410, %v1378_v24   ;;  %1848 = vperm.xlu0 %5409, %v1830_v25  }
 0x336   : > { %1397 = vperm.xlu1 %5410, %v1379_v26   ;;  %1995 = vperm.xlu0 %5409, %v1987_v27  }
 0x33a   : > { %1539 = vperm.xlu1 %5410, %v1535_v28  }
 0x33e   : > { %1799 = vperm.xlu1 %5410, %v1795_v29  }
 0x342   : > { %1813 = vperm.xlu1 %5410, %v1809_v30  }
 0x346   : > { %1833 = vperm.xlu1 %5410, %v1827_v31  }
 0x34a   : > { %1843 = vperm.xlu1 %5410, %v1829_v32  }
 0x34e   : > { %1990 = vperm.xlu1 %5410, %v1986_v33  }
 0x39d   : > { %v1354_v46 = vpop.permute.xlu1 %1353  ;;  %v1349_v52 = vpop.permute.xlu0 %1348 }
 0x3a1   : > { %v1363_v47 = vpop.permute.xlu1 %1362 }
 0x3a5   : > { %v1368_v54 = vpop.permute.xlu1 %1367 }
 0x3f3   : > { %v4781_v58 = vpop.f32.mrb[2].mxu0 }
 0x3f4   : > { %v4782_v60 = vpop.f32.mrb[3].mxu0 }
 0x3f5   : > { %v4783_v61 = vadd.f32 %v4782_v60, %v4781_v58 }
 0x3f7   : > { %v4784_v63 = vpop.f32.mrb[4].mxu0  ;;  %v1169_v1 = vadd.f32 %v4783_v61, %v4585_v62  ;;  %v1373_v61 = vld [vmem:[%s6504_s13 + $0x8] sm:$0xff] }
 0x3f8   : > { %v4785_v0 = vpop.f32.mrb[5].mxu0 }
 0x3f9   : > { %v4786_v2 = vadd.f32 %v4785_v0, %v4784_v63  ;;  %v1177_v4 = vadd.f32 %v1169_v1, %v5646_v6  ;;  %v1375_v63 = vld [vmem:[%s6504_s13 + $0x18] sm:$0xff]  ;;  %v1533_v0 = vld [vmem:[%s6506_s15] sm:$0xff]  ;;  %v1383_v1 = vpop.permute.xlu1 %1382 }
 0x3fb   : > { %v1174_v3 = vadd.f32 %v4786_v2, %v4585_v62  ;;  %v1374_v62 = vld [vmem:[%s6504_s13 + $0x10] sm:$0xff] }
 0x3fd   : > { %v1178_v9 = vadd.f32 %v1174_v3, %v5649_v7  ;;  %v1388_v2 = vpop.permute.xlu1 %1387 }
 0x3ff   : > { %v5226_v11 = vpack.c.bf16 %v1178_v9, %v1177_v4 }
 0x401   : > { %5227 = vmatprep.subr.bf16.mxu1 %v5226_v11  ;;  %v1393_v3 = vpop.permute.xlu1 %1392 }
 0x402   : > { %5229 = vmatpush3.bf16.msra.mxu1 %v5226_v11 }
 0x405   : > { %4947 = vmatmul.mubr.msk.f32.vlgmr.msra.gmra.mrb[4].mxu1 %vm1179_vm2, %v862_v12  ;;  %v1398_v14 = vpop.permute.xlu1 %1397 }
 0x406   : > { %4960 = vmatprep.mubr.msk.f32.mxu1 %vm1179_vm2, %v1372_v41 }
 0x4d8   : > { %v4948_v34 = vpop.f32.mrb[4].mxu1 }
 0x4d9   : > { %v1262_v35 = vsub.f32 %v1178_v9, %v4948_v34  ;;  %v1252_v36 = vpop.f32.mrb[5].mxu1 }
 0x4da   : > { %v1261_v37 = vsub.f32 %v1177_v4, %v1252_v36 }
 0x4db   : > { %v1264_v38 = vmul.f32 %v1262_v35, %v1262_v35 }
 0x4dc   : > { %v1263_v39 = vmul.f32 %v1261_v37, %v1261_v37 }
 0x4de   : > { %v5230_v40 = vpack.c.bf16 %v1264_v38, %v1263_v39 }
 0x4e0   : > { %5231 = vmatprep.subr.bf16.mxu0 %v5230_v40 }
 0x4e1   : > { %5233 = vmatpush3.bf16.msra.mxu0 %v5230_v40 }
 0x4e4   : > { %4954 = vmatmul.mubr.msk.f32.vlgmr.msra.gmra.mrb[6].mxu0 %vm1179_vm2, %v862_v12 }
 0x4e5   : > { %4974 = vmatprep.mubr.msk.f32.mxu0 %vm1547_vm3, %v1533_v0 }
 0x5b7   : > { %v4955_v42 = vpop.f32.mrb[6].mxu0 }
 0x5b8   : > { %v1337_v43 = vadd.f32 1e-05, %v4955_v42  ;;  %v1331_v44 = vpop.f32.mrb[7].mxu0 }
 0x5b9   : > { %v1332_v45 = vadd.f32 1e-05, %v1331_v44 }
 0x5ba   : > { %5423 = vrsqrt.f32 %v1337_v43 }
 0x5bb   : > { %5425 = vrsqrt.f32 %v1332_v45 }
 0x5c4   : > { %v5424_v48 = vpop.eup %5423 }
 0x5c5   : > { %v5426_v49 = vpop.eup %5425  ;;  %v1343_v50 = vmul.f32 %v5424_v48, %v1262_v35 }
 0x5c6   : > { %v1342_v51 = vmul.f32 %v5426_v49, %v1261_v37 }
 0x5c7   : > { %v1357_v53 = vmul.f32 %v1354_v46, %v1343_v50 }
 0x5c8   : > { %v1356_v55 = vmul.f32 %v1349_v52, %v1342_v51 }
 0x5c9   : > { %v1371_v56 = vadd.f32 %v1368_v54, %v1357_v53 }
 0x5ca   : > { %v1370_v58 = vadd.f32 %v1363_v47, %v1356_v55 }
 0x5cc   : > { %v5234_v60 = vpack.c.bf16 %v1371_v56, %v1370_v58  ;;  %v1534_v56 = vld [vmem:[%s6506_s15 + $0x8] sm:$0xff]  ;;  %v5971_v58 = vld [vmem:[%s6552_s9] sm:$0xff] }
 0x5ce   : > { %5235 = vmatprep.subr.bf16.mxu1 %v5234_v60 }
 0x5cf   : > { %5237 = vmatpush3.bf16.msra.mxu1 %v5234_v60  ;;  %v1545_v60 = vpop.permute.xlu0 %1544 }
 0x5d2   : > { %4961 = vmatmul.mubr.msk.f32.vlgmr.msra.gmra.mrb[6].mxu1 %vm1179_vm2, %v1373_v61 }
 0x5d3   : > { %4963 = vmatprep.mubr.msk.f32.mxu1 %vm1179_vm2, %v1374_v62  ;;  %v1540_v62 = vpop.permute.xlu1 %1539 }
 0x5d6   : > { %4964 = vmatmul.mubr.msk.f32.gmra.mrb[8].mxu1 %vm1179_vm2, %v1375_v63 }
 0x5d7   : > { %4981 = vmatprep.mubr.msk.f32.mxu1 %vm1179_vm2, %v5971_v58 }
 0x6a5   : > { %v4962_v4 = vpop.f32.mrb[6].mxu1 }
 0x6a6   : > { %v1484_v9 = vadd.f32 %v4962_v4, %v1388_v2  ;;  %v1478_v11 = vpop.f32.mrb[7].mxu1 }
 0x6a7   : > { %v1479_v12 = vadd.f32 %v1478_v11, %v1383_v1 }
 0x6a8   : > { %v1498_v13 = vmul.f32 %v1484_v9, %v1484_v9 }
 0x6a9   : > { %v1497_v15 = vmul.f32 %v1479_v12, %v1479_v12  ;;  %v4965_v16 = vpop.f32.mrb[8].mxu1 }
 0x6aa   : > { %v1502_v17 = vmul.f32 %v1498_v13, %v1484_v9  ;;  %v1494_v18 = vadd.f32 %v4965_v16, %v1398_v14  ;;  %v1488_v19 = vpop.f32.mrb[9].mxu1 }
 0x6ab   : > { %v1501_v20 = vmul.f32 %v1497_v15, %v1479_v12  ;;  %v1489_v21 = vadd.f32 %v1488_v19, %v1393_v3 }
 0x6ac   : > { %v1506_v22 = vmul.f32 0.044715, %v1502_v17  ;;  %v1500_v23 = vmul.f32 %v1494_v18, %v1494_v18 }
 0x6ad   : > { %v1505_v24 = vmul.f32 0.044715, %v1501_v20  ;;  %v1499_v25 = vmul.f32 %v1489_v21, %v1489_v21 }
 0x6ae   : > { %v1510_v26 = vadd.f32 %v1506_v22, %v1484_v9  ;;  %v1504_v27 = vmul.f32 %v1500_v23, %v1494_v18  ;;  %v1805_v23 = vpop.permute.xlu0 %1804 }
 0x6af   : > { %v1509_v28 = vadd.f32 %v1505_v24, %v1479_v12  ;;  %v1503_v29 = vmul.f32 %v1499_v25, %v1489_v21  ;;  %v1800_v24 = vpop.permute.xlu1 %1799 }
 0x6b0   : > { %v1514_v30 = vmul.f32 0.7978846, %v1510_v26  ;;  %v1508_v31 = vmul.f32 0.044715, %v1504_v27 }
 0x6b1   : > { %v1513_v32 = vmul.f32 0.7978846, %v1509_v28  ;;  %v1507_v33 = vmul.f32 0.044715, %v1503_v29 }
 0x6b2   : > { %5427 = vtanh.f32 %v1514_v30  ;;  %v1512_v34 = vadd.f32 %v1508_v31, %v1494_v18  ;;  %v1819_v30 = vpop.permute.xlu0 %1818 }
 0x6b3   : > { %5429 = vtanh.f32 %v1513_v32  ;;  %v1511_v35 = vadd.f32 %v1507_v33, %v1489_v21  ;;  %v1814_v32 = vpop.permute.xlu1 %1813 }
 0x6b4   : > { %v1516_v36 = vmul.f32 0.7978846, %v1512_v34 }
 0x6b5   : > { %v1515_v37 = vmul.f32 0.7978846, %v1511_v35 }
 0x6b6   : > { %5431 = vtanh.f32 %v1516_v36  ;;  %v1824_v36 = vld [vmem:[%s6510_s19 + $0x8] sm:$0xff] }
 0x6b7   : > { %5433 = vtanh.f32 %v1515_v37  ;;  %v1825_v37 = vld [vmem:[%s6510_s19 + $0x10] sm:$0xff] }
 0x6bc   : > { %v5428_v38 = vpop.eup %5427 }
 0x6bd   : > { %v5430_v39 = vpop.eup %5429  ;;  %v1522_v40 = vadd.f32 1.0, %v5428_v38  ;;  %v1826_v38 = vld [vmem:[%s6510_s19 + $0x18] sm:$0xff] }
 0x6be   : > { %v1521_v41 = vadd.f32 1.0, %v5430_v39  ;;  %v1984_v39 = vld [vmem:[%s6512_s21] sm:$0xff] }
 0x6bf   : > { %v1526_v42 = vmul.f32 0.5, %v1522_v40  ;;  %v1839_v40 = vpop.permute.xlu0 %1838 }
 0x6c0   : > { %v5432_v43 = vpop.eup %5431  ;;  %v1525_v44 = vmul.f32 0.5, %v1521_v41  ;;  %v1834_v41 = vpop.permute.xlu1 %1833 }
 0x6c1   : > { %v5434_v45 = vpop.eup %5433  ;;  %v1530_v46 = vmul.f32 %v1526_v42, %v1484_v9  ;;  %v1524_v47 = vadd.f32 1.0, %v5432_v43  ;;  %v5982_v9 = vld [vmem:[%s6552_s9 + $0x8] sm:$0xff] }
 0x6c2   : > { %v1529_v48 = vmul.f32 %v1525_v44, %v1479_v12  ;;  %v1523_v49 = vadd.f32 1.0, %v5434_v45 }
 0x6c3   : > { %v1528_v50 = vmul.f32 0.5, %v1524_v47  ;;  %v1849_v47 = vpop.permute.xlu0 %1848 }
 0x6c4   : > { %v5238_v51 = vpack.c.bf16 %v1530_v46, %v1529_v48  ;;  %v1527_v52 = vmul.f32 0.5, %v1523_v49 }
 0x6c5   : > { %v1532_v53 = vmul.f32 %v1528_v50, %v1494_v18  ;;  %v1823_v18 = vld [vmem:[%s6510_s19] sm:$0xff]  ;;  %v1844_v50 = vpop.permute.xlu1 %1843 }
 0x6c6   : > { %5239 = vmatprep.subr.bf16.mxu0 %v5238_v51  ;;  %v1531_v54 = vmul.f32 %v1527_v52, %v1489_v21 }
 0x6c7   : > { %5241 = vmatpush3.bf16.msra.mxu0 %v5238_v51 }
 0x6c8   : > { %v5242_v55 = vpack.c.bf16 %v1532_v53, %v1531_v54 }
 0x6ca   : > { %5243 = vmatprep.subr.bf16.mxu0 %v5242_v55 }
 0x6cb   : > { %5245 = vmatpush3.bf16.msra.mxu0 %v5242_v55 }
 0x6ce   : > { %4975 = vmatmul.mubr.msk.f32.vlgmr.msra.gmra.mrb[8].mxu0 %vm1547_vm3, %v1534_v56 }
 0x6cf   : > { %4988 = vmatprep.mubr.msk.f32.mxu0 %vm1179_vm2, %v5971_v58 }
 0x7a1   : > { %v4976_v61 = vpop.f32.mrb[8].mxu0 }
 0x7a2   : > { %v1626_v63 = vadd.f32 %v4976_v61, %v1545_v60  ;;  %v1620_v0 = vpop.f32.mrb[9].mxu0 }
 0x7a3   : > { %v1621_v1 = vadd.f32 %v1620_v0, %v1540_v62 }
 0x7a4   : > { %v1630_v2 = vadd.f32 %v1626_v63, %v5649_v7 }
 0x7a5   : > { %v1629_v3 = vadd.f32 %v1621_v1, %v5646_v6 }
 0x7a7   : > { %v5246_v4 = vpack.c.bf16 %v1630_v2, %v1629_v3 }
 0x7a9   : > { %5247 = vmatprep.subr.bf16.mxu1 %v5246_v4 }
 0x7aa   : > { %5249 = vmatpush3.bf16.msra.mxu1 %v5246_v4 }
 0x7ad   : > { %4982 = vmatmul.mubr.msk.f32.vlgmr.msra.gmra.mrb[10].mxu1 %vm1179_vm2, %v5982_v9 }
 0x7ae   : > { %4995 = vmatprep.mubr.msk.f32.mxu1 %vm1179_vm2, %v1823_v18 }
 0x880   : > { %v4983_v11 = vpop.f32.mrb[10].mxu1 }
 0x881   : > { %v1713_v12 = vsub.f32 %v1630_v2, %v4983_v11  ;;  %v1703_v13 = vpop.f32.mrb[11].mxu1 }
 0x882   : > { %v1712_v14 = vsub.f32 %v1629_v3, %v1703_v13 }
 0x883   : > { %v1715_v15 = vmul.f32 %v1713_v12, %v1713_v12 }
 0x884   : > { %v1714_v16 = vmul.f32 %v1712_v14, %v1712_v14 }
 0x886   : > { %v5250_v17 = vpack.c.bf16 %v1715_v15, %v1714_v16 }
 0x888   : > { %5251 = vmatprep.subr.bf16.mxu0 %v5250_v17 }
 0x889   : > { %5253 = vmatpush3.bf16.msra.mxu0 %v5250_v17 }
 0x88c   : > { %4989 = vmatmul.mubr.msk.f32.vlgmr.msra.gmra.mrb[10].mxu0 %vm1179_vm2, %v5982_v9 }
 0x88d   : > { %5009 = vmatprep.mubr.msk.f32.mxu0 %vm1547_vm3, %v1984_v39 }
 0x95f   : > { %v4990_v19 = vpop.f32.mrb[10].mxu0 }
 0x960   : > { %v1788_v20 = vadd.f32 1e-05, %v4990_v19  ;;  %v1782_v21 = vpop.f32.mrb[11].mxu0 }
 0x961   : > { %v1783_v22 = vadd.f32 1e-05, %v1782_v21 }
 0x962   : > { %5435 = vrsqrt.f32 %v1788_v20 }
 0x963   : > { %5437 = vrsqrt.f32 %v1783_v22 }
 0x96c   : > { %v5436_v25 = vpop.eup %5435 }
 0x96d   : > { %v5438_v26 = vpop.eup %5437  ;;  %v1794_v27 = vmul.f32 %v5436_v25, %v1713_v12 }
 0x96e   : > { %v1793_v28 = vmul.f32 %v5438_v26, %v1712_v14 }
 0x96f   : > { %v1808_v29 = vmul.f32 %v1805_v23, %v1794_v27 }
 0x970   : > { %v1807_v31 = vmul.f32 %v1800_v24, %v1793_v28 }
 0x971   : > { %v1822_v33 = vadd.f32 %v1819_v30, %v1808_v29 }
 0x972   : > { %v1821_v34 = vadd.f32 %v1814_v32, %v1807_v31 }
 0x974   : > { %v5254_v35 = vpack.c.bf16 %v1822_v33, %v1821_v34 }
 0x976   : > { %5255 = vmatprep.subr.bf16.mxu1 %v5254_v35 }
 0x977   : > { %5257 = vmatpush3.bf16.msra.mxu1 %v5254_v35  ;;  %v1985_v35 = vld [vmem:[%s6512_s21 + $0x8] sm:$0xff] }
 0x97a   : > { %4996 = vmatmul.mubr.msk.f32.vlgmr.msra.gmra.mrb[12].mxu1 %vm1179_vm2, %v1824_v36  ;;  %v1996_v36 = vpop.permute.xlu0 %1995 }
 0x97b   : > { %4998 = vmatprep.mubr.msk.f32.mxu1 %vm1179_vm2, %v1825_v37 }
 0x97e   : > { %4999 = vmatmul.mubr.msk.f32.gmra.mrb[14].mxu1 %vm1179_vm2, %v1826_v38  ;;  %v1991_v38 = vpop.permute.xlu1 %1990 }
 0x97f   : > { %2233 = vmatprep.mubr.f32.mxu1 %v5493_v59 }
 0xa4d   : > { %v4997_v42 = vpop.f32.mrb[12].mxu1 }
 0xa4e   : > { %v1935_v43 = vadd.f32 %v4997_v42, %v1839_v40  ;;  %v1929_v44 = vpop.f32.mrb[13].mxu1 }
 0xa4f   : > { %v1930_v45 = vadd.f32 %v1929_v44, %v1834_v41  ;;  %v4611_v44 = vld [vmem:[%s6546_s30 + $0x108] sm:$0xff] }
 0xa50   : > { %v1949_v46 = vmul.f32 %v1935_v43, %v1935_v43 }
 0xa51   : > { %v1948_v48 = vmul.f32 %v1930_v45, %v1930_v45  ;;  %v5000_v49 = vpop.f32.mrb[14].mxu1 }
 0xa52   : > { %v1953_v51 = vmul.f32 %v1949_v46, %v1935_v43  ;;  %v1945_v52 = vadd.f32 %v5000_v49, %v1849_v47  ;;  %v1939_v53 = vpop.f32.mrb[15].mxu1  ;;  %v4615_v47 = vld [vmem:[%s6546_s30 + $0x128] sm:$0xff] }
 0xa53   : > { %v1952_v54 = vmul.f32 %v1948_v48, %v1930_v45  ;;  %v1940_v55 = vadd.f32 %v1939_v53, %v1844_v50  ;;  %v4617_v48 = vld [vmem:[%s6546_s30 + $0x138] sm:$0xff]  ;;  %v4619_v53 = vld [vmem:[%s6546_s30 + $0x148] sm:$0xff] }
 0xa54   : > { %v1957_v56 = vmul.f32 0.044715, %v1953_v51  ;;  %v1951_v60 = vmul.f32 %v1945_v52, %v1945_v52  ;;  %v5270_v50 = vpack.c.bf16 %v4617_v48, %v4615_v47  ;;  %v4614_v51 = vld [vmem:[%s6546_s30 + $0x120] sm:$0xff] }
 0xa55   : > { %v1956_v61 = vmul.f32 0.044715, %v1952_v54  ;;  %v1950_v62 = vmul.f32 %v1940_v55, %v1940_v55  ;;  %v4621_v54 = vld [vmem:[%s6546_s30 + $0x158] sm:$0xff]  ;;  %v4638_v48 = vld [vmem:[%s6546_s30 + $0x1e0] sm:$0xff] }
 0xa56   : > { %v1961_v63 = vadd.f32 %v1957_v56, %v1935_v43  ;;  %v1955_v0 = vmul.f32 %v1951_v60, %v1945_v52  ;;  %v5274_v56 = vpack.c.bf16 %v4621_v54, %v4619_v53  ;;  %v4618_v60 = vld [vmem:[%s6546_s30 + $0x140] sm:$0xff]  ;;  %v4700_v53 = vld [vmem:[%s6507_s16 + $0x18] sm:$0xff]  ;;  %v4709_v54 = vld [vmem:[%s6509_s18 + $0x10] sm:$0xff] }
 0xa57   : > { %v1960_v1 = vadd.f32 %v1956_v61, %v1930_v45  ;;  %v1954_v2 = vmul.f32 %v1950_v62, %v1940_v55  ;;  %v4620_v61 = vld [vmem:[%s6546_s30 + $0x150] sm:$0xff] }
 0xa58   : > { %v1965_v3 = vmul.f32 0.7978846, %v1961_v63  ;;  %v1959_v4 = vmul.f32 0.044715, %v1955_v0  ;;  %v5276_v62 = vpack.c.bf16 %v4620_v61, %v4618_v60  ;;  %v4710_v60 = vld [vmem:[%s6509_s18 + $0x18] sm:$0xff]  ;;  %v4717_v61 = vld [vmem:[%s6511_s20 + $0x30] sm:$0xff] }
 0xa59   : > { %v1964_v11 = vmul.f32 0.7978846, %v1960_v1  ;;  %v1958_v12 = vmul.f32 0.044715, %v1954_v2 }
 0xa5a   : > { %5439 = vtanh.f32 %v1965_v3  ;;  %v1963_v13 = vadd.f32 %v1959_v4, %v1945_v52 }
 0xa5b   : > { %5441 = vtanh.f32 %v1964_v11  ;;  %v1962_v14 = vadd.f32 %v1958_v12, %v1940_v55 }
 0xa5c   : > { %v1967_v15 = vmul.f32 0.7978846, %v1963_v13  ;;  %v4623_v13 = vld [vmem:[%s6546_s30 + $0x168] sm:$0xff] }
 0xa5d   : > { %v1966_v16 = vmul.f32 0.7978846, %v1962_v14  ;;  %v4625_v14 = vld [vmem:[%s6546_s30 + $0x178] sm:$0xff] }
 0xa5e   : > { %5443 = vtanh.f32 %v1967_v15  ;;  %v4682_v15 = vld [vmem:[%s6502_s11 + $0x18] sm:$0xff] }
 0xa5f   : > { %5445 = vtanh.f32 %v1966_v16  ;;  %v5278_v16 = vpack.c.bf16 %v4625_v14, %v4623_v13 }
 0xa64   : > { %v5440_v17 = vpop.eup %5439 }
 0xa65   : > { %v5442_v18 = vpop.eup %5441  ;;  %v1973_v19 = vadd.f32 1.0, %v5440_v17  ;;  %v4622_v17 = vld [vmem:[%s6546_s30 + $0x160] sm:$0xff] }
 0xa66   : > { %v1972_v20 = vadd.f32 1.0, %v5442_v18  ;;  %v4624_v18 = vld [vmem:[%s6546_s30 + $0x170] sm:$0xff] }
 0xa67   : > { %v1977_v21 = vmul.f32 0.5, %v1973_v19  ;;  %v5280_v19 = vpack.c.bf16 %v4624_v18, %v4622_v17  ;;  %v4607_v18 = vld [vmem:[%s6547_s8 + $0x1] ss:$0 sm:$0xff] }
 0xa68   : > { %v5444_v22 = vpop.eup %5443  ;;  %v1976_v23 = vmul.f32 0.5, %v1972_v20  ;;  %v4627_v20 = vld [vmem:[%s6546_s30 + $0x188] sm:$0xff] }
 0xa69   : > { %v5446_v24 = vpop.eup %5445  ;;  %v1981_v25 = vmul.f32 %v1977_v21, %v1935_v43  ;;  %v1975_v26 = vadd.f32 1.0, %v5444_v22  ;;  %v4629_v21 = vld [vmem:[%s6546_s30 + $0x198] sm:$0xff]  ;;  %v4683_v22 = vld [vmem:[%s6503_s12 + $0x10] sm:$0xff] }
 0xa6a   : > { %v1980_v27 = vmul.f32 %v1976_v23, %v1930_v45  ;;  %v1974_v28 = vadd.f32 1.0, %v5446_v24  ;;  %v4613_v45 = vld [vmem:[%s6546_s30 + $0x118] sm:$0xff]  ;;  %v5282_v23 = vpack.c.bf16 %v4629_v21, %v4627_v20  ;;  %v4626_v24 = vld [vmem:[%s6546_s30 + $0x180] sm:$0xff] }
 0xa6b   : > { %v1979_v29 = vmul.f32 0.5, %v1975_v26  ;;  %v5266_v46 = vpack.c.bf16 %v4613_v45, %v4611_v44  ;;  %v4690_v45 = vld [vmem:[%s6505_s14 + $0x28] sm:$0xff]  ;;  %v4609_v21 = vld [vmem:[%s6548_s28 + $0x1] ss:$0 sm:$0xff] }
 0xa6c   : > { %v5258_v30 = vpack.c.bf16 %v1981_v25, %v1980_v27  ;;  %v1978_v31 = vmul.f32 0.5, %v1974_v28  ;;  %v4628_v25 = vld [vmem:[%s6546_s30 + $0x190] sm:$0xff]  ;;  %v4631_v28 = vld [vmem:[%s6546_s30 + $0x1a8] sm:$0xff] }
 0xa6d   : > { %v1983_v32 = vmul.f32 %v1979_v29, %v1945_v52  ;;  %v4616_v52 = vld [vmem:[%s6546_s30 + $0x130] sm:$0xff]  ;;  %5267 = vmatprep.subr.bf16.mxu1 %v5266_v46  ;;  %v5284_v26 = vpack.c.bf16 %v4628_v25, %v4626_v24  ;;  %v4633_v29 = vld [vmem:[%s6546_s30 + $0x1b8] sm:$0xff] }
 0xa6e   : > { %5259 = vmatprep.subr.bf16.mxu0 %v5258_v30  ;;  %v1982_v33 = vmul.f32 %v1978_v31, %v1940_v55  ;;  %v5272_v55 = vpack.c.bf16 %v4616_v52, %v4614_v51  ;;  %v4681_v27 = vld [vmem:[%s6502_s11 + $0x10] sm:$0xff]  ;;  %v5286_v31 = vpack.c.bf16 %v4633_v29, %v4631_v28  ;;  %v4641_v46 = vld [vmem:[%s6546_s30 + $0x1f8] sm:$0xff]  ;;  %v4644_v28 = vld [vmem:[%s6549_s0 + $0x108] sm:$0xff] }
 0xa6f   : > { %5261 = vmatpush3.bf16.msra.mxu0 %v5258_v30  ;;  %v4689_v30 = vld [vmem:[%s6505_s14 + $0x20] sm:$0xff]  ;;  %v4692_v51 = vld [vmem:[%s6505_s14 + $0x38] sm:$0xff]  ;;  %v4707_v52 = vld [vmem:[%s6508_s17 + $0x10] sm:$0xff] }
 0xa70   : > { %v5262_v34 = vpack.c.bf16 %v1983_v32, %v1982_v33  ;;  %v4630_v32 = vld [vmem:[%s6546_s30 + $0x1a0] sm:$0xff]  ;;  %v4632_v33 = vld [vmem:[%s6546_s30 + $0x1b0] sm:$0xff] }
 0xa72   : > { %5263 = vmatprep.subr.bf16.mxu0 %v5262_v34 }
 0xa73   : > { %5265 = vmatpush3.bf16.msra.mxu0 %v5262_v34  ;;  %v5288_v34 = vpack.c.bf16 %v4632_v33, %v4630_v32  ;;  %v4645_v32 = vld [vmem:[%s6549_s0 + $0x110] sm:$0xff]  ;;  %v4646_v33 = vld [vmem:[%s6549_s0 + $0x118] sm:$0xff] }
 0xa76   : > { %5010 = vmatmul.mubr.msk.f32.vlgmr.msra.gmra.mrb[12].mxu0 %vm1547_vm3, %v1985_v35  ;;  %v4684_v35 = vld [vmem:[%s6503_s12 + $0x18] sm:$0xff] }
 0xb49   : > { %v5011_v37 = vpop.f32.mrb[12].mxu0 }
 0xb4a   : > { %v2076_v39 = vadd.f32 %v5011_v37, %v1996_v36  ;;  %v2070_v40 = vpop.f32.mrb[13].mxu0  ;;  %v4635_v36 = vld [vmem:[%s6546_s30 + $0x1c8] sm:$0xff]  ;;  %v4637_v37 = vld [vmem:[%s6546_s30 + $0x1d8] sm:$0xff] }
 0xb4b   : > { %v2071_v41 = vadd.f32 %v2070_v40, %v1991_v38  ;;  %v4691_v38 = vld [vmem:[%s6505_s14 + $0x30] sm:$0xff]  ;;  %v4634_v40 = vld [vmem:[%s6546_s30 + $0x1c0] sm:$0xff] }
 0xb4c   : > { %v6014_v42 = vadd.f32 %v2076_v39, %v5649_v7  ;;  %v4610_v7 = vld [vmem:[%s6546_s30 + $0x100] sm:$0xff]  ;;  %v5290_v39 = vpack.c.bf16 %v4637_v37, %v4635_v36  ;;  %v4664_v36 = vld [vmem:[%s6549_s0 + $0x1a8] sm:$0xff] }
 0xb4d   : > { %v6017_v43 = vadd.f32 %v2071_v41, %v5646_v6  ;;  %v4612_v6 = vld [vmem:[%s6546_s30 + $0x110] sm:$0xff] }
 0xb4e   : > { %2083 = vadd.xlane.f32.xlu0 %v6014_v42  ;;  %v5268_v49 = vpack.c.bf16 %v4612_v6, %v4610_v7  ;;  %v4636_v41 = vld [vmem:[%s6546_s30 + $0x1d0] sm:$0xff]  ;;  %v4639_v7 = vld [vmem:[%s6546_s30 + $0x1e8] sm:$0xff] }
 0xb4f   : > { %2081 = vadd.xlane.f32.xlu1 %v6017_v43  ;;  %v5292_v44 = vpack.c.bf16 %v4636_v41, %v4634_v40  ;;  %v4699_v6 = vld [vmem:[%s6507_s16 + $0x10] sm:$0xff]  ;;  %v5294_v47 = vpack.c.bf16 %v4641_v46, %v4639_v7  ;;  %v4650_v46 = vld [vmem:[%s6549_s0 + $0x138] sm:$0xff] }
 0xb50   : > { %5269 = vmatpush1.bf16.msra.mxu1 %v5268_v49  ;;  %v4640_v49 = vld [vmem:[%s6546_s30 + $0x1f0] sm:$0xff] }
 0xb51   : > { %5271 = vmatprep.subr.bf16.mxu1 %v5270_v50  ;;  %v5296_v50 = vpack.c.bf16 %v4640_v49, %v4638_v48  ;;  %v4665_v41 = vld [vmem:[%s6549_s0 + $0x1b0] sm:$0xff]  ;;  %v4668_v48 = vld [vmem:[%s6549_s0 + $0x1c8] sm:$0xff] }
 0xb52   : > { %v4649_v7 = vld [vmem:[%s6549_s0 + $0x130] sm:$0xff] }
 0xb54   : > { %5273 = vmatpush1.bf16.msra.mxu1 %v5272_v55  ;;  %v4708_v55 = vld [vmem:[%s6508_s17 + $0x18] sm:$0xff] }
 0xb55   : > { %5275 = vmatprep.subr.bf16.mxu1 %v5274_v56  ;;  %v4715_v56 = vld [vmem:[%s6511_s20 + $0x20] sm:$0xff] }
 0xb58   : > { %5277 = vmatpush1.bf16.msra.mxu1 %v5276_v62  ;;  %v4716_v62 = vld [vmem:[%s6511_s20 + $0x28] sm:$0xff] }
 0xb59   : > { %5279 = vmatprep.subr.bf16.mxu1 %v5278_v16 }
 0xb5c   : > { %5281 = vmatpush1.bf16.msra.mxu1 %v5280_v19 }
 0xb5d   : > { %5283 = vmatprep.subr.bf16.mxu1 %v5282_v23 }
 0xb60   : > { %5285 = vmatpush1.bf16.msra.mxu1 %v5284_v26 }
 0xb61   : > { %5287 = vmatprep.subr.bf16.mxu1 %v5286_v31 }
 0xb64   : > { %5289 = vmatpush1.bf16.msra.mxu1 %v5288_v34  ;;  %v5304_v34 = vpack.c.bf16 %v4646_v33, %v4645_v32 }
 0xb65   : > { %5291 = vmatprep.subr.bf16.mxu1 %v5290_v39  ;;  %v4648_v39 = vld [vmem:[%s6549_s0 + $0x128] sm:$0xff] }
 0xb68   : > { %5293 = vmatpush1.bf16.msra.mxu1 %v5292_v44  ;;  %v4666_v44 = vld [vmem:[%s6549_s0 + $0x1b8] sm:$0xff] }
 0xb69   : > { %5295 = vmatprep.subr.bf16.mxu1 %v5294_v47  ;;  %v4667_v47 = vld [vmem:[%s6549_s0 + $0x1c0] sm:$0xff] }
 0xb6a   : > { %v5314_v49 = vpack.c.bf16 %v4668_v48, %v4667_v47 }
 0xb6c   : > { %5297 = vmatpush1.bf16.msra.mxu1 %v5296_v50  ;;  %v4651_v50 = vld [vmem:[%s6549_s0 + $0x140] sm:$0xff] }
 0xbdb   : > { %v2084_v63 = vpop.xlane.xlu0 %2083 }
 0xbdc   : > { %v2086_v0 = vmul.f32 0.0078125, %v2084_v63  ;;  %v2082_v1 = vpop.xlane.xlu1 %2081  ;;  %v4725_v63 = vld [vmem:[%s6513_s22 + $0x10] sm:$0xff] }
 0xbdd   : > { %v2085_v2 = vmul.f32 0.0078125, %v2082_v1  ;;  %v4726_v1 = vld [vmem:[%s6513_s22 + $0x18] sm:$0xff] }
 0xbde   : > { %v6058_v3 = vsub.f32 %v6014_v42, %v2086_v0  ;;  %v4718_v0 = vld [vmem:[%s6511_s20 + $0x38] sm:$0xff] }
 0xbdf   : > { %v6061_v4 = vsub.f32 %v6017_v43, %v2085_v2 }
 0xbe0   : > { %v2090_v11 = vmul.f32 %v6058_v3, %v6058_v3 }
 0xbe1   : > { %v2089_v12 = vmul.f32 %v6061_v4, %v6061_v4 }
 0xbe2   : > { %2093 = vadd.xlane.f32.xlu1 %v2090_v11 }
 0xbe3   : > { %2091 = vadd.xlane.f32.xlu0 %v2089_v12 }
 0xbf3   : > { %2568 = vperm.xlu1 %5410, %v4682_v15  }
 0xbf7   : > { %2578 = vperm.xlu1 %5410, %v4683_v22  }
 0xbf9   : > { %2563 = vperm.xlu0 %5409, %v4681_v27   ;;  %v4643_v27 = vld [vmem:[%s6549_s0 + $0x100] sm:$0xff] }
 0xbfa   : > { %v5300_v29 = vpack.c.bf16 %v4644_v28, %v4643_v27 }
 0xbfb   : > { %2600 = vperm.xlu1 %5410, %v4689_v30   ;;  %v4662_v30 = vld [vmem:[%s6549_s0 + $0x198] sm:$0xff] }
 0xbfd   : > { %2583 = vperm.xlu0 %5409, %v4684_v35   ;;  %v4663_v35 = vld [vmem:[%s6549_s0 + $0x1a0] sm:$0xff] }
 0xbfe   : > { %v5306_v37 = vpack.c.bf16 %v4664_v36, %v4663_v35 }
 0xbff   : > { %2610 = vperm.xlu1 %5410, %v4691_v38   ;;  %v4647_v38 = vld [vmem:[%s6549_s0 + $0x120] sm:$0xff] }
 0xc00   : > { %v5308_v40 = vpack.c.bf16 %v4648_v39, %v4647_v38 }
 0xc01   : > { %2605 = vperm.xlu0 %5409, %v4690_v45   ;;  %v5310_v45 = vpack.c.bf16 %v4666_v44, %v4665_v41 }
 0xc03   : > { %2759 = vperm.xlu1 %5410, %v4699_v6   ;;  %v5312_v6 = vpack.c.bf16 %v4650_v46, %v4649_v7 }
 0xc05   : > { %2615 = vperm.xlu0 %5409, %v4692_v51   ;;  %v4652_v51 = vld [vmem:[%s6549_s0 + $0x148] sm:$0xff] }
 0xc07   : > { %3013 = vperm.xlu1 %5410, %v4707_v52   ;;  %v5316_v52 = vpack.c.bf16 %v4652_v51, %v4651_v50 }
 0xc09   : > { %2764 = vperm.xlu0 %5409, %v4700_v53   ;;  %v4669_v53 = vld [vmem:[%s6549_s0 + $0x1d0] sm:$0xff] }
 0xc0b   : > { %3028 = vperm.xlu1 %5410, %v4709_v54   ;;  %v4670_v54 = vld [vmem:[%s6549_s0 + $0x1d8] sm:$0xff] }
 0xc0d   : > { %3018 = vperm.xlu0 %5409, %v4708_v55   ;;  %v4653_v55 = vld [vmem:[%s6549_s0 + $0x150] sm:$0xff] }
 0xc0f   : > { %3050 = vperm.xlu1 %5410, %v4715_v56   ;;  %v5318_v56 = vpack.c.bf16 %v4670_v54, %v4669_v53 }
 0xc11   : > { %3033 = vperm.xlu0 %5409, %v4710_v60   ;;  %v4654_v60 = vld [vmem:[%s6549_s0 + $0x158] sm:$0xff] }
 0xc13   : > { %3060 = vperm.xlu1 %5410, %v4717_v61   ;;  %v4671_v61 = vld [vmem:[%s6549_s0 + $0x1e0] sm:$0xff] }
 0xc15   : > { %3055 = vperm.xlu0 %5409, %v4716_v62   ;;  %v4672_v62 = vld [vmem:[%s6549_s0 + $0x1e8] sm:$0xff] }
 0xc17   : > { %3209 = vperm.xlu1 %5410, %v4725_v63   ;;  %v5320_v63 = vpack.c.bf16 %v4654_v60, %v4653_v55 }
 0xc19   : > { %3065 = vperm.xlu0 %5409, %v4718_v0   ;;  %v5322_v0 = vpack.c.bf16 %v4672_v62, %v4671_v61 }
 0xc1d   : > { %3214 = vperm.xlu0 %5409, %v4726_v1   ;;  %v4655_v1 = vld [vmem:[%s6549_s0 + $0x160] sm:$0xff] }
 0xc6f   : > { %v2094_v2 = vpop.xlane.xlu1 %2093 }
 0xc70   : > { %v2096_v11 = vmul.f32 0.0078125, %v2094_v2  ;;  %v2092_v12 = vpop.xlane.xlu0 %2091  ;;  %v4656_v2 = vld [vmem:[%s6549_s0 + $0x168] sm:$0xff] }
 0xc71   : > { %v2095_v13 = vmul.f32 0.0078125, %v2092_v12  ;;  %v4674_v12 = vld [vmem:[%s6549_s0 + $0x1f8] sm:$0xff] }
 0xc72   : > { %v2098_v14 = vadd.f32 1e-05, %v2096_v11  ;;  %v4673_v11 = vld [vmem:[%s6549_s0 + $0x1f0] sm:$0xff] }
 0xc73   : > { %v2097_v15 = vadd.f32 1e-05, %v2095_v13  ;;  %v5324_v13 = vpack.c.bf16 %v4656_v2, %v4655_v1  ;;  %v4676_v1 = vld [vmem:[%s6501_s10 + $0x1] ss:$0 sm:$0xff] }
 0xc74   : > { %5447 = vrsqrt.f32 %v2098_v14  ;;  %v5326_v14 = vpack.c.bf16 %v4674_v12, %v4673_v11 }
 0xc75   : > { %5449 = vrsqrt.f32 %v2097_v15  ;;  %v4657_v15 = vld [vmem:[%s6549_s0 + $0x170] sm:$0xff] }
 0xc7e   : > { %v5448_v16 = vpop.eup %5447 }
 0xc7f   : > { %v5450_v17 = vpop.eup %5449  ;;  %v2102_v20 = vmul.f32 %v5448_v16, %v6058_v3  ;;  %v4660_v3 = vld [vmem:[%s6549_s0 + $0x188] sm:$0xff]  ;;  %v4658_v16 = vld [vmem:[%s6549_s0 + $0x178] sm:$0xff] }
 0xc80   : > { %v2101_v19 = vmul.f32 %v5450_v17, %v6061_v4  ;;  %v4659_v4 = vld [vmem:[%s6549_s0 + $0x180] sm:$0xff]  ;;  %v5328_v17 = vpack.c.bf16 %v4658_v16, %v4657_v15 }
 0xc81   : > { %v2112_v24 = vmul.f32 %v4607_v18, %v2102_v20  ;;  %v5298_v26 = vpack.c.bf16 %v4660_v3, %v4659_v4 }
 0xc82   : > { %v2111_v22 = vmul.f32 %v4607_v18, %v2101_v19  ;;  %v4642_v18 = vld [vmem:[%s6550_s1 + $0x2] sm:$0x3] }
 0xc83   : > { %v2122_v25 = vadd.f32 %v4609_v21, %v2112_v24  ;;  %5299 = vmatprep.subr.bf16.mxu0 %v5298_v26  ;;  %v2162_v19 = vrot.slane %v4642_v18, %v942_v8  ;;  %v2166_v20 = vrot.slane %v4642_v18, %v946_v10  ;;  %v5483_v18 = vld [vmem:[%s6551_s4 + $0x8] sm:$0xff] }
 0xc84   : > { %v2121_v23 = vadd.f32 %v4609_v21, %v2111_v22  ;;  %5301 = vmatpush3.bf16.msra.mxu0 %v5300_v29 }
 0xc86   : > { %2234 = vmatmul.mubr.f32.vlgmr.msra.gmra.mrb[16].mxu1 %v2121_v23 }
 0xc87   : > { %2239 = vmatprep.mubr.f32.mxu1 %v5493_v59 }
 0xc8a   : > { %2240 = vmatmul.mubr.f32.gmra.mrb[18].mxu1 %v2122_v25 }
 0xc8b   : > { %5016 = vmatprep.mubr.msk.f32.mxu1 %vm1179_vm2, %v5868_v57  ;;  %v4661_v57 = vld [vmem:[%s6549_s0 + $0x190] sm:$0xff] }
 0xc8c   : > { %v5302_v31 = vpack.c.bf16 %v4662_v30, %v4661_v57 }
 0xc8e   : > { %5303 = vmatprep.subr.bf16.mxu0 %v5302_v31 }
 0xc8f   : > { %5305 = vmatpush3.bf16.msra.mxu0 %v5304_v34 }
 0xc90   : > { %5307 = vmatprep.subr.bf16.mxu0 %v5306_v37 }
 0xc93   : > { %5309 = vmatpush3.bf16.msra.mxu0 %v5308_v40 }
 0xc94   : > { %5311 = vmatprep.subr.bf16.mxu0 %v5310_v45 }
 0xc97   : > { %5313 = vmatpush3.bf16.msra.mxu0 %v5312_v6 }
 0xc98   : > { %5315 = vmatprep.subr.bf16.mxu0 %v5314_v49 }
 0xc9b   : > { %5317 = vmatpush3.bf16.msra.mxu0 %v5316_v52 }
 0xc9c   : > { %5319 = vmatprep.subr.bf16.mxu0 %v5318_v56 }
 0xc9f   : > { %5321 = vmatpush3.bf16.msra.mxu0 %v5320_v63 }
 0xca0   : > { %5323 = vmatprep.subr.bf16.mxu0 %v5322_v0 }
 0xca3   : > { %5325 = vmatpush3.bf16.msra.mxu0 %v5324_v13 }
 0xca4   : > { %5327 = vmatprep.subr.bf16.mxu0 %v5326_v14 }
 0xca7   : > { %5329 = vmatpush3.bf16.msra.mxu0 %v5328_v17 }
 0xd59   : > { %v2235_v21 = vpop.f32.mrb[16].mxu1 }
 0xd5a   : > { %v2236_v22 = vadd.f32 %v2235_v21, %v2162_v19  ;;  %v2237_v23 = vpop.f32.mrb[17].mxu1 }
 0xd5b   : > { %v2238_v24 = vadd.f32 %v2237_v23, %v2166_v20 }
 0xd5c   : > { %v2246_v25 = vmul.f32 %v2236_v22, %v2236_v22 }
 0xd5d   : > { %v2247_v4 = vmul.f32 %v2238_v24, %v2238_v24  ;;  %v2241_v3 = vpop.f32.mrb[18].mxu1 }
 0xd5e   : > { %v2250_v26 = vmul.f32 %v2246_v25, %v2236_v22  ;;  %v2242_v27 = vadd.f32 %v2241_v3, %v2162_v19  ;;  %v2243_v28 = vpop.f32.mrb[19].mxu1  ;;  %v5484_v19 = vld [vmem:[%s6551_s4] sm:$0xff] }
 0xd5f   : > { %v2251_v29 = vmul.f32 %v2247_v4, %v2238_v24  ;;  %v2244_v57 = vadd.f32 %v2243_v28, %v2166_v20  ;;  %v4685_v3 = vld [vmem:[%s6504_s13 + $0x20] sm:$0xff] }
 0xd60   : > { %v2254_v30 = vmul.f32 0.044715, %v2250_v26  ;;  %v2248_v31 = vmul.f32 %v2242_v27, %v2242_v27 }
 0xd61   : > { %v2255_v32 = vmul.f32 0.044715, %v2251_v29  ;;  %v2249_v33 = vmul.f32 %v2244_v57, %v2244_v57 }
 0xd62   : > { %v2258_v8 = vadd.f32 %v2254_v30, %v2236_v22  ;;  %v2252_v34 = vmul.f32 %v2248_v31, %v2242_v27  ;;  %v2569_v30 = vpop.permute.xlu1 %2568 }
 0xd63   : > { %v2259_v5 = vadd.f32 %v2255_v32, %v2238_v24  ;;  %v2253_v10 = vmul.f32 %v2249_v33, %v2244_v57 }
 0xd64   : > { %v2262_v35 = vmul.f32 0.7978846, %v2258_v8  ;;  %v2256_v36 = vmul.f32 0.044715, %v2252_v34 }
 0xd65   : > { %v2263_v37 = vmul.f32 0.7978846, %v2259_v5  ;;  %v2257_v38 = vmul.f32 0.044715, %v2253_v10 }
 0xd66   : > { %5451 = vtanh.f32 %v2262_v35  ;;  %v2260_v39 = vadd.f32 %v2256_v36, %v2242_v27  ;;  %v2579_v35 = vpop.permute.xlu1 %2578 }
 0xd67   : > { %v2261_v40 = vadd.f32 %v2257_v38, %v2244_v57  ;;  %5453 = vtanh.f32 %v2263_v37 }
 0xd68   : > { %v2264_v41 = vmul.f32 0.7978846, %v2260_v39  ;;  %v4686_v39 = vld [vmem:[%s6504_s13 + $0x28] sm:$0xff] }
 0xd69   : > { %v2265_v44 = vmul.f32 0.7978846, %v2261_v40  ;;  %v4687_v40 = vld [vmem:[%s6504_s13 + $0x30] sm:$0xff] }
 0xd6a   : > { %5455 = vtanh.f32 %v2264_v41  ;;  %v4688_v41 = vld [vmem:[%s6504_s13 + $0x38] sm:$0xff] }
 0xd6b   : > { %5457 = vtanh.f32 %v2265_v44  ;;  %v4697_v44 = vld [vmem:[%s6506_s15 + $0x10] sm:$0xff] }
 0xd70   : > { %v5452_v45 = vpop.eup %5451 }
 0xd71   : > { %v5454_v7 = vpop.eup %5453  ;;  %v2270_v46 = vadd.f32 1.0, %v5452_v45 }
 0xd72   : > { %v2271_v6 = vadd.f32 1.0, %v5454_v7  ;;  %v2601_v7 = vpop.permute.xlu1 %2600 }
 0xd73   : > { %v2274_v47 = vmul.f32 0.5, %v2270_v46 }
 0xd74   : > { %v5456_v48 = vpop.eup %5455  ;;  %v2275_v49 = vmul.f32 0.5, %v2271_v6 }
 0xd75   : > { %v5458_v50 = vpop.eup %5457  ;;  %v2272_v51 = vadd.f32 1.0, %v5456_v48  ;;  %v2278_v54 = vmul.f32 %v2274_v47, %v2236_v22 }
 0xd76   : > { %v2279_v52 = vmul.f32 %v2275_v49, %v2238_v24  ;;  %v2273_v53 = vadd.f32 1.0, %v5458_v50 }
 0xd77   : > { %v2276_v55 = vmul.f32 0.5, %v2272_v51 }
 0xd78   : > { %2387 = vmatprep.mubr.f32.mxu0 %v2279_v52  ;;  %v2277_v56 = vmul.f32 0.5, %v2273_v53  ;;  %v2611_v53 = vpop.permute.xlu1 %2610 }
 0xd79   : > { %2388 = vmatmul.mubr.f32.vlgmr.msra.gmra.mrb[14].mxu0 %v2278_v54  ;;  %v2280_v61 = vmul.f32 %v2276_v55, %v2242_v27 }
 0xd7a   : > { %v2281_v60 = vmul.f32 %v2277_v56, %v2244_v57  ;;  %v2564_v57 = vpop.permute.xlu0 %2563 }
 0xd7c   : > { %2392 = vmatprep.mubr.f32.mxu0 %v2281_v60 }
 0xd7d   : > { %2393 = vmatmul.mubr.f32.gmra.mrb[16].mxu0 %v2280_v61 }
 0xd7e   : > { %5030 = vmatprep.mubr.msk.f32.mxu0 %vm1179_vm2, %v4685_v3  ;;  %v2584_v5 = vpop.permute.xlu0 %2583 }
 0xd82   : > { %v2606_v45 = vpop.permute.xlu0 %2605 }
 0xd86   : > { %v2616_v50 = vpop.permute.xlu0 %2615 }
 0xe4c   : > { %v4859_v62 = vpop.f32.mrb[14].mxu0 }
 0xe4d   : > { %v4860_v63 = vpop.f32.mrb[15].mxu0 }
 0xe4e   : > { %v4861_v0 = vadd.f32 %v4860_v63, %v4859_v62 }
 0xe50   : > { %v4862_v2 = vpop.f32.mrb[16].mxu0  ;;  %v2390_v12 = vadd.f32 %v4861_v0, %v4676_v1 }
 0xe51   : > { %v4863_v11 = vpop.f32.mrb[17].mxu0 }
 0xe52   : > { %v4864_v13 = vadd.f32 %v4863_v11, %v4862_v2  ;;  %v2398_v15 = vadd.f32 %v2390_v12, %v6017_v43 }
 0xe54   : > { %v2395_v14 = vadd.f32 %v4864_v13, %v4676_v1 }
 0xe56   : > { %v2399_v16 = vadd.f32 %v2395_v14, %v6014_v42 }
 0xe58   : > { %v5330_v17 = vpack.c.bf16 %v2399_v16, %v2398_v15 }
 0xe5a   : > { %5331 = vmatprep.subr.bf16.mxu1 %v5330_v17 }
 0xe5b   : > { %5333 = vmatpush3.bf16.msra.mxu1 %v5330_v17 }
 0xe5e   : > { %5017 = vmatmul.mubr.msk.f32.vlgmr.msra.gmra.mrb[20].mxu1 %vm1179_vm2, %v5483_v18 }
 0xe5f   : > { %5023 = vmatprep.mubr.msk.f32.mxu1 %vm1179_vm2, %v5484_v19 }
 0xf31   : > { %v5018_v20 = vpop.f32.mrb[20].mxu1 }
 0xf32   : > { %v2476_v21 = vsub.f32 %v2399_v16, %v5018_v20  ;;  %v2466_v22 = vpop.f32.mrb[21].mxu1 }
 0xf33   : > { %v2475_v23 = vsub.f32 %v2398_v15, %v2466_v22 }
 0xf34   : > { %v2478_v24 = vmul.f32 %v2476_v21, %v2476_v21 }
 0xf35   : > { %v2477_v25 = vmul.f32 %v2475_v23, %v2475_v23 }
 0xf37   : > { %v5334_v4 = vpack.c.bf16 %v2478_v24, %v2477_v25 }
 0xf39   : > { %5335 = vmatprep.subr.bf16.mxu1 %v5334_v4 }
 0xf3a   : > { %5337 = vmatpush3.bf16.msra.mxu1 %v5334_v4 }
 0xf3d   : > { %5024 = vmatmul.mubr.msk.f32.vlgmr.msra.gmra.mrb[22].mxu1 %vm1179_vm2, %v5483_v18 }
 0xf3e   : > { %5044 = vmatprep.mubr.msk.f32.mxu1 %vm1547_vm3, %v4697_v44 }
0x1010   : > { %v5025_v26 = vpop.f32.mrb[22].mxu1 }
0x1011   : > { %v2551_v27 = vadd.f32 1e-05, %v5025_v26  ;;  %v2545_v28 = vpop.f32.mrb[23].mxu1 }
0x1012   : > { %v2546_v29 = vadd.f32 1e-05, %v2545_v28 }
0x1013   : > { %5459 = vrsqrt.f32 %v2551_v27 }
0x1014   : > { %5461 = vrsqrt.f32 %v2546_v29 }
0x101d   : > { %v5460_v31 = vpop.eup %5459 }
0x101e   : > { %v5462_v32 = vpop.eup %5461  ;;  %v2557_v33 = vmul.f32 %v5460_v31, %v2476_v21 }
0x101f   : > { %v2556_v8 = vmul.f32 %v5462_v32, %v2475_v23 }
0x1020   : > { %v2572_v34 = vmul.f32 %v2569_v30, %v2557_v33 }
0x1021   : > { %v2571_v10 = vmul.f32 %v2564_v57, %v2556_v8 }
0x1022   : > { %v2587_v36 = vadd.f32 %v2584_v5, %v2572_v34 }
0x1023   : > { %v2586_v37 = vadd.f32 %v2579_v35, %v2571_v10  ;;  %v4698_v10 = vld [vmem:[%s6506_s15 + $0x18] sm:$0xff]  ;;  %v2765_v35 = vpop.permute.xlu0 %2764 }
0x1025   : > { %v5338_v38 = vpack.c.bf16 %v2587_v36, %v2586_v37  ;;  %v2760_v37 = vpop.permute.xlu1 %2759 }
0x1027   : > { %5339 = vmatprep.subr.bf16.mxu0 %v5338_v38 }
0x1028   : > { %5341 = vmatpush3.bf16.msra.mxu0 %v5338_v38 }
0x102b   : > { %5031 = vmatmul.mubr.msk.f32.vlgmr.msra.gmra.mrb[18].mxu0 %vm1179_vm2, %v4686_v39 }
0x102c   : > { %5033 = vmatprep.mubr.msk.f32.mxu0 %vm1179_vm2, %v4687_v40 }
0x102f   : > { %5034 = vmatmul.mubr.msk.f32.gmra.mrb[20].mxu0 %vm1179_vm2, %v4688_v41 }
0x1030   : > { %5051 = vmatprep.mubr.msk.f32.mxu0 %vm1179_vm2, %v5971_v58 }
0x10fe   : > { %v5032_v46 = vpop.f32.mrb[18].mxu0 }
0x10ff   : > { %v2702_v6 = vadd.f32 %v5032_v46, %v2606_v45  ;;  %v2696_v47 = vpop.f32.mrb[19].mxu0 }
0x1100   : > { %v2697_v48 = vadd.f32 %v2696_v47, %v2601_v7 }
0x1101   : > { %v2716_v49 = vmul.f32 %v2702_v6, %v2702_v6 }
0x1102   : > { %v2715_v51 = vmul.f32 %v2697_v48, %v2697_v48  ;;  %v5035_v52 = vpop.f32.mrb[20].mxu0 }
0x1103   : > { %v2720_v54 = vmul.f32 %v2716_v49, %v2702_v6  ;;  %v2712_v55 = vadd.f32 %v5035_v52, %v2616_v50  ;;  %v2706_v56 = vpop.f32.mrb[21].mxu0  ;;  %v4711_v50 = vld [vmem:[%s6510_s19 + $0x20] sm:$0xff] }
0x1104   : > { %v2719_v60 = vmul.f32 %v2715_v51, %v2697_v48  ;;  %v2707_v61 = vadd.f32 %v2706_v56, %v2611_v53  ;;  %v3014_v56 = vpop.permute.xlu1 %3013 }
0x1105   : > { %v2724_v62 = vmul.f32 0.044715, %v2720_v54  ;;  %v2718_v63 = vmul.f32 %v2712_v55, %v2712_v55 }
0x1106   : > { %v2723_v0 = vmul.f32 0.044715, %v2719_v60  ;;  %v2717_v1 = vmul.f32 %v2707_v61, %v2707_v61 }
0x1107   : > { %v2728_v2 = vadd.f32 %v2724_v62, %v2702_v6  ;;  %v2722_v11 = vmul.f32 %v2718_v63, %v2712_v55 }
0x1108   : > { %v2727_v12 = vadd.f32 %v2723_v0, %v2697_v48  ;;  %v2721_v13 = vmul.f32 %v2717_v1, %v2707_v61 }
0x1109   : > { %v2732_v14 = vmul.f32 0.7978846, %v2728_v2  ;;  %v2726_v15 = vmul.f32 0.044715, %v2722_v11  ;;  %v3029_v2 = vpop.permute.xlu1 %3028 }
0x110a   : > { %v2731_v16 = vmul.f32 0.7978846, %v2727_v12  ;;  %v2725_v17 = vmul.f32 0.044715, %v2721_v13 }
0x110b   : > { %5463 = vtanh.f32 %v2732_v14  ;;  %v2730_v18 = vadd.f32 %v2726_v15, %v2712_v55  ;;  %v4712_v14 = vld [vmem:[%s6510_s19 + $0x28] sm:$0xff]  ;;  %v4713_v15 = vld [vmem:[%s6510_s19 + $0x30] sm:$0xff] }
0x110c   : > { %5465 = vtanh.f32 %v2731_v16  ;;  %v2729_v19 = vadd.f32 %v2725_v17, %v2707_v61  ;;  %v4714_v16 = vld [vmem:[%s6510_s19 + $0x38] sm:$0xff]  ;;  %v4723_v17 = vld [vmem:[%s6512_s21 + $0x10] sm:$0xff] }
0x110d   : > { %v2734_v20 = vmul.f32 0.7978846, %v2730_v18 }
0x110e   : > { %v2733_v21 = vmul.f32 0.7978846, %v2729_v19  ;;  %v3051_v19 = vpop.permute.xlu1 %3050 }
0x110f   : > { %5467 = vtanh.f32 %v2734_v20 }
0x1110   : > { %5469 = vtanh.f32 %v2733_v21 }
0x1115   : > { %v5464_v22 = vpop.eup %5463 }
0x1116   : > { %v5466_v23 = vpop.eup %5465  ;;  %v2740_v24 = vadd.f32 1.0, %v5464_v22 }
0x1117   : > { %v2739_v25 = vadd.f32 1.0, %v5466_v23 }
0x1118   : > { %v2744_v4 = vmul.f32 0.5, %v2740_v24 }
0x1119   : > { %v5468_v3 = vpop.eup %5467  ;;  %v2743_v26 = vmul.f32 0.5, %v2739_v25 }
0x111a   : > { %v5470_v27 = vpop.eup %5469  ;;  %v2748_v28 = vmul.f32 %v2744_v4, %v2702_v6  ;;  %v2742_v29 = vadd.f32 1.0, %v5468_v3 }
0x111b   : > { %v2747_v57 = vmul.f32 %v2743_v26, %v2697_v48  ;;  %v2741_v30 = vadd.f32 1.0, %v5470_v27  ;;  %v3061_v26 = vpop.permute.xlu1 %3060 }
0x111c   : > { %v2746_v31 = vmul.f32 0.5, %v2742_v29 }
0x111d   : > { %v5342_v32 = vpack.c.bf16 %v2748_v28, %v2747_v57  ;;  %v2745_v33 = vmul.f32 0.5, %v2741_v30 }
0x111e   : > { %v2750_v8 = vmul.f32 %v2746_v31, %v2712_v55  ;;  %v3019_v55 = vpop.permute.xlu0 %3018 }
0x111f   : > { %5343 = vmatprep.subr.bf16.mxu1 %v5342_v32  ;;  %v2749_v34 = vmul.f32 %v2745_v33, %v2707_v61 }
0x1120   : > { %5345 = vmatpush3.bf16.msra.mxu1 %v5342_v32 }
0x1121   : > { %v5346_v5 = vpack.c.bf16 %v2750_v8, %v2749_v34 }
0x1123   : > { %5347 = vmatprep.subr.bf16.mxu1 %v5346_v5 }
0x1124   : > { %5349 = vmatpush3.bf16.msra.mxu1 %v5346_v5 }
0x1127   : > { %5045 = vmatmul.mubr.msk.f32.vlgmr.msra.gmra.mrb[24].mxu1 %vm1547_vm3, %v4698_v10 }
0x1128   : > { %5058 = vmatprep.mubr.msk.f32.mxu1 %vm1179_vm2, %v5971_v58 }
0x11fa   : > { %v5046_v36 = vpop.f32.mrb[24].mxu1 }
0x11fb   : > { %v2845_v38 = vadd.f32 %v5046_v36, %v2765_v35  ;;  %v2839_v39 = vpop.f32.mrb[25].mxu1 }
0x11fc   : > { %v2840_v40 = vadd.f32 %v2839_v39, %v2760_v37 }
0x11fd   : > { %v2849_v41 = vadd.f32 %v2845_v38, %v6014_v42 }
0x11fe   : > { %v2848_v44 = vadd.f32 %v2840_v40, %v6017_v43 }
0x1200   : > { %v5350_v45 = vpack.c.bf16 %v2849_v41, %v2848_v44 }
0x1202   : > { %5351 = vmatprep.subr.bf16.mxu0 %v5350_v45 }
0x1203   : > { %5353 = vmatpush3.bf16.msra.mxu0 %v5350_v45 }
0x1206   : > { %5052 = vmatmul.mubr.msk.f32.vlgmr.msra.gmra.mrb[22].mxu0 %vm1179_vm2, %v5982_v9 }
0x1207   : > { %5065 = vmatprep.mubr.msk.f32.mxu0 %vm1179_vm2, %v4711_v50 }
0x12d9   : > { %v5053_v7 = vpop.f32.mrb[22].mxu0 }
0x12da   : > { %v2926_v46 = vsub.f32 %v2849_v41, %v5053_v7  ;;  %v2916_v6 = vpop.f32.mrb[23].mxu0 }
0x12db   : > { %v2925_v58 = vsub.f32 %v2848_v44, %v2916_v6 }
0x12dc   : > { %v2928_v47 = vmul.f32 %v2926_v46, %v2926_v46 }
0x12dd   : > { %v2927_v48 = vmul.f32 %v2925_v58, %v2925_v58 }
0x12df   : > { %v5354_v49 = vpack.c.bf16 %v2928_v47, %v2927_v48 }
0x12e1   : > { %5355 = vmatprep.subr.bf16.mxu1 %v5354_v49 }
0x12e2   : > { %5357 = vmatpush3.bf16.msra.mxu1 %v5354_v49 }
0x12e5   : > { %5059 = vmatmul.mubr.msk.f32.vlgmr.msra.gmra.mrb[26].mxu1 %vm1179_vm2, %v5982_v9  ;;  %v3034_v9 = vpop.permute.xlu0 %3033 }
0x12e6   : > { %5079 = vmatprep.mubr.msk.f32.mxu1 %vm1547_vm3, %v4723_v17  ;;  %v4733_v17 = vld [vmem:[%s6514_s23 + $0x28] sm:$0xff] }
0x12e9   : > { %v3056_v18 = vpop.permute.xlu0 %3055 }
0x12ed   : > { %v3066_v25 = vpop.permute.xlu0 %3065 }
0x13b8   : > { %v5060_v51 = vpop.f32.mrb[26].mxu1 }
0x13b9   : > { %v3001_v52 = vadd.f32 1e-05, %v5060_v51  ;;  %v2995_v53 = vpop.f32.mrb[27].mxu1 }
0x13ba   : > { %v2996_v54 = vadd.f32 1e-05, %v2995_v53 }
0x13bb   : > { %5471 = vrsqrt.f32 %v3001_v52 }
0x13bc   : > { %5473 = vrsqrt.f32 %v2996_v54 }
0x13c5   : > { %v5472_v60 = vpop.eup %5471 }
0x13c6   : > { %v5474_v61 = vpop.eup %5473  ;;  %v3007_v62 = vmul.f32 %v5472_v60, %v2926_v46 }
0x13c7   : > { %v3006_v63 = vmul.f32 %v5474_v61, %v2925_v58 }
0x13c8   : > { %v3022_v0 = vmul.f32 %v3019_v55, %v3007_v62 }
0x13c9   : > { %v3021_v1 = vmul.f32 %v3014_v56, %v3006_v63 }
0x13ca   : > { %v3037_v11 = vadd.f32 %v3034_v9, %v3022_v0  ;;  %v4724_v0 = vld [vmem:[%s6512_s21 + $0x18] sm:$0xff]  ;;  %v3301_v9 = vld [vmem:[%s6514_s23] sm:$0xff] }
0x13cb   : > { %v3036_v12 = vadd.f32 %v3029_v2, %v3021_v1  ;;  %v4732_v1 = vld [vmem:[%s6514_s23 + $0x20] sm:$0xff] }
0x13cd   : > { %v5358_v13 = vpack.c.bf16 %v3037_v11, %v3036_v12  ;;  %v3210_v11 = vpop.permute.xlu1 %3209 }
0x13cf   : > { %5359 = vmatprep.subr.bf16.mxu0 %v5358_v13 }
0x13d0   : > { %5361 = vmatpush3.bf16.msra.mxu0 %v5358_v13 }
0x13d1   : > { %5082 = vmatprep.subr.mxu0 %v5493_v59 }
0x13d3   : > { %5066 = vmatmul.mubr.msk.f32.vlgmr.msra.gmra.mrb[24].mxu0 %vm1179_vm2, %v4712_v14 }
0x13d4   : > { %5068 = vmatprep.mubr.msk.f32.mxu0 %vm1179_vm2, %v4713_v15  ;;  %v4729_v15 = vld [vmem:[%s6514_s23 + $0x8] sm:$0xff] }
0x13d7   : > { %5069 = vmatmul.mubr.msk.f32.gmra.mrb[26].mxu0 %vm1179_vm2, %v4714_v16 }
0x13d8   : > { %5084 = vmatprep.mubr.msk.f32.mxu0 %vm5495_vm4, %v5493_v59 }
0x13d9   : > { %5083 = vmatpush3.xpose.msra.mxu0 %v3301_v9 }
0x13da   : > { %5087 = vmatprep.subr.mxu0 %v5493_v59 }
0x14a6   : > { %v5067_v20 = vpop.f32.mrb[24].mxu0 }
0x14a7   : > { %v3152_v21 = vadd.f32 %v5067_v20, %v3056_v18  ;;  %v3146_v22 = vpop.f32.mrb[25].mxu0  ;;  %v4730_v18 = vld [vmem:[%s6514_s23 + $0x10] sm:$0xff] }
0x14a8   : > { %v3147_v23 = vadd.f32 %v3146_v22, %v3051_v19  ;;  %v4734_v20 = vld [vmem:[%s6514_s23 + $0x30] sm:$0xff]  ;;  %v4731_v22 = vld [vmem:[%s6514_s23 + $0x18] sm:$0xff] }
0x14a9   : > { %v3166_v24 = vmul.f32 %v3152_v21, %v3152_v21 }
0x14aa   : > { %v3165_v4 = vmul.f32 %v3147_v23, %v3147_v23  ;;  %v5070_v3 = vpop.f32.mrb[26].mxu0 }
0x14ab   : > { %v3170_v27 = vmul.f32 %v3166_v24, %v3152_v21  ;;  %v3162_v28 = vadd.f32 %v5070_v3, %v3066_v25  ;;  %v3156_v29 = vpop.f32.mrb[27].mxu0  ;;  %v4735_v24 = vld [vmem:[%s6514_s23 + $0x38] sm:$0xff]  ;;  %v3215_v25 = vpop.permute.xlu0 %3214 }
0x14ac   : > { %v3169_v57 = vmul.f32 %v3165_v4, %v3147_v23  ;;  %v3157_v30 = vadd.f32 %v3156_v29, %v3061_v26  ;;  %v4736_v26 = vld [vmem:[%s6514_s23 + $0x40] sm:$0xff] }
0x14ad   : > { %v3174_v31 = vmul.f32 0.044715, %v3170_v27  ;;  %v3168_v32 = vmul.f32 %v3162_v28, %v3162_v28  ;;  %v4740_v29 = vld [vmem:[%s6514_s23 + $0x60] sm:$0xff] }
0x14ae   : > { %v3173_v33 = vmul.f32 0.044715, %v3169_v57  ;;  %v3167_v8 = vmul.f32 %v3157_v30, %v3157_v30  ;;  %v4737_v57 = vld [vmem:[%s6514_s23 + $0x48] sm:$0xff] }
0x14af   : > { %v3178_v34 = vadd.f32 %v3174_v31, %v3152_v21  ;;  %v3172_v5 = vmul.f32 %v3168_v32, %v3162_v28  ;;  %v4738_v32 = vld [vmem:[%s6514_s23 + $0x50] sm:$0xff] }
0x14b0   : > { %v3177_v10 = vadd.f32 %v3173_v33, %v3147_v23  ;;  %v3171_v35 = vmul.f32 %v3167_v8, %v3157_v30  ;;  %v4742_v8 = vld [vmem:[%s6514_s23 + $0x70] sm:$0xff] }
0x14b1   : > { %v3182_v36 = vmul.f32 0.7978846, %v3178_v34  ;;  %v3176_v37 = vmul.f32 0.044715, %v3172_v5  ;;  %v4739_v5 = vld [vmem:[%s6514_s23 + $0x58] sm:$0xff] }
0x14b2   : > { %v3181_v38 = vmul.f32 0.7978846, %v3177_v10  ;;  %v3175_v39 = vmul.f32 0.044715, %v3171_v35  ;;  %v4743_v35 = vld [vmem:[%s6514_s23 + $0x78] sm:$0xff] }
0x14b3   : > { %5475 = vtanh.f32 %v3182_v36  ;;  %v3180_v40 = vadd.f32 %v3176_v37, %v3162_v28 }
0x14b4   : > { %5477 = vtanh.f32 %v3181_v38  ;;  %v3179_v41 = vadd.f32 %v3175_v39, %v3157_v30  ;;  %v3599_v39 = vld [vmem:[%s6554_s3 + $0x1] sm:$0x1] }
0x14b5   : > { %v3184_v44 = vmul.f32 0.7978846, %v3180_v40 }
0x14b6   : > { %v3183_v45 = vmul.f32 0.7978846, %v3179_v41  ;;  %v3300_v41 = vld [vmem:[%s6554_s3] sm:$0x1] }
0x14b7   : > { %5479 = vtanh.f32 %v3184_v44 }
0x14b8   : > { %5481 = vtanh.f32 %v3183_v45 }
0x14bd   : > { %v5476_v7 = vpop.eup %5475 }
0x14be   : > { %v5478_v46 = vpop.eup %5477  ;;  %v3190_v6 = vadd.f32 1.0, %v5476_v7 }
0x14bf   : > { %v3189_v58 = vadd.f32 1.0, %v5478_v46 }
0x14c0   : > { %v3194_v47 = vmul.f32 0.5, %v3190_v6 }
0x14c1   : > { %v5480_v48 = vpop.eup %5479  ;;  %v3193_v49 = vmul.f32 0.5, %v3189_v58  ;;  %v3900_v58 = vld [vmem:[%s6554_s3 + $0x2] sm:$0x1] }
0x14c2   : > { %v5482_v50 = vpop.eup %5481  ;;  %v3198_v51 = vmul.f32 %v3194_v47, %v3152_v21  ;;  %v3192_v52 = vadd.f32 1.0, %v5480_v48  ;;  %v4200_v48 = vld [vmem:[%s6554_s3 + $0x3] sm:$0x1] }
0x14c3   : > { %v3197_v53 = vmul.f32 %v3193_v49, %v3147_v23  ;;  %v3191_v54 = vadd.f32 1.0, %v5482_v50 }
0x14c4   : > { %v3196_v55 = vmul.f32 0.5, %v3192_v52 }
0x14c5   : > { %v5362_v56 = vpack.c.bf16 %v3198_v51, %v3197_v53  ;;  %v3195_v60 = vmul.f32 0.5, %v3191_v54 }
0x14c6   : > { %v3200_v61 = vmul.f32 %v3196_v55, %v3162_v28 }
0x14c7   : > { %5363 = vmatprep.subr.bf16.mxu1 %v5362_v56  ;;  %v3199_v62 = vmul.f32 %v3195_v60, %v3157_v30  ;;  %v4741_v30 = vld [vmem:[%s6514_s23 + $0x68] sm:$0xff] }
0x14c8   : > { %5365 = vmatpush3.bf16.msra.mxu1 %v5362_v56 }
0x14c9   : > { %v5366_v63 = vpack.c.bf16 %v3200_v61, %v3199_v62 }
0x14cb   : > { %5367 = vmatprep.subr.bf16.mxu1 %v5366_v63 }
0x14cc   : > { %5369 = vmatpush3.bf16.msra.mxu1 %v5366_v63 }
0x14cd   : > { %5102 = vmatprep.subr.mxu1 %v5493_v59 }
0x14cf   : > { %5080 = vmatmul.mubr.msk.f32.vlgmr.msra.gmra.mrb[28].mxu1 %vm1547_vm3, %v4724_v0 }
0x14d0   : > { %5104 = vmatprep.mubr.msk.f32.mxu1 %vm5495_vm4, %v5493_v59 }
0x14d5   : > { %5103 = vmatpush3.xpose.msra.mxu1 %v4732_v1 }
0x14d6   : > { %5107 = vmatprep.subr.mxu1 %v5493_v59 }
0x15a2   : > { %v5081_v2 = vpop.f32.mrb[28].mxu1 }
0x15a3   : > { %v3289_v12 = vpop.f32.mrb[29].mxu1  ;;  %v3295_v4 = vadd.f32 %v5081_v2, %v3215_v25 }
0x15a4   : > { %v3290_v13 = vadd.f32 %v3289_v12, %v3210_v11 }
0x15a5   : > { %v3299_v27 = vadd.f32 %v3295_v4, %v6014_v42 }
0x15a6   : > { %v3298_v14 = vadd.f32 %v3290_v13, %v6017_v43 }
0x15a7   : > { %v4203_v42 = vrot.slane %v3299_v27, 4  ;;  %v3977_v31 = vrot.slane %v3299_v27, 1  ;;  %v4278_v33 = vrot.slane %v3299_v27, 5  ;;  %v4052_v34 = vrot.slane %v3299_v27, 2 }
0x15a8   : > { %5085 = vmatmul.mubr.f32.vlgmr.msra.gmra.mrb[28].mxu0 %v3298_v14  ;;  %v3602_v16 = vrot.slane %v3298_v14, 4  ;;  %v3376_v43 = vrot.slane %v3298_v14, 1  ;;  %v3677_v19 = vrot.slane %v3298_v14, 5  ;;  %v3451_v21 = vrot.slane %v3298_v14, 2 }
0x15a9   : > { %5088 = vmatpush3.xpose.msra.mxu0 %v4729_v15  ;;  %5089 = vmatprep.mubr.msk.f32.mxu0 %vm5495_vm4, %v5493_v59  ;;  %v3752_v23 = vrot.slane %v3298_v14, 6  ;;  %v3526_v3 = vrot.slane %v3298_v14, 3  ;;  %v3827_v28 = vrot.slane %v3298_v14, 7  ;;  %v4353_v10 = vrot.slane %v3299_v27, 6 }
0x15aa   : > { %5105 = vmatmul.mubr.f32.vlgmr.msra.gmra.mrb[30].mxu1 %v3602_v16  ;;  %5092 = vmatprep.subr.mxu0 %v5493_v59  ;;  %v4127_v36 = vrot.slane %v3299_v27, 3  ;;  %v4428_v37 = vrot.slane %v3299_v27, 7 }
0x15ab   : > { %5108 = vmatpush3.xpose.msra.mxu1 %v4733_v17  ;;  %5109 = vmatprep.mubr.msk.f32.mxu1 %vm5495_vm4, %v5493_v59 }
0x15ac   : > { %5112 = vmatprep.subr.mxu1 %v5493_v59 }
0x15b0   : > { %5090 = vmatmul.mubr.f32.vlgmr.msra.gmra.mrb[28].mxu0 %v3376_v43 }
0x15b1   : > { %5093 = vmatpush3.xpose.msra.mxu0 %v4730_v18  ;;  %5094 = vmatprep.mubr.msk.f32.mxu0 %vm5495_vm4, %v5493_v59 }
0x15b2   : > { %5110 = vmatmul.mubr.f32.vlgmr.msra.gmra.mrb[30].mxu1 %v3677_v19  ;;  %5097 = vmatprep.subr.mxu0 %v5493_v59 }
0x15b3   : > { %5113 = vmatpush3.xpose.msra.mxu1 %v4734_v20  ;;  %5114 = vmatprep.mubr.msk.f32.mxu1 %vm5495_vm4, %v5493_v59 }
0x15b4   : > { %5117 = vmatprep.subr.mxu1 %v5493_v59 }
0x15b8   : > { %5095 = vmatmul.mubr.f32.vlgmr.msra.gmra.mrb[28].mxu0 %v3451_v21 }
0x15b9   : > { %5098 = vmatpush3.xpose.msra.mxu0 %v4731_v22  ;;  %5099 = vmatprep.mubr.msk.f32.mxu0 %vm5495_vm4, %v5493_v59 }
0x15ba   : > { %5115 = vmatmul.mubr.f32.vlgmr.msra.gmra.mrb[30].mxu1 %v3752_v23  ;;  %5122 = vmatprep.subr.mxu0 %v5493_v59 }
0x15bb   : > { %5118 = vmatpush3.xpose.msra.mxu1 %v4735_v24  ;;  %5119 = vmatprep.mubr.msk.f32.mxu1 %vm5495_vm4, %v5493_v59 }
0x15bc   : > { %5142 = vmatprep.subr.mxu1 %v5493_v59 }
0x15c0   : > { %5100 = vmatmul.mubr.f32.vlgmr.msra.gmra.mrb[28].mxu0 %v3526_v3 }
0x15c1   : > { %5123 = vmatpush3.xpose.msra.mxu0 %v4736_v26  ;;  %5124 = vmatprep.mubr.msk.f32.mxu0 %vm5495_vm4, %v5493_v59 }
0x15c2   : > { %5120 = vmatmul.mubr.f32.vlgmr.msra.gmra.mrb[30].mxu1 %v3827_v28  ;;  %5127 = vmatprep.subr.mxu0 %v5493_v59 }
0x15c3   : > { %5143 = vmatpush3.xpose.msra.mxu1 %v4740_v29  ;;  %5144 = vmatprep.mubr.msk.f32.mxu1 %vm5495_vm4, %v5493_v59 }
0x15c4   : > { %5125 = vmatmul.mubr.f32.vlgmr.msra.gmra.mrb[30].mxu0 %v3299_v27  ;;  %5147 = vmatprep.subr.mxu1 %v5493_v59 }
0x15c5   : > { %5128 = vmatpush3.xpose.msra.mxu0 %v4737_v57  ;;  %5129 = vmatprep.mubr.msk.f32.mxu0 %vm5495_vm4, %v5493_v59 }
0x15c6   : > { %5145 = vmatmul.mubr.f32.vlgmr.msra.gmra.mrb[32].mxu1 %v4203_v42  ;;  %5132 = vmatprep.subr.mxu0 %v5493_v59 }
0x15c7   : > { %5148 = vmatpush3.xpose.msra.mxu1 %v4741_v30  ;;  %5149 = vmatprep.mubr.msk.f32.mxu1 %vm5495_vm4, %v5493_v59 }
0x15c8   : > { %5152 = vmatprep.subr.mxu1 %v5493_v59 }
0x15cc   : > { %5130 = vmatmul.mubr.f32.vlgmr.msra.gmra.mrb[30].mxu0 %v3977_v31 }
0x15cd   : > { %5133 = vmatpush3.xpose.msra.mxu0 %v4738_v32  ;;  %5134 = vmatprep.mubr.msk.f32.mxu0 %vm5495_vm4, %v5493_v59 }
0x15ce   : > { %5150 = vmatmul.mubr.f32.vlgmr.msra.gmra.mrb[32].mxu1 %v4278_v33  ;;  %5137 = vmatprep.subr.mxu0 %v5493_v59 }
0x15cf   : > { %5153 = vmatpush3.xpose.msra.mxu1 %v4742_v8  ;;  %5154 = vmatprep.mubr.msk.f32.mxu1 %vm5495_vm4, %v5493_v59 }
0x15d0   : > { %5157 = vmatprep.subr.mxu1 %v5493_v59 }
0x15d4   : > { %5135 = vmatmul.mubr.f32.vlgmr.msra.gmra.mrb[30].mxu0 %v4052_v34 }
0x15d5   : > { %5138 = vmatpush3.xpose.msra.mxu0 %v4739_v5  ;;  %5139 = vmatprep.mubr.msk.f32.mxu0 %vm5495_vm4, %v5493_v59 }
0x15d6   : > { %5155 = vmatmul.mubr.f32.vlgmr.msra.gmra.mrb[32].mxu1 %v4353_v10 }
0x15d7   : > { %5158 = vmatpush3.xpose.msra.mxu1 %v4743_v35  ;;  %5159 = vmatprep.mubr.msk.f32.mxu1 %vm5495_vm4, %v5493_v59 }
0x15dc   : > { %5140 = vmatmul.mubr.f32.vlgmr.msra.gmra.mrb[30].mxu0 %v4127_v36 }
0x15de   : > { %5160 = vmatmul.mubr.f32.vlgmr.msra.gmra.mrb[32].mxu1 %v4428_v37 }
0x1693   : > { %v3594_v38 = vpop.f32.mrb[28].mxu0 }
0x1694   : > { %v5101_v40 = vpop.f32.mrb[29].mxu0  ;;  %v5370_v59 = vadd.f32 %v3594_v38, %v3300_v41 }
0x1695   : > { %v3895_v44 = vpop.f32.mrb[30].mxu1 }
0x1696   : > { %v5371_v45 = vadd.f32 %v3895_v44, %v3599_v39  ;;  %v5121_v7 = vpop.f32.mrb[31].mxu1 }
0x1698   : > { %v4502_v46 = vrot.slane %v5371_v45, 7 }
0x169a   : > { %v4511_v6 = vsel %vm4510_vm5, %v5370_v59, %v4502_v46 }
0x16af   : > { %v4195_v47 = vpop.f32.mrb[30].mxu0 }
0x16b0   : > { %v5372_v49 = vadd.f32 %v4195_v47, %v3900_v58  ;;  %v5141_v50 = vpop.f32.mrb[31].mxu0 }
0x16b1   : > { %v4496_v51 = vpop.f32.mrb[32].mxu1 }
0x16b2   : > { %v4505_v52 = vrot.slane %v5372_v49, 6  ;;  %v5373_v53 = vadd.f32 %v4496_v51, %v4200_v48  ;;  %v5161_v54 = vpop.f32.mrb[33].mxu1 }
0x16b4   : > { %v4513_v55 = vsel %vm4512_vm6, %v4511_v6, %v4505_v52  ;;  %v4508_v56 = vrot.slane %v5373_v53, 5 }
0x16b6   : > { %v4515_v60 = vsel %vm4514_vm7, %v4513_v55, %v4508_v56 }
0x16b7   : > { %4517 = vst.msk [vmem:[%s764_s26] sm:$0xf] %vm4516_vm8, %v4515_v60 }
0x16b8 PF: > { %s6556_s24 = sld [smem:[#allocation2_spill]] }
0x16be   : > { %s35_s29 = sadd.s32 1, %s6556_s24  }
0x16bf   : > { %p32_p5 = scmp.ge.s32.totalorder %s35_s29, 4  }
0x16c1   :  { %34 = sbr.rel (!%p32_p5) target bundleno = 13 (0xd), region = 183 }

</bundles_post_ra>
